<compile_context>
chip_gen: v7x
topology: tpu7x:2x2x1
jax: 0.10.0
libtpu: 0.0.40
codegen_flags: <defaults>
</compile_context>

<pallas_src>
import functools
import re

import jax
import jax.numpy as jnp
from jax import lax
from jax.experimental import pallas as pl
from jax.experimental.pallas import tpu as pltpu

EXPANSION = 4
BN_EPS = 1e-5
LANE = 128
SUBLANE_BF16 = 16           # bf16 packs 2 rows per sublane -> min tile (16, 128)
CONV2_ROW_CAP = 256         # keep the f32 accumulator (rows x tc x 4B) ~vreg-file sized


# ------------------------------ hw-aware config -------------------------------

def _tpu_generation():
    try:
        kind = jax.devices()[0].device_kind.lower()     # "tpu v5 lite", "tpu v6e", "tpu7x", ...
        m = re.search(r"(\d+)", kind)
        if m:
            return int(m.group(1))
    except Exception:
        pass
    return 6


@functools.lru_cache(maxsize=None)
def _hw_config():
    gen = _tpu_generation()
    try:
        vmem_cap = int(pltpu.get_tpu_info().vmem_capacity_bytes)
    except Exception:
        vmem_cap = (64 if gen >= 7 else 128) * 1024 * 1024
    return dict(
        gen=gen,
        # ~3/4 of physical VMEM, capped at 96 MiB (v6e/v5e: 128 MiB physical;
        # v7x: 64 MiB physical -> ~48 MiB limit).
        vmem_limit=int(min(vmem_cap * 3 // 4, 96 * 1024 * 1024)),
        # v5e MXU is 4x(128x128): 128-wide output tiles are its native shape.
        tc_cap=128 if gen == 5 else 256,
        # larger 1x1 row tiles amortize per-grid-step overhead on v6e/v7x.
        m_cap=512 if gen == 5 else 1024,
    )


# ------------------------------ small helpers --------------------------------

def _pad_to(n, m):
    return ((n + m - 1) // m) * m


def _pad_last(a, cp):
    c = a.shape[-1]
    if c == cp:
        return a
    return jnp.pad(a, [(0, 0)] * (a.ndim - 1) + [(0, cp - c)])


def _pick_tile(n, cap, align, min_steps=1):
    """Largest divisor of n that is <= cap and a multiple of `align`, preferring
    one that yields at least `min_steps` grid steps. Falls back to n (full dim,
    always legal for the block-shape constraint)."""
    best = None
    for d in range(min(cap, n), 0, -1):
        if n % d == 0 and d % align == 0:
            if best is None:
                best = d
            if n // d >= min_steps:
                return d
    return best if best is not None else n


def _pick_conv2_row_tile(Ho, Wo16, cap_rows=CONV2_ROW_CAP):
    """Largest th | Ho with th*Wo16 <= cap_rows (at least 1)."""
    cap_th = max(1, cap_rows // Wo16)
    best = 1
    for th in range(1, Ho + 1):
        if Ho % th == 0 and th <= cap_th:
            best = th
    return best


def _fold_bn(bn):
    scale = bn["gamma"] / jnp.sqrt(bn["var"] + BN_EPS)
    bias = bn["beta"] - bn["mean"] * scale
    return scale, bias


def _prep_1x1(w_oihw, bn, cin_p, cout_p):
    """torch OIHW 1x1 weight -> (cin_p, cout_p) bf16 with BN scale folded in,
    plus (1, cout_p) f32 bias."""
    scale, bias = _fold_bn(bn)
    w = jnp.transpose(w_oihw[:, :, 0, 0], (1, 0)) * scale[None, :]
    w = jnp.pad(w, ((0, cin_p - w.shape[0]), (0, cout_p - w.shape[1])))
    b = _pad_last(bias[None, :], cout_p)
    return w.astype(jnp.bfloat16), b.astype(jnp.float32)


def _prep_3x3(w_oihw, bn, cin_p, cout_p):
    """torch OIHW 3x3 weight -> (9, cin_p, cout_p) bf16 (scale folded), f32 bias."""
    scale, bias = _fold_bn(bn)
    w = jnp.transpose(w_oihw, (2, 3, 1, 0)) * scale[None, None, None, :]
    w = w.reshape(9, w.shape[2], w.shape[3])
    w = jnp.pad(w, ((0, 0), (0, cin_p - w.shape[1]), (0, cout_p - w.shape[2])))
    b = _pad_last(bias[None, :], cout_p)
    return w.astype(jnp.bfloat16), b.astype(jnp.float32)


# --------------------------- 1x1 conv Pallas kernel ---------------------------

def _make_pointwise_kernel(do_relu, has_residual):
    """(tm, Cin) @ (Cin, tc) -> + bias (+ residual) (+ relu); f32 epilogue."""
    def kernel(*refs):
        if has_residual:
            x_ref, w_ref, b_ref, r_ref, o_ref = refs
        else:
            x_ref, w_ref, b_ref, o_ref = refs
            r_ref = None
        y = jnp.dot(x_ref[...], w_ref[...], preferred_element_type=jnp.float32)
        y = y + b_ref[...]
        if has_residual:
            y = y + r_ref[...].astype(jnp.float32)
        if do_relu:
            y = jnp.maximum(y, 0.0)
        o_ref[...] = y.astype(o_ref.dtype)
    return kernel


def conv1x1_bn_act(x2d, w, bias, residual=None, do_relu=True,
                   out_dtype=jnp.bfloat16, *, m_cap=1024, tc_cap=256,
                   vmem_limit=64 * 1024 * 1024):
    """Fused 1x1-conv (as matmul) + folded-BN bias (+residual) (+ReLU).

    x2d: (M, Cin) bf16; w: (Cin, Cout) bf16 (BN scale folded); bias: (1, Cout) f32.
    Cin/Cout are multiples of 128. Returns (M, Cout) in out_dtype.
    """
    M, Cin = x2d.shape
    Cout = w.shape[1]
    # 16-aligned sublane tiles (bf16 packs 2 rows/sublane), >=2 steps for megacore.
    tm = _pick_tile(M, m_cap, SUBLANE_BF16, min_steps=2)
    tc = _pick_tile(Cout, tc_cap, LANE)
    grid = (M // tm, Cout // tc)
    has_res = residual is not None

    in_specs = [
        pl.BlockSpec((tm, Cin), lambda i, j: (i, 0)),
        pl.BlockSpec((Cin, tc), lambda i, j: (0, j)),
        pl.BlockSpec((1, tc), lambda i, j: (0, j)),
    ]
    args = [x2d, w, bias]
    if has_res:
        in_specs.append(pl.BlockSpec((tm, tc), lambda i, j: (i, j)))
        args.append(residual)

    return pl.pallas_call(
        _make_pointwise_kernel(do_relu, has_res),
        out_shape=jax.ShapeDtypeStruct((M, Cout), out_dtype),
        grid=grid,
        in_specs=in_specs,
        out_specs=pl.BlockSpec((tm, tc), lambda i, j: (i, j)),
        compiler_params=pltpu.CompilerParams(
            dimension_semantics=("parallel", "parallel"),
            vmem_limit_bytes=vmem_limit),
    )(*args)


# --------------------------- 3x3 conv Pallas kernel ---------------------------

def _make_conv3x3_kernel(stride, th, wo16, off):
    """9-tap 3x3 conv over a pre-shifted, phase-split, halo'd row-tile block.

    Every tap is a static, 16-aligned window of the resident block, used
    directly as the 2D LHS of a matmul (no reshape, no relayout)."""
    s = stride
    rows = th * wo16

    def kernel(x_ref, w_ref, b_ref, o_ref):
        # x_ref: (1, 3*s, 1, (th+off)*wo16, C)   pre-shifted kw planes / h-phases
        # w_ref: (9, C, tc)    b_ref: (1, tc)    o_ref: (1, th*wo16, tc)
        acc = None
        for kh in range(3):
            for kw in range(3):
                t = kh * 3 + kw
                pidx = kw * s + (kh % s)          # which pre-shifted plane
                start = (kh // s) * wo16          # static, multiple of 16
                xs = x_ref[0, pidx, 0, pl.ds(start, rows), :]      # (rows, C)
                d = jnp.dot(xs, w_ref[t], preferred_element_type=jnp.float32)
                acc = d if acc is None else acc + d
        y = jnp.maximum(acc + b_ref[...], 0.0)
        o_ref[0] = y.astype(o_ref.dtype)

    return kernel


def conv3x3_bn_relu(y1, w9, bias, stride, *, tc_cap=256,
                    vmem_limit=64 * 1024 * 1024):
    """Fused 3x3 conv (stride, pad=1) + folded-BN bias + ReLU.

    y1: (N, H, W, C) bf16 (C multiple of 128); w9: (9, C, Cout) bf16; bias (1, Cout) f32.
    Returns (N*Ho*Wo, Cout) bf16.
    """
    N, H, W, C = y1.shape
    s = stride
    Ho = (H - 1) // s + 1
    Wo = (W - 1) // s + 1
    off = 2 // s                        # extra tap reach (rows) inside a phase plane
    Hph = Ho + off
    Cout = w9.shape[2]

    # --- wrapper-side layout prep (XLA): pad, kw-pre-shift, h-phase split ------
    pad_b = s * Hph - H - 1
    pad_r = max(0, s * (Wo - 1) + 3 - W - 1)
    y1p = jnp.pad(y1, ((0, 0), (1, pad_b), (1, pad_r), (0, 0)))

    # plane[kw*s + ph][n, hh, wo, c] = y1p[n, s*hh + ph, s*wo + kw, c]
    planes = [y1p[:, ph::s, kw::s, :][:, :Hph, :Wo, :]
              for kw in range(3) for ph in range(s)]
    xpl = jnp.stack(planes, axis=1)                       # (N, 3*s, Hph, Wo, C)

    # 16-align Wo (bf16 sublane pack) so the in-kernel windows are free.
    Wo16 = _pad_to(Wo, SUBLANE_BF16)
    if Wo16 != Wo:
        xpl = jnp.pad(xpl, ((0, 0), (0, 0), (0, 0), (0, Wo16 - Wo), (0, 0)))

    th = _pick_conv2_row_tile(Ho, Wo16)
    R = Ho // th
    # per-row-tile blocks with `off` halo rows, rows flattened with Wo16
    if R == 1:
        xt = xpl[:, :, None]                              # (N, 3s, 1, Hph, Wo16, C)
    else:
        xt = jnp.stack([xpl[:, :, r * th:r * th + th + off] for r in range(R)],
                       axis=2)                            # (N, 3s, R, th+off, Wo16, C)
    L = (th + off) * Wo16
    xt = xt.reshape(N, 3 * s, R, L, C)

    tc = _pick_tile(Cout, tc_cap, LANE)
    Co = Cout // tc

    out = pl.pallas_call(
        _make_conv3x3_kernel(s, th, Wo16, off),
        out_shape=jax.ShapeDtypeStruct((N, Ho * Wo16, Cout), jnp.bfloat16),
        grid=(N, Co, R),
        in_specs=[
            pl.BlockSpec((1, 3 * s, 1, L, C), lambda n, co, r: (n, 0, r, 0, 0)),
            pl.BlockSpec((9, C, tc), lambda n, co, r: (0, 0, co)),
            pl.BlockSpec((1, tc), lambda n, co, r: (0, co)),
        ],
        out_specs=pl.BlockSpec((1, th * Wo16, tc), lambda n, co, r: (n, r, co)),
        compiler_params=pltpu.CompilerParams(
            dimension_semantics=("parallel", "parallel", "parallel"),
            vmem_limit_bytes=vmem_limit),
    )(xt, w9, bias)

    out = out.reshape(N, Ho, Wo16, Cout)
    if Wo16 != Wo:
        out = out[:, :, :Wo, :]                           # strip alignment columns
    return out.reshape(N * Ho * Wo, Cout)


# ------------------------------ forward pass ----------------------------------

def init_bottleneck_params(key, in_channels, out_channels):
    exp_c = EXPANSION * out_channels
    keys = jax.random.split(key, 8)

    def conv_w(k, cout, cin, kh, kw):           # torch OIHW layout
        return jax.random.normal(k, (cout, cin, kh, kw), jnp.float32) * 0.1

    def bn_p(k, c):
        k1, k2, k3, k4 = jax.random.split(k, 4)
        return dict(
            gamma=jax.random.uniform(k1, (c,), jnp.float32, 0.5, 1.5),
            beta=jax.random.normal(k2, (c,), jnp.float32) * 0.1,
            mean=jax.random.normal(k3, (c,), jnp.float32) * 0.1,
            var=jax.random.uniform(k4, (c,), jnp.float32, 0.5, 1.5),
        )

    return {
        "conv1_w": conv_w(keys[0], out_channels, in_channels, 1, 1),
        "bn1": bn_p(keys[1], out_channels),
        "conv2_w": conv_w(keys[2], out_channels, out_channels, 3, 3),
        "bn2": bn_p(keys[3], out_channels),
        "conv3_w": conv_w(keys[4], exp_c, out_channels, 1, 1),
        "bn3": bn_p(keys[5], exp_c),
        "down_conv_w": conv_w(keys[6], exp_c, in_channels, 1, 1),
        "down_bn": bn_p(keys[7], exp_c),
    }


def bottleneck_forward(x_nchw, p, stride=1, is_downsampled=False):
    cfg = _hw_config()
    N, Cin, H, W = x_nchw.shape
    C1 = p["conv1_w"].shape[0]
    Cexp = p["conv3_w"].shape[0]

    if not is_downsampled and (stride != 1 or Cin != Cexp):
        raise ValueError(
            "identity shortcut requires stride == 1 and in_channels == "
            f"expansion*out_channels (got stride={stride}, Cin={Cin}, Cexp={Cexp})")

    cin_p = _pad_to(Cin, LANE)
    c1_p = _pad_to(C1, LANE)
    cexp_p = _pad_to(Cexp, LANE)

    # NCHW -> NHWC, lane-pad channels; bf16 activations, f32 accumulation in-kernel.
    x_nhwc = jnp.transpose(x_nchw, (0, 2, 3, 1)).astype(jnp.float32)
    xp = _pad_last(x_nhwc, cin_p).astype(jnp.bfloat16)                # (N,H,W,cin_p)

    Ho = (H - 1) // stride + 1
    Wo = (W - 1) // stride + 1
    M, Mo = N * H * W, N * Ho * Wo

    # conv1 (1x1) + bn1 + relu
    w1, b1 = _prep_1x1(p["conv1_w"], p["bn1"], cin_p, c1_p)
    y1 = conv1x1_bn_act(xp.reshape(M, cin_p), w1, b1, do_relu=True,
                        m_cap=cfg["m_cap"], tc_cap=cfg["tc_cap"],
                        vmem_limit=cfg["vmem_limit"])
    y1 = y1.reshape(N, H, W, c1_p)

    # conv2 (3x3, stride, pad=1) + bn2 + relu -- pre-shifted taps, halo'd row tiles
    w2, b2 = _prep_3x3(p["conv2_w"], p["bn2"], c1_p, c1_p)
    y2 = conv3x3_bn_relu(y1, w2, b2, stride, tc_cap=cfg["tc_cap"],
                         vmem_limit=cfg["vmem_limit"])                # (Mo, c1_p)

    # shortcut branch (kept in f32 for the residual add)
    if is_downsampled:
        wd, bd = _prep_1x1(p["down_conv_w"], p["down_bn"], cin_p, cexp_p)
        xs = jnp.transpose(x_nchw[:, :, ::stride, ::stride], (0, 2, 3, 1))
        xs = _pad_last(xs.astype(jnp.float32), cin_p).astype(jnp.bfloat16)
        res = conv1x1_bn_act(xs.reshape(Mo, cin_p), wd, bd, do_relu=False,
                             out_dtype=jnp.float32,
                             m_cap=cfg["m_cap"], tc_cap=cfg["tc_cap"],
                             vmem_limit=cfg["vmem_limit"])            # (Mo, cexp_p) f32
    else:
        res = _pad_last(x_nhwc, cexp_p).reshape(Mo, cexp_p)           # f32 identity

    # conv3 (1x1) + bn3 + residual add + relu -- fused in one kernel, f32 output
    w3, b3 = _prep_1x1(p["conv3_w"], p["bn3"], c1_p, cexp_p)
    out = conv1x1_bn_act(y2, w3, b3, residual=res, do_relu=True,
                         out_dtype=jnp.float32,
                         m_cap=cfg["m_cap"], tc_cap=cfg["tc_cap"],
                         vmem_limit=cfg["vmem_limit"])                # (Mo, cexp_p)

    out = out.reshape(N, Ho, Wo, cexp_p)[..., :Cexp]
    return jnp.transpose(out, (0, 3, 1, 2))                           # back to NCHW


# --------------------------- pure-JAX reference --------------------------------

def _ref_conv(x, w, stride=1, padding=0):
    return lax.conv_general_dilated(
        x, w, window_strides=(stride, stride),
        padding=((padding, padding), (padding, padding)),
        dimension_numbers=("NCHW", "OIHW", "NCHW"))


def _ref_bn(x, bn):
    g = bn["gamma"][None, :, None, None]
    b = bn["beta"][None, :, None, None]
    m = bn["mean"][None, :, None, None]
    v = bn["var"][None, :, None, None]
    return g * (x - m) / jnp.sqrt(v + BN_EPS) + b


def bottleneck_ref(x, p, stride=1, is_downsampled=False):
    i = x
    y = jax.nn.relu(_ref_bn(_ref_conv(x, p["conv1_w"]), p["bn1"]))
    y = jax.nn.relu(_ref_bn(_ref_conv(y, p["conv2_w"], stride=stride, padding=1), p["bn2"]))
    y = _ref_bn(_ref_conv(y, p["conv3_w"]), p["bn3"])
    if is_downsampled:
        i = _ref_bn(_ref_conv(i, p["down_conv_w"], stride=stride), p["down_bn"])
    return jax.nn.relu(y + i)


# --------------------------------- main -----------------------------------------

if __name__ == "__main__":
    key = jax.random.PRNGKey(0)
    kx, kp1, kp2 = jax.random.split(key, 3)

    in_c, out_c = 16, 4
    x = jax.random.normal(kx, (2, in_c, 16, 16), jnp.float32)

    fwd_ds = jax.jit(lambda xx, pp: bottleneck_forward(xx, pp, stride=2, is_downsampled=True))
    fwd_id = jax.jit(lambda xx, pp: bottleneck_forward(xx, pp, stride=1, is_downsampled=False))

    # config 1: downsample shortcut, stride 2
    p1 = init_bottleneck_params(kp1, in_c, out_c)
    out1 = jax.block_until_ready(fwd_ds(x, p1))
    ref1 = bottleneck_ref(x, p1, stride=2, is_downsampled=True)
    assert out1.shape == (2, EXPANSION * out_c, 8, 8)
    assert jnp.allclose(out1, ref1, atol=5e-2, rtol=5e-2), "downsample config mismatch"

    # config 2: identity shortcut (in_c == expansion * out_c), stride 1
    p2 = init_bottleneck_params(kp2, in_c, out_c)
    out2 = jax.block_until_ready(fwd_id(x, p2))
    ref2 = bottleneck_ref(x, p2, stride=1, is_downsampled=False)
    assert out2.shape == x.shape
    assert jnp.allclose(out2, ref2, atol=5e-2, rtol=5e-2), "identity config mismatch"

    print("KERNEL_OK")
</pallas_src>

<mosaic_0001>
module attributes {stable_mosaic.version = 11 : i64} {
  func.func @kernel(%arg0: i32, %arg1: i32, %arg2: memref<256x128xbf16, #tpu.memory_space<vmem>>, %arg3: memref<128x128xbf16, #tpu.memory_space<vmem>>, %arg4: memref<1x128xf32, #tpu.memory_space<vmem>>, %arg5: memref<256x128xbf16, #tpu.memory_space<vmem>>) attributes {dimension_semantics = [#tpu.dimension_semantics<parallel>, #tpu.dimension_semantics<parallel>], iteration_bounds = array<i64: 2, 1>, scalar_prefetch = 0 : i64, scratch_operands = 0 : i64, tpu.core_type = #tpu.core_type<tc>, window_params = [{transform_indices = @transform_0, window_bounds = array<i64: 256, 128>}, {transform_indices = @transform_1, window_bounds = array<i64: 128, 128>}, {transform_indices = @transform_2, window_bounds = array<i64: 1, 128>}, {transform_indices = @transform_3, window_bounds = array<i64: 256, 128>}]} {
    %c0 = arith.constant 0 : index
    %c0_0 = arith.constant 0 : index
    %0 = vector.load %arg2[%c0, %c0_0] : memref<256x128xbf16, #tpu.memory_space<vmem>>, vector<256x128xbf16>
    %c0_1 = arith.constant 0 : index
    %c0_2 = arith.constant 0 : index
    %1 = vector.load %arg3[%c0_1, %c0_2] : memref<128x128xbf16, #tpu.memory_space<vmem>>, vector<128x128xbf16>
    %cst = arith.constant dense<0.000000e+00> : vector<256x128xf32>
    %2 = tpu.matmul %0, %1, %cst {dimension_numbers = #tpu.dot_dimension_numbers<[1], [0], [0], [1], [0, 0, 1, 1], [], []>} : vector<256x128xbf16>, vector<128x128xbf16>, vector<256x128xf32> -> vector<256x128xf32>
    %c0_3 = arith.constant 0 : index
    %c0_4 = arith.constant 0 : index
    %3 = vector.load %arg4[%c0_3, %c0_4] : memref<1x128xf32, #tpu.memory_space<vmem>>, vector<1x128xf32>
    %4 = vector.broadcast %3 : vector<1x128xf32> to vector<256x128xf32>
    %5 = arith.addf %2, %4 : vector<256x128xf32>
    %cst_5 = arith.constant 0.000000e+00 : f32
    %6 = vector.broadcast %cst_5 : f32 to vector<256x128xf32>
    %7 = arith.maximumf %5, %6 : vector<256x128xf32>
    %8 = arith.truncf %7 : vector<256x128xf32> to vector<256x128xbf16>
    %c0_6 = arith.constant 0 : index
    %c0_7 = arith.constant 0 : index
    %9 = vector.load %arg5[%c0_6, %c0_7] : memref<256x128xbf16, #tpu.memory_space<vmem>>, vector<256x128xbf16>
    tpu.vector_store %arg5[%c0_6, %c0_7], %8 {strides = array<i32>} : memref<256x128xbf16, #tpu.memory_space<vmem>>, vector<256x128xbf16>,
    return
  }
  func.func @transform_0(%arg0: i32, %arg1: i32) -> (i32, i32) {
    %c0_i32 = arith.constant 0 : i32
    %c0_i32_0 = arith.constant 0 : i32
    return %arg0, %c0_i32 : i32, i32
  }
  func.func @transform_1(%arg0: i32, %arg1: i32) -> (i32, i32) {
    %c0_i32 = arith.constant 0 : i32
    %c0_i32_0 = arith.constant 0 : i32
    return %c0_i32, %arg1 : i32, i32
  }
  func.func @transform_2(%arg0: i32, %arg1: i32) -> (i32, i32) {
    %c0_i32 = arith.constant 0 : i32
    %c0_i32_0 = arith.constant 0 : i32
    return %c0_i32, %arg1 : i32, i32
  }
  func.func @transform_3(%arg0: i32, %arg1: i32) -> (i32, i32) {
    %c0_i32 = arith.constant 0 : i32
    return %arg0, %arg1 : i32, i32
  }
}

module attributes {stable_mosaic.version = 11 : i64} {
  func.func @kernel(%arg0: i32, %arg1: i32, %arg2: i32, %arg3: memref<1x6x1x144x128xbf16, #tpu.memory_space<vmem>>, %arg4: memref<9x128x128xbf16, #tpu.memory_space<vmem>>, %arg5: memref<1x128xf32, #tpu.memory_space<vmem>>, %arg6: memref<1x128x128xbf16, #tpu.memory_space<vmem>>) attributes {dimension_semantics = [#tpu.dimension_semantics<parallel>, #tpu.dimension_semantics<parallel>, #tpu.dimension_semantics<parallel>], iteration_bounds = array<i64: 2, 1, 1>, scalar_prefetch = 0 : i64, scratch_operands = 0 : i64, tpu.core_type = #tpu.core_type<tc>, window_params = [{transform_indices = @transform_0, window_bounds = array<i64: 1, 6, 1, 144, 128>}, {transform_indices = @transform_1, window_bounds = array<i64: 9, 128, 128>}, {transform_indices = @transform_2, window_bounds = array<i64: 1, 128>}, {transform_indices = @transform_3, window_bounds = array<i64: 1, 128, 128>}]} {
    %c0 = arith.constant 0 : index
    %c0_0 = arith.constant 0 : index
    %c0_1 = arith.constant 0 : index
    %c0_2 = arith.constant 0 : index
    %c0_3 = arith.constant 0 : index
    %0 = vector.load %arg3[%c0, %c0_0, %c0_1, %c0_2, %c0_3] : memref<1x6x1x144x128xbf16, #tpu.memory_space<vmem>>, vector<1x1x1x128x128xbf16>
    %1 = vector.shape_cast %0 : vector<1x1x1x128x128xbf16> to vector<128x128xbf16>
    %c0_4 = arith.constant 0 : index
    %c0_5 = arith.constant 0 : index
    %c0_6 = arith.constant 0 : index
    %2 = vector.load %arg4[%c0_4, %c0_5, %c0_6] : memref<9x128x128xbf16, #tpu.memory_space<vmem>>, vector<1x128x128xbf16>
    %3 = vector.shape_cast %2 : vector<1x128x128xbf16> to vector<128x128xbf16>
    %cst = arith.constant dense<0.000000e+00> : vector<128x128xf32>
    %4 = tpu.matmul %1, %3, %cst {dimension_numbers = #tpu.dot_dimension_numbers<[1], [0], [0], [1], [0, 0, 1, 1], [], []>} : vector<128x128xbf16>, vector<128x128xbf16>, vector<128x128xf32> -> vector<128x128xf32>
    %c0_7 = arith.constant 0 : index
    %c2 = arith.constant 2 : index
    %c0_8 = arith.constant 0 : index
    %c0_9 = arith.constant 0 : index
    %c0_10 = arith.constant 0 : index
    %5 = vector.load %arg3[%c0_7, %c2, %c0_8, %c0_9, %c0_10] : memref<1x6x1x144x128xbf16, #tpu.memory_space<vmem>>, vector<1x1x1x128x128xbf16>
    %6 = vector.shape_cast %5 : vector<1x1x1x128x128xbf16> to vector<128x128xbf16>
    %c1 = arith.constant 1 : index
    %c0_11 = arith.constant 0 : index
    %c0_12 = arith.constant 0 : index
    %7 = vector.load %arg4[%c1, %c0_11, %c0_12] : memref<9x128x128xbf16, #tpu.memory_space<vmem>>, vector<1x128x128xbf16>
    %8 = vector.shape_cast %7 : vector<1x128x128xbf16> to vector<128x128xbf16>
    %cst_13 = arith.constant dense<0.000000e+00> : vector<128x128xf32>
    %9 = tpu.matmul %6, %8, %cst_13 {dimension_numbers = #tpu.dot_dimension_numbers<[1], [0], [0], [1], [0, 0, 1, 1], [], []>} : vector<128x128xbf16>, vector<128x128xbf16>, vector<128x128xf32> -> vector<128x128xf32>
    %10 = arith.addf %4, %9 : vector<128x128xf32>
    %c0_14 = arith.constant 0 : index
    %c4 = arith.constant 4 : index
    %c0_15 = arith.constant 0 : index
    %c0_16 = arith.constant 0 : index
    %c0_17 = arith.constant 0 : index
    %11 = vector.load %arg3[%c0_14, %c4, %c0_15, %c0_16, %c0_17] : memref<1x6x1x144x128xbf16, #tpu.memory_space<vmem>>, vector<1x1x1x128x128xbf16>
    %12 = vector.shape_cast %11 : vector<1x1x1x128x128xbf16> to vector<128x128xbf16>
    %c2_18 = arith.constant 2 : index
    %c0_19 = arith.constant 0 : index
    %c0_20 = arith.constant 0 : index
    %13 = vector.load %arg4[%c2_18, %c0_19, %c0_20] : memref<9x128x128xbf16, #tpu.memory_space<vmem>>, vector<1x128x128xbf16>
    %14 = vector.shape_cast %13 : vector<1x128x128xbf16> to vector<128x128xbf16>
    %cst_21 = arith.constant dense<0.000000e+00> : vector<128x128xf32>
    %15 = tpu.matmul %12, %14, %cst_21 {dimension_numbers = #tpu.dot_dimension_numbers<[1], [0], [0], [1], [0, 0, 1, 1], [], []>} : vector<128x128xbf16>, vector<128x128xbf16>, vector<128x128xf32> -> vector<128x128xf32>
    %16 = arith.addf %10, %15 : vector<128x128xf32>
    %c0_22 = arith.constant 0 : index
    %c1_23 = arith.constant 1 : index
    %c0_24 = arith.constant 0 : index
    %c0_25 = arith.constant 0 : index
    %c0_26 = arith.constant 0 : index
    %17 = vector.load %arg3[%c0_22, %c1_23, %c0_24, %c0_25, %c0_26] : memref<1x6x1x144x128xbf16, #tpu.memory_space<vmem>>, vector<1x1x1x128x128xbf16>
    %18 = vector.shape_cast %17 : vector<1x1x1x128x128xbf16> to vector<128x128xbf16>
    %c3 = arith.constant 3 : index
    %c0_27 = arith.constant 0 : index
    %c0_28 = arith.constant 0 : index
    %19 = vector.load %arg4[%c3, %c0_27, %c0_28] : memref<9x128x128xbf16, #tpu.memory_space<vmem>>, vector<1x128x128xbf16>
    %20 = vector.shape_cast %19 : vector<1x128x128xbf16> to vector<128x128xbf16>
    %cst_29 = arith.constant dense<0.000000e+00> : vector<128x128xf32>
    %21 = tpu.matmul %18, %20, %cst_29 {dimension_numbers = #tpu.dot_dimension_numbers<[1], [0], [0], [1], [0, 0, 1, 1], [], []>} : vector<128x128xbf16>, vector<128x128xbf16>, vector<128x128xf32> -> vector<128x128xf32>
    %22 = arith.addf %16, %21 : vector<128x128xf32>
    %c0_30 = arith.constant 0 : index
    %c3_31 = arith.constant 3 : index
    %c0_32 = arith.constant 0 : index
    %c0_33 = arith.constant 0 : index
    %c0_34 = arith.constant 0 : index
    %23 = vector.load %arg3[%c0_30, %c3_31, %c0_32, %c0_33, %c0_34] : memref<1x6x1x144x128xbf16, #tpu.memory_space<vmem>>, vector<1x1x1x128x128xbf16>
    %24 = vector.shape_cast %23 : vector<1x1x1x128x128xbf16> to vector<128x128xbf16>
    %c4_35 = arith.constant 4 : index
    %c0_36 = arith.constant 0 : index
    %c0_37 = arith.constant 0 : index
    %25 = vector.load %arg4[%c4_35, %c0_36, %c0_37] : memref<9x128x128xbf16, #tpu.memory_space<vmem>>, vector<1x128x128xbf16>
    %26 = vector.shape_cast %25 : vector<1x128x128xbf16> to vector<128x128xbf16>
    %cst_38 = arith.constant dense<0.000000e+00> : vector<128x128xf32>
    %27 = tpu.matmul %24, %26, %cst_38 {dimension_numbers = #tpu.dot_dimension_numbers<[1], [0], [0], [1], [0, 0, 1, 1], [], []>} : vector<128x128xbf16>, vector<128x128xbf16>, vector<128x128xf32> -> vector<128x128xf32>
    %28 = arith.addf %22, %27 : vector<128x128xf32>
    %c0_39 = arith.constant 0 : index
    %c5 = arith.constant 5 : index
    %c0_40 = arith.constant 0 : index
    %c0_41 = arith.constant 0 : index
    %c0_42 = arith.constant 0 : index
    %29 = vector.load %arg3[%c0_39, %c5, %c0_40, %c0_41, %c0_42] : memref<1x6x1x144x128xbf16, #tpu.memory_space<vmem>>, vector<1x1x1x128x128xbf16>
    %30 = vector.shape_cast %29 : vector<1x1x1x128x128xbf16> to vector<128x128xbf16>
    %c5_43 = arith.constant 5 : index
    %c0_44 = arith.constant 0 : index
    %c0_45 = arith.constant 0 : index
    %31 = vector.load %arg4[%c5_43, %c0_44, %c0_45] : memref<9x128x128xbf16, #tpu.memory_space<vmem>>, vector<1x128x128xbf16>
    %32 = vector.shape_cast %31 : vector<1x128x128xbf16> to vector<128x128xbf16>
    %cst_46 = arith.constant dense<0.000000e+00> : vector<128x128xf32>
    %33 = tpu.matmul %30, %32, %cst_46 {dimension_numbers = #tpu.dot_dimension_numbers<[1], [0], [0], [1], [0, 0, 1, 1], [], []>} : vector<128x128xbf16>, vector<128x128xbf16>, vector<128x128xf32> -> vector<128x128xf32>
    %34 = arith.addf %28, %33 : vector<128x128xf32>
    %c0_47 = arith.constant 0 : index
    %c0_48 = arith.constant 0 : index
    %c0_49 = arith.constant 0 : index
    %c16 = arith.constant 16 : index
    %c0_50 = arith.constant 0 : index
    %35 = vector.load %arg3[%c0_47, %c0_48, %c0_49, %c16, %c0_50] : memref<1x6x1x144x128xbf16, #tpu.memory_space<vmem>>, vector<1x1x1x128x128xbf16>
    %36 = vector.shape_cast %35 : vector<1x1x1x128x128xbf16> to vector<128x128xbf16>
    %c6 = arith.constant 6 : index
    %c0_51 = arith.constant 0 : index
    %c0_52 = arith.constant 0 : index
    %37 = vector.load %arg4[%c6, %c0_51, %c0_52] : memref<9x128x128xbf16, #tpu.memory_space<vmem>>, vector<1x128x128xbf16>
    %38 = vector.shape_cast %37 : vector<1x128x128xbf16> to vector<128x128xbf16>
    %cst_53 = arith.constant dense<0.000000e+00> : vector<128x128xf32>
    %39 = tpu.matmul %36, %38, %cst_53 {dimension_numbers = #tpu.dot_dimension_numbers<[1], [0], [0], [1], [0, 0, 1, 1], [], []>} : vector<128x128xbf16>, vector<128x128xbf16>, vector<128x128xf32> -> vector<128x128xf32>
    %40 = arith.addf %34, %39 : vector<128x128xf32>
    %c0_54 = arith.constant 0 : index
    %c2_55 = arith.constant 2 : index
    %c0_56 = arith.constant 0 : index
    %c16_57 = arith.constant 16 : index
    %c0_58 = arith.constant 0 : index
    %41 = vector.load %arg3[%c0_54, %c2_55, %c0_56, %c16_57, %c0_58] : memref<1x6x1x144x128xbf16, #tpu.memory_space<vmem>>, vector<1x1x1x128x128xbf16>
    %42 = vector.shape_cast %41 : vector<1x1x1x128x128xbf16> to vector<128x128xbf16>
    %c7 = arith.constant 7 : index
    %c0_59 = arith.constant 0 : index
    %c0_60 = arith.constant 0 : index
    %43 = vector.load %arg4[%c7, %c0_59, %c0_60] : memref<9x128x128xbf16, #tpu.memory_space<vmem>>, vector<1x128x128xbf16>
    %44 = vector.shape_cast %43 : vector<1x128x128xbf16> to vector<128x128xbf16>
    %cst_61 = arith.constant dense<0.000000e+00> : vector<128x128xf32>
    %45 = tpu.matmul %42, %44, %cst_61 {dimension_numbers = #tpu.dot_dimension_numbers<[1], [0], [0], [1], [0, 0, 1, 1], [], []>} : vector<128x128xbf16>, vector<128x128xbf16>, vector<128x128xf32> -> vector<128x128xf32>
    %46 = arith.addf %40, %45 : vector<128x128xf32>
    %c0_62 = arith.constant 0 : index
    %c4_63 = arith.constant 4 : index
    %c0_64 = arith.constant 0 : index
    %c16_65 = arith.constant 16 : index
    %c0_66 = arith.constant 0 : index
    %47 = vector.load %arg3[%c0_62, %c4_63, %c0_64, %c16_65, %c0_66] : memref<1x6x1x144x128xbf16, #tpu.memory_space<vmem>>, vector<1x1x1x128x128xbf16>
    %48 = vector.shape_cast %47 : vector<1x1x1x128x128xbf16> to vector<128x128xbf16>
    %c8 = arith.constant 8 : index
    %c0_67 = arith.constant 0 : index
    %c0_68 = arith.constant 0 : index
    %49 = vector.load %arg4[%c8, %c0_67, %c0_68] : memref<9x128x128xbf16, #tpu.memory_space<vmem>>, vector<1x128x128xbf16>
    %50 = vector.shape_cast %49 : vector<1x128x128xbf16> to vector<128x128xbf16>
    %cst_69 = arith.constant dense<0.000000e+00> : vector<128x128xf32>
    %51 = tpu.matmul %48, %50, %cst_69 {dimension_numbers = #tpu.dot_dimension_numbers<[1], [0], [0], [1], [0, 0, 1, 1], [], []>} : vector<128x128xbf16>, vector<128x128xbf16>, vector<128x128xf32> -> vector<128x128xf32>
    %52 = arith.addf %46, %51 : vector<128x128xf32>
    %c0_70 = arith.constant 0 : index
    %c0_71 = arith.constant 0 : index
    %53 = vector.load %arg5[%c0_70, %c0_71] : memref<1x128xf32, #tpu.memory_space<vmem>>, vector<1x128xf32>
    %54 = vector.broadcast %53 : vector<1x128xf32> to vector<128x128xf32>
    %55 = arith.addf %52, %54 : vector<128x128xf32>
    %cst_72 = arith.constant 0.000000e+00 : f32
    %56 = vector.broadcast %cst_72 : f32 to vector<128x128xf32>
    %57 = arith.maximumf %55, %56 : vector<128x128xf32>
    %58 = arith.truncf %57 : vector<128x128xf32> to vector<128x128xbf16>
    %c0_73 = arith.constant 0 : index
    %c0_74 = arith.constant 0 : index
    %c0_75 = arith.constant 0 : index
    %59 = vector.load %arg6[%c0_73, %c0_74, %c0_75] : memref<1x128x128xbf16, #tpu.memory_space<vmem>>, vector<1x128x128xbf16>
    %60 = vector.shape_cast %59 : vector<1x128x128xbf16> to vector<128x128xbf16>
    %61 = vector.shape_cast %58 : vector<128x128xbf16> to vector<1x128x128xbf16>
    tpu.vector_store %arg6[%c0_73, %c0_74, %c0_75], %61 {strides = array<i32>} : memref<1x128x128xbf16, #tpu.memory_space<vmem>>, vector<1x128x128xbf16>,
    return
  }
  func.func @transform_0(%arg0: i32, %arg1: i32, %arg2: i32) -> (i32, i32, i32, i32, i32) {
    %c0_i32 = arith.constant 0 : i32
    %c0_i32_0 = arith.constant 0 : i32
    %c0_i32_1 = arith.constant 0 : i32
    %c0_i32_2 = arith.constant 0 : i32
    return %arg0, %c0_i32, %arg2, %c0_i32_0, %c0_i32_1 : i32, i32, i32, i32, i32
  }
  func.func @transform_1(%arg0: i32, %arg1: i32, %arg2: i32) -> (i32, i32, i32) {
    %c0_i32 = arith.constant 0 : i32
    %c0_i32_0 = arith.constant 0 : i32
    %c0_i32_1 = arith.constant 0 : i32
    return %c0_i32, %c0_i32_0, %arg1 : i32, i32, i32
  }
  func.func @transform_2(%arg0: i32, %arg1: i32, %arg2: i32) -> (i32, i32) {
    %c0_i32 = arith.constant 0 : i32
    %c0_i32_0 = arith.constant 0 : i32
    return %c0_i32, %arg1 : i32, i32
  }
  func.func @transform_3(%arg0: i32, %arg1: i32, %arg2: i32) -> (i32, i32, i32) {
    %c0_i32 = arith.constant 0 : i32
    return %arg0, %arg2, %arg1 : i32, i32, i32
  }
}

module attributes {stable_mosaic.version = 11 : i64} {
  func.func @kernel(%arg0: i32, %arg1: i32, %arg2: memref<64x128xbf16, #tpu.memory_space<vmem>>, %arg3: memref<128x128xbf16, #tpu.memory_space<vmem>>, %arg4: memref<1x128xf32, #tpu.memory_space<vmem>>, %arg5: memref<64x128xf32, #tpu.memory_space<vmem>>) attributes {dimension_semantics = [#tpu.dimension_semantics<parallel>, #tpu.dimension_semantics<parallel>], iteration_bounds = array<i64: 2, 1>, scalar_prefetch = 0 : i64, scratch_operands = 0 : i64, tpu.core_type = #tpu.core_type<tc>, window_params = [{transform_indices = @transform_0, window_bounds = array<i64: 64, 128>}, {transform_indices = @transform_1, window_bounds = array<i64: 128, 128>}, {transform_indices = @transform_2, window_bounds = array<i64: 1, 128>}, {transform_indices = @transform_3, window_bounds = array<i64: 64, 128>}]} {
    %c0 = arith.constant 0 : index
    %c0_0 = arith.constant 0 : index
    %0 = vector.load %arg2[%c0, %c0_0] : memref<64x128xbf16, #tpu.memory_space<vmem>>, vector<64x128xbf16>
    %c0_1 = arith.constant 0 : index
    %c0_2 = arith.constant 0 : index
    %1 = vector.load %arg3[%c0_1, %c0_2] : memref<128x128xbf16, #tpu.memory_space<vmem>>, vector<128x128xbf16>
    %cst = arith.constant dense<0.000000e+00> : vector<64x128xf32>
    %2 = tpu.matmul %0, %1, %cst {dimension_numbers = #tpu.dot_dimension_numbers<[1], [0], [0], [1], [0, 0, 1, 1], [], []>} : vector<64x128xbf16>, vector<128x128xbf16>, vector<64x128xf32> -> vector<64x128xf32>
    %c0_3 = arith.constant 0 : index
    %c0_4 = arith.constant 0 : index
    %3 = vector.load %arg4[%c0_3, %c0_4] : memref<1x128xf32, #tpu.memory_space<vmem>>, vector<1x128xf32>
    %4 = vector.broadcast %3 : vector<1x128xf32> to vector<64x128xf32>
    %5 = arith.addf %2, %4 : vector<64x128xf32>
    %c0_5 = arith.constant 0 : index
    %c0_6 = arith.constant 0 : index
    %6 = vector.load %arg5[%c0_5, %c0_6] : memref<64x128xf32, #tpu.memory_space<vmem>>, vector<64x128xf32>
    tpu.vector_store %arg5[%c0_5, %c0_6], %5 {strides = array<i32>} : memref<64x128xf32, #tpu.memory_space<vmem>>, vector<64x128xf32>,
    return
  }
  func.func @transform_0(%arg0: i32, %arg1: i32) -> (i32, i32) {
    %c0_i32 = arith.constant 0 : i32
    %c0_i32_0 = arith.constant 0 : i32
    return %arg0, %c0_i32 : i32, i32
  }
  func.func @transform_1(%arg0: i32, %arg1: i32) -> (i32, i32) {
    %c0_i32 = arith.constant 0 : i32
    %c0_i32_0 = arith.constant 0 : i32
    return %c0_i32, %arg1 : i32, i32
  }
  func.func @transform_2(%arg0: i32, %arg1: i32) -> (i32, i32) {
    %c0_i32 = arith.constant 0 : i32
    %c0_i32_0 = arith.constant 0 : i32
    return %c0_i32, %arg1 : i32, i32
  }
  func.func @transform_3(%arg0: i32, %arg1: i32) -> (i32, i32) {
    %c0_i32 = arith.constant 0 : i32
    return %arg0, %arg1 : i32, i32
  }
}

module attributes {stable_mosaic.version = 11 : i64} {
  func.func @kernel(%arg0: i32, %arg1: i32, %arg2: memref<64x128xbf16, #tpu.memory_space<vmem>>, %arg3: memref<128x128xbf16, #tpu.memory_space<vmem>>, %arg4: memref<1x128xf32, #tpu.memory_space<vmem>>, %arg5: memref<64x128xf32, #tpu.memory_space<vmem>>, %arg6: memref<64x128xf32, #tpu.memory_space<vmem>>) attributes {dimension_semantics = [#tpu.dimension_semantics<parallel>, #tpu.dimension_semantics<parallel>], iteration_bounds = array<i64: 2, 1>, scalar_prefetch = 0 : i64, scratch_operands = 0 : i64, tpu.core_type = #tpu.core_type<tc>, window_params = [{transform_indices = @transform_0, window_bounds = array<i64: 64, 128>}, {transform_indices = @transform_1, window_bounds = array<i64: 128, 128>}, {transform_indices = @transform_2, window_bounds = array<i64: 1, 128>}, {transform_indices = @transform_3, window_bounds = array<i64: 64, 128>}, {transform_indices = @transform_4, window_bounds = array<i64: 64, 128>}]} {
    %c0 = arith.constant 0 : index
    %c0_0 = arith.constant 0 : index
    %0 = vector.load %arg2[%c0, %c0_0] : memref<64x128xbf16, #tpu.memory_space<vmem>>, vector<64x128xbf16>
    %c0_1 = arith.constant 0 : index
    %c0_2 = arith.constant 0 : index
    %1 = vector.load %arg3[%c0_1, %c0_2] : memref<128x128xbf16, #tpu.memory_space<vmem>>, vector<128x128xbf16>
    %cst = arith.constant dense<0.000000e+00> : vector<64x128xf32>
    %2 = tpu.matmul %0, %1, %cst {dimension_numbers = #tpu.dot_dimension_numbers<[1], [0], [0], [1], [0, 0, 1, 1], [], []>} : vector<64x128xbf16>, vector<128x128xbf16>, vector<64x128xf32> -> vector<64x128xf32>
    %c0_3 = arith.constant 0 : index
    %c0_4 = arith.constant 0 : index
    %3 = vector.load %arg4[%c0_3, %c0_4] : memref<1x128xf32, #tpu.memory_space<vmem>>, vector<1x128xf32>
    %4 = vector.broadcast %3 : vector<1x128xf32> to vector<64x128xf32>
    %5 = arith.addf %2, %4 : vector<64x128xf32>
    %c0_5 = arith.constant 0 : index
    %c0_6 = arith.constant 0 : index
    %6 = vector.load %arg5[%c0_5, %c0_6] : memref<64x128xf32, #tpu.memory_space<vmem>>, vector<64x128xf32>
    %7 = arith.addf %5, %6 : vector<64x128xf32>
    %cst_7 = arith.constant 0.000000e+00 : f32
    %8 = vector.broadcast %cst_7 : f32 to vector<64x128xf32>
    %9 = arith.maximumf %7, %8 : vector<64x128xf32>
    %c0_8 = arith.constant 0 : index
    %c0_9 = arith.constant 0 : index
    %10 = vector.load %arg6[%c0_8, %c0_9] : memref<64x128xf32, #tpu.memory_space<vmem>>, vector<64x128xf32>
    tpu.vector_store %arg6[%c0_8, %c0_9], %9 {strides = array<i32>} : memref<64x128xf32, #tpu.memory_space<vmem>>, vector<64x128xf32>,
    return
  }
  func.func @transform_0(%arg0: i32, %arg1: i32) -> (i32, i32) {
    %c0_i32 = arith.constant 0 : i32
    %c0_i32_0 = arith.constant 0 : i32
    return %arg0, %c0_i32 : i32, i32
  }
  func.func @transform_1(%arg0: i32, %arg1: i32) -> (i32, i32) {
    %c0_i32 = arith.constant 0 : i32
    %c0_i32_0 = arith.constant 0 : i32
    return %c0_i32, %arg1 : i32, i32
  }
  func.func @transform_2(%arg0: i32, %arg1: i32) -> (i32, i32) {
    %c0_i32 = arith.constant 0 : i32
    %c0_i32_0 = arith.constant 0 : i32
    return %c0_i32, %arg1 : i32, i32
  }
  func.func @transform_3(%arg0: i32, %arg1: i32) -> (i32, i32) {
    %c0_i32 = arith.constant 0 : i32
    return %arg0, %arg1 : i32, i32
  }
  func.func @transform_4(%arg0: i32, %arg1: i32) -> (i32, i32) {
    %c0_i32 = arith.constant 0 : i32
    return %arg0, %arg1 : i32, i32
  }
}

</mosaic_0001>

<bundles_post_ra>
// kernel: _lambda_.4
= control target key start
LH: loop header
LB: loop body
LE: loop exit
PB: predicated region body
PF: predicated region fallthrough
CT: control target
= control target key end

     0   :  { %8 = vsyncpa [#allocation3], 0  ;;  %s1863_s0 = inlined_call_operand.hbm [shape: bf16[512,128], index: 0, kind: input, shape index: {}]   ;;  %s1864_s1 = inlined_call_operand.hbm [shape: bf16[128,128], index: 1, kind: input, shape index: {}]   ;;  %s1865_s2 = inlined_call_operand.hbm [shape: f32[1,128], index: 2, kind: input, shape index: {}]   ;;  %s1866_s3 = inlined_call_operand.hbm [shape: bf16[512,128], index: 3, kind: output, shape index: {}]  }
   0x1   :  { %10 = vsyncpa [#allocation3 + $0x1], 0 }
   0x2   :  { %11 = vsyncpa [#allocation6], 0 }
   0x3   :  { %12 = vsyncpa [#allocation4], 0 }
   0x4   :  { %14 = vsyncpa [#allocation4 + $0x1], 0  ;;  %s1526_s12 = smov 0   ;;  %s1528_s13 = smov 0  }
   0x5   :  { %s1530_s14 = smov 0   ;;  %s1532_s15 = smov 0  }
   0x6   :  { %s1534_s16 = smov 0   ;;  %s1536_s17 = smov 0  }
   0x7 LB: > { %s920_s18 = sadd.s32 4294967295, %s1496_s17   ;;  %s921_s19 = sadd.s32 4294967294, %s1496_s17   ;;  %s1496_s17 = sphi %s1536_s17, %s20_s17   ;;  %s1492_s16 = sphi %s1534_s16, %s1888_s16   ;;  %s1488_s15 = sphi %s1532_s15, %s1887_s15   ;;  %s1484_s14 = sphi %s1530_s14, %s1886_s14   ;;  %s1480_s13 = sphi %s1528_s13, %s1885_s13   ;;  %s1476_s12 = sphi %s1526_s12, %s1884_s12  }
   0x8   : > { %p52_p0 = scmp.ne.s32.totalorder %s1480_s13, %s1476_s12  ;;  %p1560_p1 = scmp.eq.s32.totalorder %s920_s18, 0 }
   0x9   : > { %p1564_p2 = scmp.eq.s32.totalorder %s920_s18, 1  ;;  %p136_p3 = scmp.eq.s32.totalorder %s921_s19, 1 }
   0xa   : > { %s1871_s20 = scalar_select %p1560_p1, 1, 0 }
   0xb   : > { %p1570_p4 = por %p1560_p1, %p52_p0  ;;  %p922_p5 = scmp.ge.s32.totalorder %s1496_s17, 1 }
   0xc   : > { %p1575_p6 = por %p136_p3, %p52_p0  ;;  %p143_p7 = scmp.lt.s32.totalorder %s1496_s17, 3 }
   0xd   : > { %s1873_s22 = scalar_select %p1570_p4, 1, 0 }
   0xe   : > { %s1874_s23 = scalar_select %p1575_p6, 1, 0 }
   0xf   : > { %p1580_p8 = pnand %p922_p5, %p143_p7  ;;  %s1498_s25 = smov [#allocation5]  }
  0x10   : > { %s157_s26 = sshll.u32 %s1498_s25, 4  ;;  %s1499_s28 = smov [#allocation7]   ;;  %s1584_s26 = int_to_ptr.vmem [resolvable:$true] %s157_s26 }
  0x11   : > { %p1225_p9 = pneg %p1580_p8  ;;  %s173_s29 = sshll.u32 %s1499_s28, 4  ;;  %s1595_s29 = int_to_ptr.vmem [resolvable:$true] %s173_s29 }
  0x12   : > { %s1324_s5 = scalar_lea.hbm %s1864_s1, 1024 }
  0x13   : > { %p1591_p11 = pnand %p1225_p9, %p1560_p1  ;;  %p1325_p12 = scmp.ne.s32.totalorder %s1864_s1, %s1324_s5 }
  0x14   : > { %p1331_p5 = scmp.lt.u32.totalorder %s1324_s5, %s1864_s1 }
  0x15   : > { %p1326_p13 = pneg %p1591_p11 }
  0x17   : > { %p1327_p0 = pnand %p1326_p13, %p1325_p12 }
  0x19   : > { %p1328_p3 = pneg %p1327_p0 }
  0x1b   : > { %p1333_p7 = pnand %p1331_p5, %p1328_p3 }
  0x1d   : > { %1336 = shalt.err (!%p1333_p7)
}
  0x1e   : > { %s1337_s10 = scalar_lea.vmem %s1584_s26, 1024  ;;  %p1345_p1 = scmp.lt.s32.totalorder %s1584_s26, %s1584_s26 }
  0x1f   : > { %p1338_p9 = scmp.ne.s32.totalorder %s1584_s26, %s1337_s10  ;;  %p1346_p12 = scmp.lt.s32.totalorder %s1337_s10, %s1337_s10 }
  0x21   : > { %p1340_p10 = pnand %p1338_p9, %p1326_p13  ;;  %p1347_p0 = por %p1346_p12, %p1345_p1 }
  0x23   : > { %p1341_p6 = pneg %p1340_p10 }
  0x25   : > { %p1348_p4 = pnand %p1347_p0, %p1341_p6 }
  0x27   : > { %1351 = shalt.err (!%p1348_p4)
}
  0x28   : > { %s1500_s11 = smov 64   ;;  %s1501_s18 = smov 4  }
  0x29   : > { %1228 = dma.hbm_to_vmem [thread:$0]  (!%p1591_p11), %s1864_s1, 1024, %s1584_s26, [#allocation6], %s1500_s11, %s1500_s11, %s1501_s18  }
  0x2a   : > { %s1352_s4 = scalar_lea.hbm %s1865_s2, 16 }
  0x2b   : > { %p1353_p1 = scmp.ne.s32.totalorder %s1865_s2, %s1352_s4  ;;  %p1359_p10 = scmp.lt.u32.totalorder %s1352_s4, %s1865_s2 }
  0x2d   : > { %p1355_p4 = pnand %p1353_p1, %p1326_p13 }
  0x2f   : > { %p1356_p6 = pneg %p1355_p4 }
  0x31   : > { %p1361_p3 = pnand %p1359_p10, %p1356_p6 }
  0x33   : > { %1364 = shalt.err (!%p1361_p3)
}
  0x34   : > { %s1365_s26 = scalar_lea.vmem %s1595_s29, 16  ;;  %s1372_s9 = scalar_lea.vmem %s1595_s29, 32 }
  0x35   : > { %p1366_p5 = scmp.ne.s32.totalorder %s1595_s29, %s1365_s26  ;;  %p1373_p12 = scmp.lt.s32.totalorder %s1595_s29, %s1595_s29 }
  0x36   : > { %p1374_p0 = scmp.lt.s32.totalorder %s1372_s9, %s1365_s26 }
  0x37   : > { %p1368_p7 = pnand %p1366_p5, %p1326_p13 }
  0x38   : > { %p1375_p1 = por %p1374_p0, %p1373_p12 }
  0x39   : > { %p1369_p9 = pneg %p1368_p7 }
  0x3b   : > { %p1376_p4 = pnand %p1375_p1, %p1369_p9 }
  0x3d   : > { %1379 = shalt.err (!%p1376_p4)
}
  0x3e   : > { %1231 = dma.hbm_to_vmem [thread:$0]  (!%p1591_p11), %s1865_s2, 16, %s1595_s29, [#allocation6]  }
  0x3f   : > { %s32_s25 = sadd.s32 1, %s1492_s16  ;;  %s39_s28 = sadd.s32 1, %s1484_s14 }
  0x40   : > { %p34_p13 = scmp.ge.s32.totalorder %s32_s25, 2  ;;  %p46_p6 = scmp.ne.s32.totalorder %s1484_s14, %s1480_s13 }
  0x41   : > { %p47_p10 = scmp.eq.s32.totalorder %s1496_s17, 0  ;;  %p1242_p3 = scmp.lt.s32.totalorder %s1496_s17, 2 }
  0x42   : > { %s1890_s25 = smov (%p34_p13, %s32_s25), 0  ;;  %p1663_p7 = por %p1564_p2, %p46_p6 }
  0x43   : > { %p48_p5 = por %p47_p10, %p46_p6  ;;  %s36_s30 = ssub.s32 %s1492_s16, %s1890_s25 }
  0x44   : > { %s1877_s27 = scalar_select %p1663_p7, 1, 0 }
  0x45   : > { %s184_s4 = sand.u32 1, %s1484_s14   ;;  %p37_p9 = scmp.eq.s32.totalorder %s36_s30, 0 }
  0x46   : > { %s926_s29 = sshll.u32 %s184_s4, 7  ;;  %s996_s5 = sshll.u32 %s1492_s16, 11 }
  0x47   : > { %s1672_s6 = scalar_select %p37_p9, %s1484_s14, %s39_s28  }
  0x48   : > { %s1677_s26 = scalar_lea.hbm %s1863_s0, %s996_s5  ;;  %s188_s21 = scalar_lea.vmem [#allocation2], %s926_s29 }
  0x49   : > { %s195_s9 = sshll.u32 %s188_s21, 4  ;;  %p1681_p2 = pnand %p1242_p3, %p48_p5  ;;  %s1685_s9 = int_to_ptr.vmem [resolvable:$true] %s195_s9 }
  0x4a   : > { %s1687_s19 = scalar_lea.sflag [#allocation3], %s184_s4  ;;  %s1380_s28 = scalar_lea.hbm %s1677_s26, 2048 }
  0x4b   : > { %p1381_p11 = scmp.ne.s32.totalorder %s1677_s26, %s1380_s28  ;;  %p1382_p12 = pneg %p1681_p2 }
  0x4c   : > { %s1385_s5 = scalar_lea.hbm %s1863_s0, 4096  ;;  %p1386_p4 = scmp.lt.u32.totalorder %s1677_s26, %s1863_s0 }
  0x4d   : > { %p1383_p0 = pnand %p1382_p12, %p1381_p11  ;;  %p1387_p13 = scmp.lt.u32.totalorder %s1385_s5, %s1380_s28 }
  0x4e   : > { %p1389_p10 = scmp.lt.u32.totalorder %s1380_s28, %s1677_s26 }
  0x4f   : > { %p1384_p1 = pneg %p1383_p0  ;;  %p1388_p6 = por %p1387_p13, %p1386_p4 }
  0x51   : > { %p1390_p3 = por %p1389_p10, %p1388_p6 }
  0x53   : > { %p1391_p5 = pnand %p1390_p3, %p1384_p1 }
  0x55   : > { %1394 = shalt.err (!%p1391_p5)
}
  0x56   : > { %s1395_s4 = scalar_lea.vmem %s1685_s9, 2048  ;;  %s1502_s21 = smov [#allocation2]  }
  0x57   : > { %p1396_p9 = scmp.ne.s32.totalorder %s1685_s9, %s1395_s4  ;;  %s1400_s30 = sshll.u32 %s1502_s21, 4  ;;  %s1401_s30 = int_to_ptr.vmem [resolvable:$false] %s1400_s30 }
  0x58   : > { %s1402_s29 = scalar_lea.vmem %s1401_s30, 4096  ;;  %p1403_p7 = scmp.lt.s32.totalorder %s1685_s9, %s1401_s30 }
  0x59   : > { %p1398_p11 = pnand %p1396_p9, %p1382_p12  ;;  %p1404_p4 = scmp.lt.s32.totalorder %s1402_s29, %s1395_s4 }
  0x5b   : > { %p1399_p0 = pneg %p1398_p11  ;;  %p1405_p13 = por %p1404_p4, %p1403_p7 }
  0x5d   : > { %p1406_p6 = pnand %p1405_p13, %p1399_p0 }
  0x5f   : > { %1409 = shalt.err (!%p1406_p6)
}
  0x60   : > { %1235 = dma.hbm_to_vmem [thread:$0]  (!%p1681_p2), %s1677_s26, 2048, %s1685_s9, %s1687_s19, %s1500_s11, %s1500_s11, %s1501_s18  }
  0x61   : > { %207 = sbr.rel (%p1580_p8) target bundleno = 401 (0x191), region = 32  ;;  %s1721_s28 = sand.u32 (!%p1580_p8), 1, %s1480_s13  }
  0x62   : > { %s930_s5 = sshll.u32 (!%p1580_p8), %s1721_s28, 7  ;;  %s210_s7 = scalar_lea.sflag (!%p1580_p8), [#allocation3], %s1721_s28 }
  0x63   : > { %s1727_s10 = scalar_lea.vmem (!%p1580_p8), [#allocation2], %s930_s5  ;;  %p1879_p7 = scmp.ne.s32.totalorder (!%p1580_p8), %s1873_s22, 0 }
  0x68   : > { %1463 = dma.done.wait (%p1879_p7), %s210_s7, 2048  }
  0x69   : > { %1465 = vsyncadd (%p1879_p7), %s210_s7, 4294965248  ;;  %p1880_p2 = scmp.ne.s32.totalorder %s1871_s20, 0 }
  0x6b   : > { %1467 = dma.done.wait (%p1880_p2), [#allocation6], 1040  }
  0x6c   : > { %1469 = vsyncadd (%p1880_p2), [#allocation6], 4294966256  ;;  %v1300_v0 = vld [vmem:[#allocation5] sm:$0xff]   ;;  %v1301_v1 = vld [vmem:[#allocation5 + $0x8] sm:$0xff]   ;;  %s1765_s20 = scalar_lea.vmem [#allocation8], %s930_s5  ;;  %s1029_s22 = sshll.u32 %s1488_s15, 11 }
  0x6d   : > { %1149 = vmatprep.subr.bf16.mxu0 %v1300_v0  ;;  %1197 = vmatprep.subr.bf16.mxu1 %v1300_v0  ;;  %v1302_v2 = vld [vmem:[#allocation5 + $0x10] sm:$0xff]   ;;  %v1303_v3 = vld [vmem:[#allocation5 + $0x18] sm:$0xff]   ;;  %v1308_v4 = vld [vmem:[%s1727_s10] sm:$0xff]   ;;  %s814_s24 = sshll.u32 %s1765_s20, 4  ;;  %s1808_s15 = scalar_lea.hbm %s1866_s3, %s1029_s22  ;;  %s1810_s24 = int_to_ptr.vmem [resolvable:$true] %s814_s24 }
  0x6e   : > { %1150 = vmatpush3.bf16.msra.mxu0 %v1300_v0  ;;  %1205 = vmatpush3.bf16.msra.mxu1 %v1300_v0  ;;  %v1309_v5 = vld [vmem:[%s1727_s10 + $0x40] sm:$0xff]   ;;  %v1305_v7 = vld [vmem:[#allocation5 + $0x28] sm:$0xff]   ;;  %v1306_v8 = vld [vmem:[#allocation5 + $0x30] sm:$0xff]   ;;  %s800_s26 = scalar_lea.sflag [#allocation4], %s1721_s28  ;;  %s1410_s9 = scalar_lea.vmem %s1810_s24, 2048 }
  0x6f   : > { %1151 = vmatprep.subr.bf16.mxu0 %v1301_v1  ;;  %1198 = vmatprep.subr.bf16.mxu1 %v1301_v1  ;;  %v1304_v6 = vld [vmem:[#allocation5 + $0x20] sm:$0xff]   ;;  %v1307_v9 = vld [vmem:[#allocation5 + $0x38] sm:$0xff]   ;;  %v1310_v10 = vld [vmem:[%s1727_s10 + $0x8] sm:$0xff]   ;;  %p1411_p8 = scmp.ne.s32.totalorder %s1810_s24, %s1410_s9  ;;  %p1881_p12 = scmp.ne.s32.totalorder %s1877_s27, 0 }
  0x70   : > { %1165 = vmatprep.mubr.bf16.mxu0 %v1308_v4  ;;  %1181 = vmatprep.mubr.bf16.mxu1 %v1309_v5  ;;  %v1311_v11 = vld [vmem:[%s1727_s10 + $0x48] sm:$0xff]   ;;  %v1312_v12 = vld [vmem:[%s1727_s10 + $0x10] sm:$0xff]   ;;  %v1314_v14 = vld [vmem:[%s1727_s10 + $0x18] sm:$0xff]   ;;  %s1503_s19 = smov [#allocation8]  }
  0x71   : > { %v1313_v13 = vld [vmem:[%s1727_s10 + $0x50] sm:$0xff]   ;;  %v1315_v15 = vld [vmem:[%s1727_s10 + $0x58] sm:$0xff]   ;;  %v1316_v16 = vld [vmem:[%s1727_s10 + $0x20] sm:$0xff]   ;;  %p1412_p1 = pnand %p1411_p8, %p1881_p12  ;;  %s1414_s8 = sshll.u32 %s1503_s19, 4  ;;  %s1415_s8 = int_to_ptr.vmem [resolvable:$false] %s1414_s8 }
  0x72   : > { %1152 = vmatpush3.bf16.msra.mxu0 %v1301_v1  ;;  %1206 = vmatpush3.bf16.msra.mxu1 %v1301_v1  ;;  %v1317_v17 = vld [vmem:[%s1727_s10 + $0x60] sm:$0xff]   ;;  %v1318_v18 = vld [vmem:[%s1727_s10 + $0x28] sm:$0xff]   ;;  %v1320_v20 = vld [vmem:[%s1727_s10 + $0x30] sm:$0xff]   ;;  %s1416_s4 = scalar_lea.vmem %s1415_s8, 4096  ;;  %p1417_p3 = scmp.lt.s32.totalorder %s1810_s24, %s1415_s8 }
  0x73   : > { %1153 = vmatprep.subr.bf16.mxu0 %v1302_v2  ;;  %1199 = vmatprep.subr.bf16.mxu1 %v1302_v2  ;;  %v1319_v19 = vld [vmem:[%s1727_s10 + $0x68] sm:$0xff]   ;;  %v1321_v21 = vld [vmem:[%s1727_s10 + $0x70] sm:$0xff]   ;;  %v1322_v22 = vld [vmem:[%s1727_s10 + $0x38] sm:$0xff]   ;;  %p1413_p10 = pneg %p1412_p1  ;;  %p1418_p5 = scmp.lt.s32.totalorder %s1416_s4, %s1410_s9 }
  0x74   : > { %v1323_v23 = vld [vmem:[%s1727_s10 + $0x78] sm:$0xff]   ;;  %v1753_v24 = vld [vmem:[#allocation7] ss:$0 sm:$0xff] }
  0x75   : > { %p1419_p9 = por %p1418_p5, %p1417_p3 }
  0x76   : > { %1154 = vmatpush3.bf16.msra.mxu0 %v1302_v2  ;;  %1207 = vmatpush3.bf16.msra.mxu1 %v1302_v2 }
  0x77   : > { %1155 = vmatprep.subr.bf16.mxu0 %v1303_v3  ;;  %1200 = vmatprep.subr.bf16.mxu1 %v1303_v3  ;;  %p1420_p11 = pnand %p1419_p9, %p1413_p10 }
  0x7a   : > { %1156 = vmatpush3.bf16.msra.mxu0 %v1303_v3  ;;  %1208 = vmatpush3.bf16.msra.mxu1 %v1303_v3 }
  0x7b   : > { %1157 = vmatprep.subr.bf16.mxu0 %v1304_v6  ;;  %1201 = vmatprep.subr.bf16.mxu1 %v1304_v6 }
  0x7e   : > { %1158 = vmatpush3.bf16.msra.mxu0 %v1304_v6  ;;  %1209 = vmatpush3.bf16.msra.mxu1 %v1304_v6 }
  0x7f   : > { %1159 = vmatprep.subr.bf16.mxu0 %v1305_v7  ;;  %1202 = vmatprep.subr.bf16.mxu1 %v1305_v7 }
  0x82   : > { %1160 = vmatpush3.bf16.msra.mxu0 %v1305_v7  ;;  %1210 = vmatpush3.bf16.msra.mxu1 %v1305_v7 }
  0x83   : > { %1161 = vmatprep.subr.bf16.mxu0 %v1306_v8  ;;  %1203 = vmatprep.subr.bf16.mxu1 %v1306_v8 }
  0x86   : > { %1162 = vmatpush3.bf16.msra.mxu0 %v1306_v8  ;;  %1211 = vmatpush3.bf16.msra.mxu1 %v1306_v8 }
  0x87   : > { %1163 = vmatprep.subr.bf16.mxu0 %v1307_v9  ;;  %1204 = vmatprep.subr.bf16.mxu1 %v1307_v9 }
  0x8a   : > { %1164 = vmatpush3.bf16.msra.mxu0 %v1307_v9  ;;  %1212 = vmatpush3.bf16.msra.mxu1 %v1307_v9 }
  0x8d   : > { %1166 = vmatmul.mubr.bf16.vlgmr.msra.gmra.mrb[0].mxu0 %v1310_v10  ;;  %1182 = vmatmul.mubr.bf16.vlgmr.msra.gmra.mrb[0].mxu1 %v1311_v11 }
  0x8e   : > { %1169 = vmatprep.mubr.bf16.mxu0 %v1312_v12  ;;  %1185 = vmatprep.mubr.bf16.mxu1 %v1313_v13 }
  0x95   : > { %1170 = vmatmul.mubr.bf16.gmra.mrb[4].mxu0 %v1314_v14  ;;  %1186 = vmatmul.mubr.bf16.gmra.mrb[4].mxu1 %v1315_v15 }
  0x96   : > { %1173 = vmatprep.mubr.bf16.mxu0 %v1316_v16  ;;  %1189 = vmatprep.mubr.bf16.mxu1 %v1317_v17 }
  0x9d   : > { %1174 = vmatmul.mubr.bf16.gmra.mrb[8].mxu0 %v1318_v18  ;;  %1190 = vmatmul.mubr.bf16.gmra.mrb[8].mxu1 %v1319_v19 }
  0x9e   : > { %1177 = vmatprep.mubr.bf16.mxu0 %v1320_v20  ;;  %1193 = vmatprep.mubr.bf16.mxu1 %v1321_v21 }
  0xa5   : > { %1178 = vmatmul.mubr.bf16.gmra.mrb[12].mxu0 %v1322_v22  ;;  %1194 = vmatmul.mubr.bf16.gmra.mrb[12].mxu1 %v1323_v23 }
 0x160   : > { %v1167_v25 = vpop.f32.mrb[0].mxu0  ;;  %v1183_v26 = vpop.f32.mrb[0].mxu1 }
 0x161   : > { %v489_v27 = vadd.f32 %v1167_v25, %v1753_v24  ;;  %v553_v28 = vadd.f32 %v1183_v26, %v1753_v24  ;;  %v480_v29 = vpop.f32.mrb[1].mxu0  ;;  %v544_v30 = vpop.f32.mrb[1].mxu1 }
 0x162   : > { %v481_v31 = vadd.f32 %v1753_v24, %v480_v29  ;;  %v545_v32 = vadd.f32 %v1753_v24, %v544_v30  ;;  %v1168_v33 = vpop.f32.mrb[2].mxu0  ;;  %v1184_v34 = vpop.f32.mrb[2].mxu1 }
 0x163   : > { %v492_v35 = vadd.f32 %v1168_v33, %v1753_v24  ;;  %v556_v36 = vadd.f32 %v1184_v34, %v1753_v24  ;;  %v483_v37 = vpop.f32.mrb[3].mxu0  ;;  %v547_v38 = vpop.f32.mrb[3].mxu1  ;;  %v609_v41 = vmax.f32 %v489_v27, 0.0  ;;  %v625_v42 = vmax.f32 %v553_v28, 0.0 }
 0x164   : > { %v484_v39 = vadd.f32 %v1753_v24, %v483_v37  ;;  %v548_v40 = vadd.f32 %v1753_v24, %v547_v38  ;;  %v607_v45 = vmax.f32 %v481_v31, 0.0  ;;  %v623_v46 = vmax.f32 %v545_v32, 0.0 }
 0x165   : > { %v610_v43 = vmax.f32 %v492_v35, 0.0  ;;  %v626_v44 = vmax.f32 %v556_v36, 0.0 }
 0x166   : > { %v608_v47 = vmax.f32 %v484_v39, 0.0  ;;  %v624_v48 = vmax.f32 %v548_v40, 0.0 }
 0x167   : > { %v1038_v49 = vpack.c.bf16 %v610_v43, %v609_v41  ;;  %v1078_v50 = vpack.c.bf16 %v626_v44, %v625_v42 }
 0x168   : > { %v1033_v51 = vpack.c.bf16 %v608_v47, %v607_v45  ;;  %v1073_v52 = vpack.c.bf16 %v624_v48, %v623_v46  ;;  %v1171_v53 = vpop.f32.mrb[4].mxu0  ;;  %v1187_v54 = vpop.f32.mrb[4].mxu1 }
 0x169   : > { %1110 = vst [vmem:[%s1765_s20 + $0x8] sm:$0xff] %v1038_v49   ;;  %1118 = vst [vmem:[%s1765_s20 + $0x48] sm:$0xff] %v1078_v50   ;;  %v505_v55 = vadd.f32 %v1171_v53, %v1753_v24  ;;  %v569_v56 = vadd.f32 %v1187_v54, %v1753_v24  ;;  %v496_v57 = vpop.f32.mrb[5].mxu0  ;;  %v560_v58 = vpop.f32.mrb[5].mxu1 }
 0x16a   : > { %1034 = vst [vmem:[%s1765_s20] sm:$0xff] %v1033_v51   ;;  %1117 = vst [vmem:[%s1765_s20 + $0x40] sm:$0xff] %v1073_v52   ;;  %v497_v59 = vadd.f32 %v1753_v24, %v496_v57  ;;  %v561_v60 = vadd.f32 %v1753_v24, %v560_v58  ;;  %v1172_v61 = vpop.f32.mrb[6].mxu0  ;;  %v1188_v62 = vpop.f32.mrb[6].mxu1 }
 0x16b   : > { %v508_v63 = vadd.f32 %v1172_v61, %v1753_v24  ;;  %v572_v0 = vadd.f32 %v1188_v62, %v1753_v24  ;;  %v499_v1 = vpop.f32.mrb[7].mxu0  ;;  %v563_v2 = vpop.f32.mrb[7].mxu1  ;;  %v613_v5 = vmax.f32 %v505_v55, 0.0  ;;  %v629_v6 = vmax.f32 %v569_v56, 0.0 }
 0x16c   : > { %v500_v3 = vadd.f32 %v1753_v24, %v499_v1  ;;  %v564_v4 = vadd.f32 %v1753_v24, %v563_v2  ;;  %v611_v9 = vmax.f32 %v497_v59, 0.0  ;;  %v627_v10 = vmax.f32 %v561_v60, 0.0 }
 0x16d   : > { %v614_v7 = vmax.f32 %v508_v63, 0.0  ;;  %v630_v8 = vmax.f32 %v572_v0, 0.0 }
 0x16e   : > { %v612_v11 = vmax.f32 %v500_v3, 0.0  ;;  %v628_v12 = vmax.f32 %v564_v4, 0.0 }
 0x16f   : > { %v1048_v13 = vpack.c.bf16 %v614_v7, %v613_v5  ;;  %v1088_v14 = vpack.c.bf16 %v630_v8, %v629_v6 }
 0x170   : > { %v1043_v15 = vpack.c.bf16 %v612_v11, %v611_v9  ;;  %v1083_v16 = vpack.c.bf16 %v628_v12, %v627_v10  ;;  %v1175_v17 = vpop.f32.mrb[8].mxu0  ;;  %v1191_v18 = vpop.f32.mrb[8].mxu1 }
 0x171   : > { %1112 = vst [vmem:[%s1765_s20 + $0x18] sm:$0xff] %v1048_v13   ;;  %1120 = vst [vmem:[%s1765_s20 + $0x58] sm:$0xff] %v1088_v14   ;;  %v521_v19 = vadd.f32 %v1175_v17, %v1753_v24  ;;  %v585_v20 = vadd.f32 %v1191_v18, %v1753_v24  ;;  %v512_v21 = vpop.f32.mrb[9].mxu0  ;;  %v576_v22 = vpop.f32.mrb[9].mxu1 }
 0x172   : > { %1111 = vst [vmem:[%s1765_s20 + $0x10] sm:$0xff] %v1043_v15   ;;  %1119 = vst [vmem:[%s1765_s20 + $0x50] sm:$0xff] %v1083_v16   ;;  %v513_v23 = vadd.f32 %v1753_v24, %v512_v21  ;;  %v577_v25 = vadd.f32 %v1753_v24, %v576_v22  ;;  %v1176_v26 = vpop.f32.mrb[10].mxu0  ;;  %v1192_v27 = vpop.f32.mrb[10].mxu1 }
 0x173   : > { %v524_v28 = vadd.f32 %v1176_v26, %v1753_v24  ;;  %v588_v29 = vadd.f32 %v1192_v27, %v1753_v24  ;;  %v515_v30 = vpop.f32.mrb[11].mxu0  ;;  %v579_v31 = vpop.f32.mrb[11].mxu1  ;;  %v617_v34 = vmax.f32 %v521_v19, 0.0  ;;  %v633_v35 = vmax.f32 %v585_v20, 0.0 }
 0x174   : > { %v516_v32 = vadd.f32 %v1753_v24, %v515_v30  ;;  %v580_v33 = vadd.f32 %v1753_v24, %v579_v31  ;;  %v615_v38 = vmax.f32 %v513_v23, 0.0  ;;  %v631_v39 = vmax.f32 %v577_v25, 0.0 }
 0x175   : > { %v618_v36 = vmax.f32 %v524_v28, 0.0  ;;  %v634_v37 = vmax.f32 %v588_v29, 0.0 }
 0x176   : > { %v616_v40 = vmax.f32 %v516_v32, 0.0  ;;  %v632_v41 = vmax.f32 %v580_v33, 0.0 }
 0x177   : > { %v1058_v42 = vpack.c.bf16 %v618_v36, %v617_v34  ;;  %v1098_v43 = vpack.c.bf16 %v634_v37, %v633_v35 }
 0x178   : > { %v1053_v44 = vpack.c.bf16 %v616_v40, %v615_v38  ;;  %v1093_v45 = vpack.c.bf16 %v632_v41, %v631_v39  ;;  %v1179_v46 = vpop.f32.mrb[12].mxu0  ;;  %v1195_v47 = vpop.f32.mrb[12].mxu1 }
 0x179   : > { %1114 = vst [vmem:[%s1765_s20 + $0x28] sm:$0xff] %v1058_v42   ;;  %1122 = vst [vmem:[%s1765_s20 + $0x68] sm:$0xff] %v1098_v43   ;;  %v537_v48 = vadd.f32 %v1179_v46, %v1753_v24  ;;  %v601_v49 = vadd.f32 %v1195_v47, %v1753_v24  ;;  %v528_v50 = vpop.f32.mrb[13].mxu0  ;;  %v592_v51 = vpop.f32.mrb[13].mxu1 }
 0x17a   : > { %1113 = vst [vmem:[%s1765_s20 + $0x20] sm:$0xff] %v1053_v44   ;;  %1121 = vst [vmem:[%s1765_s20 + $0x60] sm:$0xff] %v1093_v45   ;;  %v529_v52 = vadd.f32 %v1753_v24, %v528_v50  ;;  %v593_v53 = vadd.f32 %v1753_v24, %v592_v51  ;;  %v1180_v54 = vpop.f32.mrb[14].mxu0  ;;  %v1196_v55 = vpop.f32.mrb[14].mxu1 }
 0x17b   : > { %v540_v56 = vadd.f32 %v1180_v54, %v1753_v24  ;;  %v604_v57 = vadd.f32 %v1196_v55, %v1753_v24  ;;  %v531_v58 = vpop.f32.mrb[15].mxu0  ;;  %v595_v59 = vpop.f32.mrb[15].mxu1  ;;  %v621_v62 = vmax.f32 %v537_v48, 0.0  ;;  %v637_v63 = vmax.f32 %v601_v49, 0.0 }
 0x17c   : > { %v532_v60 = vadd.f32 %v1753_v24, %v531_v58  ;;  %v596_v61 = vadd.f32 %v1753_v24, %v595_v59  ;;  %v619_v2 = vmax.f32 %v529_v52, 0.0  ;;  %v635_v3 = vmax.f32 %v593_v53, 0.0 }
 0x17d   : > { %v622_v0 = vmax.f32 %v540_v56, 0.0  ;;  %v638_v1 = vmax.f32 %v604_v57, 0.0 }
 0x17e   : > { %v620_v4 = vmax.f32 %v532_v60, 0.0  ;;  %v636_v5 = vmax.f32 %v596_v61, 0.0 }
 0x17f   : > { %v1068_v6 = vpack.c.bf16 %v622_v0, %v621_v62  ;;  %v1108_v7 = vpack.c.bf16 %v638_v1, %v637_v63 }
 0x180   : > { %v1063_v24 = vpack.c.bf16 %v620_v4, %v619_v2  ;;  %v1103_v8 = vpack.c.bf16 %v636_v5, %v635_v3 }
 0x181   : > { %1116 = vst [vmem:[%s1765_s20 + $0x38] sm:$0xff] %v1068_v6   ;;  %1124 = vst [vmem:[%s1765_s20 + $0x78] sm:$0xff] %v1108_v7  }
 0x182   : > { %1115 = vst [vmem:[%s1765_s20 + $0x30] sm:$0xff] %v1063_v24   ;;  %1123 = vst [vmem:[%s1765_s20 + $0x70] sm:$0xff] %v1103_v8  }
 0x183   : > { %1423 = shalt.err (!%p1420_p11)
}
 0x184   : > { %s1424_s21 = scalar_lea.hbm %s1808_s15, 2048  ;;  %s1428_s5 = scalar_lea.hbm %s1866_s3, 4096 }
 0x185   : > { %p1425_p0 = scmp.ne.s32.totalorder %s1808_s15, %s1424_s21  ;;  %p1429_p6 = scmp.lt.u32.totalorder %s1808_s15, %s1866_s3 }
 0x186   : > { %p1430_p7 = scmp.lt.u32.totalorder %s1428_s5, %s1424_s21  ;;  %p1432_p8 = scmp.lt.u32.totalorder %s1424_s21, %s1808_s15 }
 0x187   : > { %p1426_p4 = pnand %p1425_p0, %p1881_p12 }
 0x188   : > { %p1431_p2 = por %p1430_p7, %p1429_p6 }
 0x189   : > { %p1427_p13 = pneg %p1426_p4 }
 0x18a   : > { %p1433_p1 = por %p1432_p8, %p1431_p2 }
 0x18c   : > { %p1434_p10 = pnand %p1433_p1, %p1427_p13 }
 0x18e   : > { %1437 = shalt.err (!%p1434_p10)
}
 0x18f   : > { %s1504_s20 = smov 64   ;;  %s1505_s22 = smov 4  }
 0x190   : > { %1223 = dma.vmem_to_hbm [thread:$0]  (%p1881_p12), %s1810_s24, 2048, %s1808_s15, %s800_s26, %s1504_s20, %s1504_s20, %s1505_s22  }
 0x191 PF: > { %s829_s11 = sand.u32 1, %s1476_s12   ;;  %p1882_p3 = scmp.ne.s32.totalorder %s1874_s23, 0 }
 0x192   : > { %p1883_p5 = scmp.ge.s32.totalorder %s1496_s17, 2  ;;  %s830_s18 = scalar_lea.sflag [#allocation4], %s829_s11 }
 0x194   : > { %p1237_p9 = pnand %p1883_p5, %p1882_p3 }
 0x196   : > { %1471 = dma.done.wait (!%p1237_p9), %s830_s18, 2048  }
 0x197   : > { %1473 = vsyncadd (!%p1237_p9), %s830_s18, 4294965248  ;;  %s20_s17 = sadd.s32 1, %s1496_s17   ;;  %s1884_s12 = smov %s1480_s13 }
 0x198   : > { %p17_p11 = scmp.ge.s32.totalorder %s20_s17, 4   ;;  %s1885_s13 = smov %s1484_s14 }
 0x199   : > { %s1886_s14 = smov %s1672_s6  ;;  %s1887_s15 = smov %s1492_s16 }
 0x19a   : > { %s1888_s16 = smov %s1890_s25  ;;  %19 = sbr.rel (!%p17_p11) target bundleno = 7 (0x7), region = 87 }
 0x1a1   :  { %835 = vsyncpa [#allocation3], 1 }
 0x1a2   :  { %837 = vsyncpa [#allocation3 + $0x1], 1 }
 0x1a3   :  { %838 = vsyncpa [#allocation6], 1 }
 0x1a4   :  { %839 = vsyncpa [#allocation4], 1 }
 0x1a5   :  { %841 = vsyncpa [#allocation4 + $0x1], 1 }

// kernel: _lambda_.6
= control target key start
LH: loop header
LB: loop body
LE: loop exit
PB: predicated region body
PF: predicated region fallthrough
CT: control target
= control target key end

     0   :  { %8 = vsyncpa [#allocation3], 0  ;;  %s1200_s0 = inlined_call_operand.hbm [shape: bf16[128,128], index: 0, kind: input, shape index: {}]   ;;  %s1201_s1 = inlined_call_operand.hbm [shape: bf16[128,128], index: 1, kind: input, shape index: {}]   ;;  %s1202_s2 = inlined_call_operand.hbm [shape: f32[1,128], index: 2, kind: input, shape index: {}]   ;;  %s1203_s3 = inlined_call_operand.hbm [shape: f32[128,128], index: 3, kind: output, shape index: {}]  }
   0x1   :  { %10 = vsyncpa [#allocation3 + $0x1], 0 }
   0x2   :  { %11 = vsyncpa [#allocation6], 0 }
   0x3   :  { %12 = vsyncpa [#allocation4], 0 }
   0x4   :  { %14 = vsyncpa [#allocation4 + $0x1], 0  ;;  %s931_s12 = smov 0   ;;  %s933_s13 = smov 0  }
   0x5   :  { %s935_s14 = smov 0   ;;  %s937_s15 = smov 0  }
   0x6   :  { %s939_s16 = smov 0   ;;  %s941_s17 = smov 0  }
   0x7 LB: > { %s544_s18 = sadd.s32 4294967295, %s901_s17   ;;  %s545_s19 = sadd.s32 4294967294, %s901_s17   ;;  %s901_s17 = sphi %s941_s17, %s20_s17   ;;  %s897_s16 = sphi %s939_s16, %s1225_s16   ;;  %s893_s15 = sphi %s937_s15, %s1224_s15   ;;  %s889_s14 = sphi %s935_s14, %s1223_s14   ;;  %s885_s13 = sphi %s933_s13, %s1222_s13   ;;  %s881_s12 = sphi %s931_s12, %s1221_s12  }
   0x8   : > { %p52_p0 = scmp.ne.s32.totalorder %s885_s13, %s881_s12  ;;  %p965_p1 = scmp.eq.s32.totalorder %s544_s18, 0 }
   0x9   : > { %p969_p2 = scmp.eq.s32.totalorder %s544_s18, 1  ;;  %p136_p3 = scmp.eq.s32.totalorder %s545_s19, 1 }
   0xa   : > { %s1208_s20 = scalar_select %p965_p1, 1, 0 }
   0xb   : > { %p975_p4 = por %p965_p1, %p52_p0  ;;  %p546_p5 = scmp.ge.s32.totalorder %s901_s17, 1 }
   0xc   : > { %p980_p6 = por %p136_p3, %p52_p0  ;;  %p143_p7 = scmp.lt.s32.totalorder %s901_s17, 3 }
   0xd   : > { %s1210_s22 = scalar_select %p975_p4, 1, 0 }
   0xe   : > { %s1211_s23 = scalar_select %p980_p6, 1, 0 }
   0xf   : > { %p985_p8 = pnand %p546_p5, %p143_p7  ;;  %s903_s25 = smov [#allocation5]  }
  0x10   : > { %s157_s26 = sshll.u32 %s903_s25, 4  ;;  %s904_s28 = smov [#allocation7]   ;;  %s989_s26 = int_to_ptr.vmem [resolvable:$true] %s157_s26 }
  0x11   : > { %p642_p9 = pneg %p985_p8  ;;  %s173_s29 = sshll.u32 %s904_s28, 4  ;;  %s1000_s29 = int_to_ptr.vmem [resolvable:$true] %s173_s29 }
  0x12   : > { %s729_s5 = scalar_lea.hbm %s1201_s1, 1024 }
  0x13   : > { %p996_p11 = pnand %p642_p9, %p965_p1  ;;  %p730_p12 = scmp.ne.s32.totalorder %s1201_s1, %s729_s5 }
  0x14   : > { %p736_p5 = scmp.lt.u32.totalorder %s729_s5, %s1201_s1 }
  0x15   : > { %p731_p13 = pneg %p996_p11 }
  0x17   : > { %p732_p0 = pnand %p731_p13, %p730_p12 }
  0x19   : > { %p733_p3 = pneg %p732_p0 }
  0x1b   : > { %p738_p7 = pnand %p736_p5, %p733_p3 }
  0x1d   : > { %741 = shalt.err (!%p738_p7)
}
  0x1e   : > { %s742_s10 = scalar_lea.vmem %s989_s26, 1024  ;;  %p750_p1 = scmp.lt.s32.totalorder %s989_s26, %s989_s26 }
  0x1f   : > { %p743_p9 = scmp.ne.s32.totalorder %s989_s26, %s742_s10  ;;  %p751_p12 = scmp.lt.s32.totalorder %s742_s10, %s742_s10 }
  0x21   : > { %p745_p10 = pnand %p743_p9, %p731_p13  ;;  %p752_p0 = por %p751_p12, %p750_p1 }
  0x23   : > { %p746_p6 = pneg %p745_p10 }
  0x25   : > { %p753_p4 = pnand %p752_p0, %p746_p6 }
  0x27   : > { %756 = shalt.err (!%p753_p4)
}
  0x28   : > { %s905_s11 = smov 64   ;;  %s906_s18 = smov 4  }
  0x29   : > { %645 = dma.hbm_to_vmem [thread:$0]  (!%p996_p11), %s1201_s1, 1024, %s989_s26, [#allocation6], %s905_s11, %s905_s11, %s906_s18  }
  0x2a   : > { %s757_s4 = scalar_lea.hbm %s1202_s2, 16 }
  0x2b   : > { %p758_p1 = scmp.ne.s32.totalorder %s1202_s2, %s757_s4  ;;  %p764_p10 = scmp.lt.u32.totalorder %s757_s4, %s1202_s2 }
  0x2d   : > { %p760_p4 = pnand %p758_p1, %p731_p13 }
  0x2f   : > { %p761_p6 = pneg %p760_p4 }
  0x31   : > { %p766_p3 = pnand %p764_p10, %p761_p6 }
  0x33   : > { %769 = shalt.err (!%p766_p3)
}
  0x34   : > { %s770_s26 = scalar_lea.vmem %s1000_s29, 16  ;;  %s777_s9 = scalar_lea.vmem %s1000_s29, 32 }
  0x35   : > { %p771_p5 = scmp.ne.s32.totalorder %s1000_s29, %s770_s26  ;;  %p778_p12 = scmp.lt.s32.totalorder %s1000_s29, %s1000_s29 }
  0x36   : > { %p779_p0 = scmp.lt.s32.totalorder %s777_s9, %s770_s26 }
  0x37   : > { %p773_p7 = pnand %p771_p5, %p731_p13 }
  0x38   : > { %p780_p1 = por %p779_p0, %p778_p12 }
  0x39   : > { %p774_p9 = pneg %p773_p7 }
  0x3b   : > { %p781_p4 = pnand %p780_p1, %p774_p9 }
  0x3d   : > { %784 = shalt.err (!%p781_p4)
}
  0x3e   : > { %648 = dma.hbm_to_vmem [thread:$0]  (!%p996_p11), %s1202_s2, 16, %s1000_s29, [#allocation6]  }
  0x3f   : > { %s32_s25 = sadd.s32 1, %s897_s16  ;;  %s39_s28 = sadd.s32 1, %s889_s14 }
  0x40   : > { %p34_p13 = scmp.ge.s32.totalorder %s32_s25, 2  ;;  %p46_p6 = scmp.ne.s32.totalorder %s889_s14, %s885_s13 }
  0x41   : > { %p47_p10 = scmp.eq.s32.totalorder %s901_s17, 0  ;;  %p659_p3 = scmp.lt.s32.totalorder %s901_s17, 2 }
  0x42   : > { %s1227_s25 = smov (%p34_p13, %s32_s25), 0  ;;  %p1068_p7 = por %p969_p2, %p46_p6 }
  0x43   : > { %p48_p5 = por %p47_p10, %p46_p6  ;;  %s36_s30 = ssub.s32 %s897_s16, %s1227_s25 }
  0x44   : > { %s1214_s27 = scalar_select %p1068_p7, 1, 0 }
  0x45   : > { %s184_s4 = sand.u32 1, %s889_s14   ;;  %p37_p9 = scmp.eq.s32.totalorder %s36_s30, 0 }
  0x46   : > { %s550_s29 = sshll.u32 %s184_s4, 5  ;;  %s576_s5 = sshll.u32 %s897_s16, 9 }
  0x47   : > { %s1077_s6 = scalar_select %p37_p9, %s889_s14, %s39_s28  }
  0x48   : > { %s1082_s26 = scalar_lea.hbm %s1200_s0, %s576_s5  ;;  %s188_s21 = scalar_lea.vmem [#allocation2], %s550_s29 }
  0x49   : > { %s195_s9 = sshll.u32 %s188_s21, 4  ;;  %p1086_p2 = pnand %p659_p3, %p48_p5  ;;  %s1090_s9 = int_to_ptr.vmem [resolvable:$true] %s195_s9 }
  0x4a   : > { %s1092_s19 = scalar_lea.sflag [#allocation3], %s184_s4  ;;  %s785_s28 = scalar_lea.hbm %s1082_s26, 512 }
  0x4b   : > { %p786_p11 = scmp.ne.s32.totalorder %s1082_s26, %s785_s28  ;;  %p787_p12 = pneg %p1086_p2 }
  0x4c   : > { %s790_s5 = scalar_lea.hbm %s1200_s0, 1024  ;;  %p791_p4 = scmp.lt.u32.totalorder %s1082_s26, %s1200_s0 }
  0x4d   : > { %p788_p0 = pnand %p787_p12, %p786_p11  ;;  %p792_p13 = scmp.lt.u32.totalorder %s790_s5, %s785_s28 }
  0x4e   : > { %p794_p10 = scmp.lt.u32.totalorder %s785_s28, %s1082_s26 }
  0x4f   : > { %p789_p1 = pneg %p788_p0  ;;  %p793_p6 = por %p792_p13, %p791_p4 }
  0x51   : > { %p795_p3 = por %p794_p10, %p793_p6 }
  0x53   : > { %p796_p5 = pnand %p795_p3, %p789_p1 }
  0x55   : > { %799 = shalt.err (!%p796_p5)
}
  0x56   : > { %s800_s4 = scalar_lea.vmem %s1090_s9, 512  ;;  %s907_s21 = smov [#allocation2]  }
  0x57   : > { %p801_p9 = scmp.ne.s32.totalorder %s1090_s9, %s800_s4  ;;  %s805_s30 = sshll.u32 %s907_s21, 4  ;;  %s806_s30 = int_to_ptr.vmem [resolvable:$false] %s805_s30 }
  0x58   : > { %s807_s29 = scalar_lea.vmem %s806_s30, 1024  ;;  %p808_p7 = scmp.lt.s32.totalorder %s1090_s9, %s806_s30 }
  0x59   : > { %p803_p11 = pnand %p801_p9, %p787_p12  ;;  %p809_p4 = scmp.lt.s32.totalorder %s807_s29, %s800_s4 }
  0x5b   : > { %p804_p0 = pneg %p803_p11  ;;  %p810_p13 = por %p809_p4, %p808_p7 }
  0x5d   : > { %p811_p6 = pnand %p810_p13, %p804_p0 }
  0x5f   : > { %814 = shalt.err (!%p811_p6)
}
  0x60   : > { %652 = dma.hbm_to_vmem [thread:$0]  (!%p1086_p2), %s1082_s26, 512, %s1090_s9, %s1092_s19, %s905_s11, %s905_s11, %s906_s18  }
  0x61   : > { %207 = sbr.rel (%p985_p8) target bundleno = 373 (0x175), region = 32  ;;  %s1126_s28 = sand.u32 (!%p985_p8), 1, %s885_s13  }
  0x62   : > { %s554_s5 = sshll.u32 (!%p985_p8), %s1126_s28, 5  ;;  %s210_s7 = scalar_lea.sflag (!%p985_p8), [#allocation3], %s1126_s28 }
  0x63   : > { %s1130_s8 = scalar_lea.vmem (!%p985_p8), [#allocation2], %s554_s5  ;;  %p1216_p7 = scmp.ne.s32.totalorder (!%p985_p8), %s1210_s22, 0 }
  0x68   : > { %868 = dma.done.wait (%p1216_p7), %s210_s7, 512  }
  0x69   : > { %870 = vsyncadd (%p1216_p7), %s210_s7, 4294966784  ;;  %p1217_p2 = scmp.ne.s32.totalorder %s1208_s20, 0 }
  0x6b   : > { %872 = dma.done.wait (%p1217_p2), [#allocation6], 1040  }
  0x6c   : > { %874 = vsyncadd (%p1217_p2), [#allocation6], 4294966256  ;;  %v717_v0 = vld [vmem:[#allocation5] sm:$0xff]   ;;  %v718_v1 = vld [vmem:[#allocation5 + $0x8] sm:$0xff]   ;;  %s557_s20 = sshll.u32 %s1126_s28, 6  ;;  %s577_s11 = sshll.u32 %s893_s15, 10 }
  0x6d   : > { %590 = vmatprep.subr.bf16.mxu0 %v717_v0  ;;  %614 = vmatprep.subr.bf16.mxu1 %v717_v0  ;;  %v719_v2 = vld [vmem:[#allocation5 + $0x10] sm:$0xff]   ;;  %v720_v3 = vld [vmem:[#allocation5 + $0x18] sm:$0xff]   ;;  %v725_v4 = vld [vmem:[%s1130_s8] sm:$0xff]   ;;  %s243_s22 = scalar_lea.vmem [#allocation8], %s557_s20  ;;  %s1151_s26 = scalar_lea.hbm %s1203_s3, %s577_s11 }
  0x6e   : > { %591 = vmatpush3.bf16.msra.mxu0 %v717_v0  ;;  %622 = vmatpush3.bf16.msra.mxu1 %v717_v0  ;;  %v726_v5 = vld [vmem:[%s1130_s8 + $0x10] sm:$0xff]   ;;  %v721_v6 = vld [vmem:[#allocation5 + $0x20] sm:$0xff]   ;;  %v722_v7 = vld [vmem:[#allocation5 + $0x28] sm:$0xff]   ;;  %s438_s24 = sshll.u32 %s243_s22, 4  ;;  %s424_s9 = scalar_lea.sflag [#allocation4], %s1126_s28  ;;  %s1146_s24 = int_to_ptr.vmem [resolvable:$true] %s438_s24 }
  0x6f   : > { %592 = vmatprep.subr.bf16.mxu0 %v718_v1  ;;  %615 = vmatprep.subr.bf16.mxu1 %v718_v1  ;;  %v723_v8 = vld [vmem:[#allocation5 + $0x30] sm:$0xff]   ;;  %v724_v9 = vld [vmem:[#allocation5 + $0x38] sm:$0xff]   ;;  %v727_v10 = vld [vmem:[%s1130_s8 + $0x8] sm:$0xff]   ;;  %s815_s10 = scalar_lea.vmem %s1146_s24, 1024  ;;  %p1218_p12 = scmp.ne.s32.totalorder %s1214_s27, 0 }
  0x70   : > { %606 = vmatprep.mubr.bf16.mxu0 %v725_v4  ;;  %610 = vmatprep.mubr.bf16.mxu1 %v726_v5  ;;  %v728_v11 = vld [vmem:[%s1130_s8 + $0x18] sm:$0xff]   ;;  %v558_v12 = vld [vmem:[#allocation7] ss:$0 sm:$0xff]  ;;  %p816_p8 = scmp.ne.s32.totalorder %s1146_s24, %s815_s10  ;;  %s908_s19 = smov [#allocation8]  }
  0x71   : > { %s819_s4 = sshll.u32 %s908_s19, 4  ;;  %s820_s4 = int_to_ptr.vmem [resolvable:$false] %s819_s4 }
  0x72   : > { %593 = vmatpush3.bf16.msra.mxu0 %v718_v1  ;;  %623 = vmatpush3.bf16.msra.mxu1 %v718_v1  ;;  %p817_p1 = pnand %p816_p8, %p1218_p12  ;;  %s821_s21 = scalar_lea.vmem %s820_s4, 2048 }
  0x73   : > { %594 = vmatprep.subr.bf16.mxu0 %v719_v2  ;;  %616 = vmatprep.subr.bf16.mxu1 %v719_v2  ;;  %p822_p3 = scmp.lt.s32.totalorder %s1146_s24, %s820_s4  ;;  %p823_p5 = scmp.lt.s32.totalorder %s821_s21, %s815_s10 }
  0x74   : > { %p818_p10 = pneg %p817_p1 }
  0x75   : > { %p824_p9 = por %p823_p5, %p822_p3 }
  0x76   : > { %595 = vmatpush3.bf16.msra.mxu0 %v719_v2  ;;  %624 = vmatpush3.bf16.msra.mxu1 %v719_v2 }
  0x77   : > { %596 = vmatprep.subr.bf16.mxu0 %v720_v3  ;;  %617 = vmatprep.subr.bf16.mxu1 %v720_v3  ;;  %p825_p11 = pnand %p824_p9, %p818_p10 }
  0x7a   : > { %597 = vmatpush3.bf16.msra.mxu0 %v720_v3  ;;  %625 = vmatpush3.bf16.msra.mxu1 %v720_v3 }
  0x7b   : > { %598 = vmatprep.subr.bf16.mxu0 %v721_v6  ;;  %618 = vmatprep.subr.bf16.mxu1 %v721_v6 }
  0x7e   : > { %599 = vmatpush3.bf16.msra.mxu0 %v721_v6  ;;  %626 = vmatpush3.bf16.msra.mxu1 %v721_v6 }
  0x7f   : > { %600 = vmatprep.subr.bf16.mxu0 %v722_v7  ;;  %619 = vmatprep.subr.bf16.mxu1 %v722_v7 }
  0x82   : > { %601 = vmatpush3.bf16.msra.mxu0 %v722_v7  ;;  %627 = vmatpush3.bf16.msra.mxu1 %v722_v7 }
  0x83   : > { %602 = vmatprep.subr.bf16.mxu0 %v723_v8  ;;  %620 = vmatprep.subr.bf16.mxu1 %v723_v8 }
  0x86   : > { %603 = vmatpush3.bf16.msra.mxu0 %v723_v8  ;;  %628 = vmatpush3.bf16.msra.mxu1 %v723_v8 }
  0x87   : > { %604 = vmatprep.subr.bf16.mxu0 %v724_v9  ;;  %621 = vmatprep.subr.bf16.mxu1 %v724_v9 }
  0x8a   : > { %605 = vmatpush3.bf16.msra.mxu0 %v724_v9  ;;  %629 = vmatpush3.bf16.msra.mxu1 %v724_v9 }
  0x8d   : > { %607 = vmatmul.mubr.bf16.vlgmr.msra.gmra.mrb[0].mxu0 %v727_v10  ;;  %611 = vmatmul.mubr.bf16.vlgmr.msra.gmra.mrb[0].mxu1 %v728_v11 }
 0x160   : > { %v608_v13 = vpop.f32.mrb[0].mxu0  ;;  %v612_v14 = vpop.f32.mrb[0].mxu1 }
 0x161   : > { %v393_v15 = vadd.f32 %v608_v13, %v558_v12  ;;  %v409_v16 = vadd.f32 %v612_v14, %v558_v12  ;;  %v384_v17 = vpop.f32.mrb[1].mxu0  ;;  %v400_v18 = vpop.f32.mrb[1].mxu1 }
 0x162   : > { %v385_v19 = vadd.f32 %v558_v12, %v384_v17  ;;  %v401_v20 = vadd.f32 %v558_v12, %v400_v18  ;;  %v609_v21 = vpop.f32.mrb[2].mxu0  ;;  %v613_v22 = vpop.f32.mrb[2].mxu1 }
 0x163   : > { %417 = vst [vmem:[%s243_s22 + $0x10] sm:$0xff] %v393_v15  ;;  %421 = vst [vmem:[%s243_s22 + $0x30] sm:$0xff] %v409_v16  ;;  %v396_v23 = vadd.f32 %v609_v21, %v558_v12  ;;  %v412_v24 = vadd.f32 %v613_v22, %v558_v12  ;;  %v387_v25 = vpop.f32.mrb[3].mxu0  ;;  %v403_v26 = vpop.f32.mrb[3].mxu1 }
 0x164   : > { %415 = vst [vmem:[%s243_s22] sm:$0xff] %v385_v19  ;;  %419 = vst [vmem:[%s243_s22 + $0x20] sm:$0xff] %v401_v20  ;;  %v388_v27 = vadd.f32 %v558_v12, %v387_v25  ;;  %v404_v28 = vadd.f32 %v558_v12, %v403_v26 }
 0x165   : > { %418 = vst [vmem:[%s243_s22 + $0x18] sm:$0xff] %v396_v23  ;;  %422 = vst [vmem:[%s243_s22 + $0x38] sm:$0xff] %v412_v24 }
 0x166   : > { %416 = vst [vmem:[%s243_s22 + $0x8] sm:$0xff] %v388_v27  ;;  %420 = vst [vmem:[%s243_s22 + $0x28] sm:$0xff] %v404_v28 }
 0x167   : > { %828 = shalt.err (!%p825_p11)
}
 0x168   : > { %s829_s30 = scalar_lea.hbm %s1151_s26, 1024  ;;  %s833_s7 = scalar_lea.hbm %s1203_s3, 2048 }
 0x169   : > { %p830_p0 = scmp.ne.s32.totalorder %s1151_s26, %s829_s30  ;;  %p834_p6 = scmp.lt.u32.totalorder %s1151_s26, %s1203_s3 }
 0x16a   : > { %p835_p7 = scmp.lt.u32.totalorder %s833_s7, %s829_s30  ;;  %p837_p8 = scmp.lt.u32.totalorder %s829_s30, %s1151_s26 }
 0x16b   : > { %p831_p4 = pnand %p830_p0, %p1218_p12 }
 0x16c   : > { %p836_p2 = por %p835_p7, %p834_p6 }
 0x16d   : > { %p832_p13 = pneg %p831_p4 }
 0x16e   : > { %p838_p1 = por %p837_p8, %p836_p2 }
 0x170   : > { %p839_p10 = pnand %p838_p1, %p832_p13 }
 0x172   : > { %842 = shalt.err (!%p839_p10)
}
 0x173   : > { %s909_s22 = smov 128   ;;  %s910_s11 = smov 8  }
 0x174   : > { %640 = dma.vmem_to_hbm [thread:$0]  (%p1218_p12), %s1146_s24, 1024, %s1151_s26, %s424_s9, %s909_s22, %s909_s22, %s910_s11  }
 0x175 PF: > { %s453_s15 = sand.u32 1, %s881_s12   ;;  %p1219_p3 = scmp.ne.s32.totalorder %s1211_s23, 0 }
 0x176   : > { %p1220_p5 = scmp.ge.s32.totalorder %s901_s17, 2  ;;  %s454_s18 = scalar_lea.sflag [#allocation4], %s453_s15 }
 0x178   : > { %p654_p9 = pnand %p1220_p5, %p1219_p3 }
 0x17a   : > { %876 = dma.done.wait (!%p654_p9), %s454_s18, 1024  }
 0x17b   : > { %878 = vsyncadd (!%p654_p9), %s454_s18, 4294966272  ;;  %s20_s17 = sadd.s32 1, %s901_s17   ;;  %s1221_s12 = smov %s885_s13 }
 0x17c   : > { %p17_p11 = scmp.ge.s32.totalorder %s20_s17, 4   ;;  %s1222_s13 = smov %s889_s14 }
 0x17d   : > { %s1223_s14 = smov %s1077_s6  ;;  %s1224_s15 = smov %s897_s16 }
 0x17e   : > { %s1225_s16 = smov %s1227_s25  ;;  %19 = sbr.rel (!%p17_p11) target bundleno = 7 (0x7), region = 87 }
 0x185   :  { %459 = vsyncpa [#allocation3], 1 }
 0x186   :  { %461 = vsyncpa [#allocation3 + $0x1], 1 }
 0x187   :  { %462 = vsyncpa [#allocation6], 1 }
 0x188   :  { %463 = vsyncpa [#allocation4], 1 }
 0x189   :  { %465 = vsyncpa [#allocation4 + $0x1], 1 }

// kernel: _lambda_.7
= control target key start
LH: loop header
LB: loop body
LE: loop exit
PB: predicated region body
PF: predicated region fallthrough
CT: control target
= control target key end

     0   :  { %s1446_s0 = inlined_call_operand.hbm [shape: bf16[128,128], index: 0, kind: input, shape index: {}]   ;;  %s1447_s1 = inlined_call_operand.hbm [shape: bf16[128,128], index: 1, kind: input, shape index: {}]   ;;  %s1448_s2 = inlined_call_operand.hbm [shape: f32[1,128], index: 2, kind: input, shape index: {}]   ;;  %s1449_s3 = inlined_call_operand.hbm [shape: f32[128,128], index: 3, kind: input, shape index: {}]   ;;  %s1450_s4 = inlined_call_operand.hbm [shape: f32[128,128], index: 4, kind: output, shape index: {}]  }
   0x1   :  { %1456 = sst [smem:[#allocation15_spill]] %s1446_s0 }
   0x2   :  { %1457 = sst [smem:[#allocation16_spill]] %s1447_s1 }
   0x3   :  { %1458 = sst [smem:[#allocation17_spill]] %s1448_s2 }
   0x4   :  { %9 = vsyncpa [#allocation3], 0 }
   0x5   :  { %11 = vsyncpa [#allocation3 + $0x1], 0 }
   0x6   :  { %12 = vsyncpa [#allocation6], 0 }
   0x7   :  { %13 = vsyncpa [#allocation9], 0 }
   0x8   :  { %15 = vsyncpa [#allocation9 + $0x1], 0 }
   0x9   :  { %16 = vsyncpa [#allocation4], 0 }
   0xa   :  { %18 = vsyncpa [#allocation4 + $0x1], 0  ;;  %s1105_s15 = smov 0   ;;  %s1107_s16 = smov 0  }
   0xb   :  { %s1109_s17 = smov 0   ;;  %s1111_s18 = smov 0  }
   0xc   :  { %s1113_s19 = smov 0   ;;  %s1115_s20 = smov 0  }
   0xd LB: > { %s664_s21 = sadd.s32 4294967295, %s1067_s20   ;;  %s665_s22 = sadd.s32 4294967294, %s1067_s20   ;;  %s1067_s20 = sphi %s1115_s20, %s24_s20   ;;  %s1063_s19 = sphi %s1113_s19, %s1483_s19   ;;  %s1059_s18 = sphi %s1111_s18, %s1482_s18   ;;  %s1055_s17 = sphi %s1109_s17, %s1481_s17   ;;  %s1051_s16 = sphi %s1107_s16, %s1480_s16   ;;  %s1047_s15 = sphi %s1105_s15, %s1479_s15  }
   0xe   : > { %p50_p0 = scmp.ne.s32.totalorder %s1055_s17, %s1051_s16  ;;  %p51_p1 = scmp.eq.s32.totalorder %s1067_s20, 0 }
   0xf   : > { %p56_p2 = scmp.ne.s32.totalorder %s1051_s16, %s1047_s15  ;;  %p1143_p3 = scmp.eq.s32.totalorder %s664_s21, 0 }
  0x10   : > { %p162_p4 = scmp.eq.s32.totalorder %s664_s21, 1  ;;  %p1147_p5 = por %p51_p1, %p50_p0 }
  0x11   : > { %s1459_s24 = scalar_select %p1143_p3, 1, 0 }
  0x12   : > { %p168_p6 = scmp.eq.s32.totalorder %s665_s22, 1  ;;  %p1153_p7 = por %p1143_p3, %p56_p2 }
  0x13   : > { %p1157_p8 = por %p162_p4, %p50_p0  ;;  %p666_p10 = scmp.ge.s32.totalorder %s1067_s20, 1 }
  0x14   : > { %s1461_s26 = scalar_select %p1153_p7, 1, 0 }
  0x15   : > { %s1462_s27 = scalar_select %p1157_p8, 1, 0 }
  0x16   : > { %p1161_p9 = por %p168_p6, %p56_p2  ;;  %p175_p11 = scmp.lt.s32.totalorder %s1067_s20, 3 }
  0x17   : > { %s1069_s30 = smov [#allocation5]   ;;  %s1070_s7 = smov [#allocation7]  }
  0x18   : > { %s1463_s28 = scalar_select %p1161_p9, 1, 0 }
  0x19   : > { %p1167_p12 = pnand %p666_p10, %p175_p11  ;;  %s189_s5 = sshll.u32 %s1069_s30, 4  ;;  %s1171_s5 = int_to_ptr.vmem [resolvable:$true] %s189_s5 }
  0x1a   : > { %s205_s8 = sshll.u32 %s1070_s7, 4  ;;  %s1466_s1 = sld [smem:[#allocation16_spill]]  ;;  %s1182_s8 = int_to_ptr.vmem [resolvable:$true] %s205_s8 }
  0x1b   : > { %p769_p13 = pneg %p1167_p12 }
  0x1d   : > { %p1178_p1 = pnand %p769_p13, %p1143_p3 }
  0x1f   : > { %p863_p4 = pneg %p1178_p1 }
  0x20   : > { %s861_s12 = scalar_lea.hbm %s1466_s1, 1024 }
  0x21   : > { %p862_p2 = scmp.ne.s32.totalorder %s1466_s1, %s861_s12  ;;  %p868_p11 = scmp.lt.u32.totalorder %s861_s12, %s1466_s1 }
  0x23   : > { %p864_p6 = pnand %p863_p4, %p862_p2 }
  0x25   : > { %p865_p10 = pneg %p864_p6 }
  0x27   : > { %p870_p13 = pnand %p868_p11, %p865_p10 }
  0x29   : > { %873 = shalt.err (!%p870_p13)
}
  0x2a   : > { %s874_s30 = scalar_lea.vmem %s1171_s5, 1024  ;;  %p882_p3 = scmp.lt.s32.totalorder %s1171_s5, %s1171_s5 }
  0x2b   : > { %p875_p0 = scmp.ne.s32.totalorder %s1171_s5, %s874_s30  ;;  %p883_p2 = scmp.lt.s32.totalorder %s874_s30, %s874_s30 }
  0x2d   : > { %p877_p9 = pnand %p875_p0, %p863_p4  ;;  %p884_p6 = por %p883_p2, %p882_p3 }
  0x2f   : > { %p878_p8 = pneg %p877_p9 }
  0x31   : > { %p885_p7 = pnand %p884_p6, %p878_p8 }
  0x33   : > { %888 = shalt.err (!%p885_p7)
}
  0x34   : > { %s1455_s7 = smov 64   ;;  %s1072_s10 = smov 4  }
  0x35   : > { %772 = dma.hbm_to_vmem [thread:$0]  (!%p1178_p1), %s1466_s1, 1024, %s1171_s5, [#allocation6], %s1455_s7, %s1455_s7, %s1072_s10  }
  0x36   : > { %s1467_s2 = sld [smem:[#allocation17_spill]] }
  0x3c   : > { %s889_s21 = scalar_lea.hbm %s1467_s2, 16 }
  0x3d   : > { %p890_p3 = scmp.ne.s32.totalorder %s1467_s2, %s889_s21  ;;  %p896_p9 = scmp.lt.u32.totalorder %s889_s21, %s1467_s2 }
  0x3f   : > { %p892_p7 = pnand %p890_p3, %p863_p4 }
  0x41   : > { %p893_p8 = pneg %p892_p7 }
  0x43   : > { %p898_p0 = pnand %p896_p9, %p893_p8 }
  0x45   : > { %901 = shalt.err (!%p898_p0)
}
  0x46   : > { %s902_s5 = scalar_lea.vmem %s1182_s8, 16  ;;  %s909_s11 = scalar_lea.vmem %s1182_s8, 32 }
  0x47   : > { %p903_p10 = scmp.ne.s32.totalorder %s1182_s8, %s902_s5  ;;  %p910_p2 = scmp.lt.s32.totalorder %s1182_s8, %s1182_s8 }
  0x48   : > { %p911_p6 = scmp.lt.s32.totalorder %s909_s11, %s902_s5 }
  0x49   : > { %p905_p11 = pnand %p903_p10, %p863_p4 }
  0x4a   : > { %p912_p3 = por %p911_p6, %p910_p2 }
  0x4b   : > { %p906_p13 = pneg %p905_p11 }
  0x4d   : > { %p913_p7 = pnand %p912_p3, %p906_p13 }
  0x4f   : > { %916 = shalt.err (!%p913_p7)
}
  0x50   : > { %775 = dma.hbm_to_vmem [thread:$0]  (!%p1178_p1), %s1467_s2, 16, %s1182_s8, [#allocation6]  }
  0x51   : > { %s1468_s12 = sadd.s32 1, %s1063_s19  ;;  %p789_p8 = scmp.lt.s32.totalorder %s1067_s20, 2 }
  0x52   : > { %p38_p4 = scmp.ge.s32.totalorder %s1468_s12, 2  ;;  %s1245_s13 = sand.u32 1, %s1055_s17  }
  0x53   : > { %s700_s6 = sshll.u32 %s1063_s19, 9  ;;  %s1469_s14 = smov %s1468_s12 }
  0x54   : > { %s1485_s14 = smov (%p38_p4, %s1469_s14), 0  ;;  %s670_s21 = sshll.u32 %s1245_s13, 5 }
  0x55   : > { %s40_s22 = ssub.s32 %s1063_s19, %s1485_s14  ;;  %s1470_s0 = sld [smem:[#allocation15_spill]] }
  0x56   : > { %p41_p9 = scmp.eq.s32.totalorder %s40_s22, 0  ;;  %s220_s8 = scalar_lea.vmem [#allocation2], %s670_s21 }
  0x57   : > { %s227_s23 = sshll.u32 %s220_s8, 4  ;;  %p1262_p1 = pnand %p789_p8, %p1147_p5  ;;  %s1271_s23 = int_to_ptr.vmem [resolvable:$true] %s227_s23 }
  0x58   : > { %s1472_s12 = sadd.s32 1, %s1055_s17 }
  0x59   : > { %s1269_s22 = scalar_select %p41_p9, %s1055_s17, %s1472_s12  }
  0x5a   : > { %p919_p10 = pneg %p1262_p1 }
  0x5b   : > { %s1258_s11 = scalar_lea.hbm %s1470_s0, %s700_s6  ;;  %s217_s6 = scalar_lea.sflag [#allocation3], %s1245_s13 }
  0x5c   : > { %s917_s30 = scalar_lea.hbm %s1258_s11, 512  ;;  %s922_s5 = scalar_lea.hbm %s1470_s0, 1024 }
  0x5d   : > { %p918_p0 = scmp.ne.s32.totalorder %s1258_s11, %s917_s30  ;;  %p923_p5 = scmp.lt.u32.totalorder %s1258_s11, %s1470_s0 }
  0x5e   : > { %p924_p2 = scmp.lt.u32.totalorder %s922_s5, %s917_s30  ;;  %p926_p3 = scmp.lt.u32.totalorder %s917_s30, %s1258_s11 }
  0x5f   : > { %p920_p11 = pnand %p919_p10, %p918_p0 }
  0x60   : > { %p925_p6 = por %p924_p2, %p923_p5 }
  0x61   : > { %p921_p13 = pneg %p920_p11 }
  0x62   : > { %p927_p7 = por %p926_p3, %p925_p6 }
  0x64   : > { %p928_p4 = pnand %p927_p7, %p921_p13 }
  0x66   : > { %931 = shalt.err (!%p928_p4)
}
  0x67   : > { %s932_s12 = scalar_lea.vmem %s1271_s23, 512  ;;  %s1073_s25 = smov [#allocation2]  }
  0x68   : > { %p933_p8 = scmp.ne.s32.totalorder %s1271_s23, %s932_s12  ;;  %s937_s21 = sshll.u32 %s1073_s25, 4  ;;  %s938_s21 = int_to_ptr.vmem [resolvable:$false] %s937_s21 }
  0x69   : > { %s939_s7 = scalar_lea.vmem %s938_s21, 1024  ;;  %p940_p11 = scmp.lt.s32.totalorder %s1271_s23, %s938_s21 }
  0x6a   : > { %p935_p9 = pnand %p933_p8, %p919_p10  ;;  %p941_p5 = scmp.lt.s32.totalorder %s939_s7, %s932_s12 }
  0x6c   : > { %p936_p0 = pneg %p935_p9  ;;  %p942_p2 = por %p941_p5, %p940_p11 }
  0x6e   : > { %p943_p6 = pnand %p942_p2, %p936_p0 }
  0x70   : > { %946 = shalt.err (!%p943_p6)
}
  0x71   : > { %s1473_s30 = smov 64   ;;  %s673_s5 = sshll.u32 %s1245_s13, 6 }
  0x72   : > { %779 = dma.hbm_to_vmem [thread:$0]  (!%p1262_p1), %s1258_s11, 512, %s1271_s23, %s217_s6, %s1473_s30, %s1473_s30, %s1072_s10  }
  0x73   : > { %s701_s8 = sshll.u32 %s1063_s19, 10  ;;  %s241_s7 = scalar_lea.vmem [#allocation8], %s673_s5 }
  0x74   : > { %s1309_s21 = scalar_lea.hbm %s1449_s3, %s701_s8  ;;  %s249_s0 = sshll.u32 %s241_s7, 4  ;;  %s1311_s0 = int_to_ptr.vmem [resolvable:$true] %s249_s0 }
  0x75   : > { %s238_s1 = scalar_lea.sflag [#allocation9], %s1245_s13  ;;  %s947_s2 = scalar_lea.hbm %s1309_s21, 1024 }
  0x76   : > { %p948_p13 = scmp.ne.s32.totalorder %s1309_s21, %s947_s2  ;;  %s952_s23 = scalar_lea.hbm %s1449_s3, 2048 }
  0x77   : > { %p953_p4 = scmp.lt.u32.totalorder %s1309_s21, %s1449_s3  ;;  %p954_p8 = scmp.lt.u32.totalorder %s952_s23, %s947_s2 }
  0x78   : > { %p950_p3 = pnand %p948_p13, %p919_p10  ;;  %p956_p0 = scmp.lt.u32.totalorder %s947_s2, %s1309_s21 }
  0x79   : > { %p955_p9 = por %p954_p8, %p953_p4 }
  0x7a   : > { %p951_p7 = pneg %p950_p3 }
  0x7b   : > { %p957_p11 = por %p956_p0, %p955_p9 }
  0x7d   : > { %p958_p5 = pnand %p957_p11, %p951_p7 }
  0x7f   : > { %961 = shalt.err (!%p958_p5)
}
  0x80   : > { %s962_s5 = scalar_lea.vmem %s1311_s0, 1024  ;;  %s1074_s8 = smov [#allocation8]  }
  0x81   : > { %p963_p2 = scmp.ne.s32.totalorder %s1311_s0, %s962_s5  ;;  %s967_s12 = sshll.u32 %s1074_s8, 4  ;;  %s968_s12 = int_to_ptr.vmem [resolvable:$false] %s967_s12 }
  0x82   : > { %s969_s25 = scalar_lea.vmem %s968_s12, 2048  ;;  %p970_p3 = scmp.lt.s32.totalorder %s1311_s0, %s968_s12 }
  0x83   : > { %p965_p6 = pnand %p963_p2, %p919_p10  ;;  %p971_p4 = scmp.lt.s32.totalorder %s969_s25, %s962_s5 }
  0x85   : > { %p966_p13 = pneg %p965_p6  ;;  %p972_p8 = por %p971_p4, %p970_p3 }
  0x87   : > { %p973_p9 = pnand %p972_p8, %p966_p13 }
  0x89   : > { %976 = shalt.err (!%p973_p9)
}
  0x8a   : > { %s1075_s2 = smov 128   ;;  %s1076_s7 = smov 8  }
  0x8b   : > { %782 = dma.hbm_to_vmem [thread:$0]  (!%p1262_p1), %s1309_s21, 1024, %s1311_s0, %s238_s1, %s1075_s2, %s1075_s2, %s1076_s7  }
  0x8c   : > { %261 = sbr.rel (%p1167_p12) target bundleno = 423 (0x1a7), region = 36  ;;  %s1342_s10 = sand.u32 (!%p1167_p12), 1, %s1051_s16  }
  0x8d   : > { %s677_s11 = sshll.u32 (!%p1167_p12), %s1342_s10, 5  ;;  %s264_s23 = scalar_lea.sflag (!%p1167_p12), [#allocation3], %s1342_s10 }
  0x8e   : > { %s1346_s6 = scalar_lea.vmem (!%p1167_p12), [#allocation2], %s677_s11  ;;  %p1474_p10 = scmp.ne.s32.totalorder (!%p1167_p12), %s1461_s26, 0 }
  0x93   : > { %1030 = dma.done.wait (%p1474_p10), %s264_s23, 512  }
  0x94   : > { %1032 = vsyncadd (%p1474_p10), %s264_s23, 4294966784  ;;  %p1475_p1 = scmp.ne.s32.totalorder %s1459_s24, 0 }
  0x96   : > { %1034 = dma.done.wait (%p1475_p1), [#allocation6], 1040  }
  0x97   : > { %1036 = vsyncadd (%p1475_p1), [#allocation6], 4294966256  ;;  %s680_s0 = sshll.u32 %s1342_s10, 6  ;;  %s281_s1 = scalar_lea.sflag [#allocation9], %s1342_s10 }
  0x98   : > { %s1360_s29 = scalar_lea.vmem [#allocation8], %s680_s0 }
  0x99   : > { %1038 = dma.done.wait (%p1474_p10), %s281_s1, 1024  }
  0x9a   : > { %1040 = vsyncadd (%p1474_p10), %s281_s1, 4294966272  ;;  %v849_v0 = vld [vmem:[#allocation5] sm:$0xff]   ;;  %v850_v1 = vld [vmem:[#allocation5 + $0x8] sm:$0xff]   ;;  %s1378_s24 = scalar_lea.vmem [#allocation10], %s680_s0  ;;  %s702_s13 = sshll.u32 %s1059_s18, 10 }
  0x9b   : > { %715 = vmatprep.subr.bf16.mxu0 %v849_v0  ;;  %739 = vmatprep.subr.bf16.mxu1 %v849_v0  ;;  %v851_v2 = vld [vmem:[#allocation5 + $0x10] sm:$0xff]   ;;  %v852_v3 = vld [vmem:[#allocation5 + $0x18] sm:$0xff]   ;;  %v857_v4 = vld [vmem:[%s1346_s6] sm:$0xff]   ;;  %s533_s26 = sshll.u32 %s1378_s24, 4  ;;  %s1391_s21 = scalar_lea.hbm %s1450_s4, %s702_s13  ;;  %s1384_s26 = int_to_ptr.vmem [resolvable:$true] %s533_s26 }
  0x9c   : > { %716 = vmatpush3.bf16.msra.mxu0 %v849_v0  ;;  %747 = vmatpush3.bf16.msra.mxu1 %v849_v0  ;;  %v858_v5 = vld [vmem:[%s1346_s6 + $0x10] sm:$0xff]   ;;  %v853_v6 = vld [vmem:[#allocation5 + $0x20] sm:$0xff]   ;;  %v854_v7 = vld [vmem:[#allocation5 + $0x28] sm:$0xff]   ;;  %s519_s30 = scalar_lea.sflag [#allocation4], %s1342_s10  ;;  %s977_s5 = scalar_lea.vmem %s1384_s26, 1024 }
  0x9d   : > { %717 = vmatprep.subr.bf16.mxu0 %v850_v1  ;;  %740 = vmatprep.subr.bf16.mxu1 %v850_v1  ;;  %v855_v8 = vld [vmem:[#allocation5 + $0x30] sm:$0xff]   ;;  %v856_v9 = vld [vmem:[#allocation5 + $0x38] sm:$0xff]   ;;  %v859_v10 = vld [vmem:[%s1346_s6 + $0x8] sm:$0xff]   ;;  %p978_p12 = scmp.ne.s32.totalorder %s1384_s26, %s977_s5  ;;  %p1476_p7 = scmp.ne.s32.totalorder %s1462_s27, 0 }
  0x9e   : > { %731 = vmatprep.mubr.bf16.mxu0 %v857_v4  ;;  %735 = vmatprep.mubr.bf16.mxu1 %v858_v5  ;;  %v860_v11 = vld [vmem:[%s1346_s6 + $0x18] sm:$0xff]   ;;  %v682_v12 = vld [vmem:[#allocation7] ss:$0 sm:$0xff]  ;;  %v486_v20 = vld [vmem:[%s1360_s29] sm:$0xff]  ;;  %s1077_s8 = smov [#allocation10]  }
  0x9f   : > { %v488_v14 = vld [vmem:[%s1360_s29 + $0x10] sm:$0xff]  ;;  %v490_v22 = vld [vmem:[%s1360_s29 + $0x20] sm:$0xff]  ;;  %v489_v26 = vld [vmem:[%s1360_s29 + $0x18] sm:$0xff]  ;;  %p979_p0 = pnand %p978_p12, %p1476_p7  ;;  %s981_s12 = sshll.u32 %s1077_s8, 4  ;;  %s982_s12 = int_to_ptr.vmem [resolvable:$false] %s981_s12 }
  0xa0   : > { %718 = vmatpush3.bf16.msra.mxu0 %v850_v1  ;;  %748 = vmatpush3.bf16.msra.mxu1 %v850_v1  ;;  %v492_v16 = vld [vmem:[%s1360_s29 + $0x30] sm:$0xff]  ;;  %v493_v28 = vld [vmem:[%s1360_s29 + $0x38] sm:$0xff]  ;;  %v487_v34 = vld [vmem:[%s1360_s29 + $0x8] sm:$0xff]  ;;  %s983_s25 = scalar_lea.vmem %s982_s12, 2048  ;;  %p984_p5 = scmp.lt.s32.totalorder %s1384_s26, %s982_s12 }
  0xa1   : > { %719 = vmatprep.subr.bf16.mxu0 %v851_v2  ;;  %741 = vmatprep.subr.bf16.mxu1 %v851_v2  ;;  %v491_v36 = vld [vmem:[%s1360_s29 + $0x28] sm:$0xff]  ;;  %p980_p11 = pneg %p979_p0  ;;  %p985_p2 = scmp.lt.s32.totalorder %s983_s25, %s977_s5 }
  0xa3   : > { %p986_p6 = por %p985_p2, %p984_p5 }
  0xa4   : > { %720 = vmatpush3.bf16.msra.mxu0 %v851_v2  ;;  %749 = vmatpush3.bf16.msra.mxu1 %v851_v2 }
  0xa5   : > { %721 = vmatprep.subr.bf16.mxu0 %v852_v3  ;;  %742 = vmatprep.subr.bf16.mxu1 %v852_v3  ;;  %p987_p13 = pnand %p986_p6, %p980_p11 }
  0xa8   : > { %722 = vmatpush3.bf16.msra.mxu0 %v852_v3  ;;  %750 = vmatpush3.bf16.msra.mxu1 %v852_v3 }
  0xa9   : > { %723 = vmatprep.subr.bf16.mxu0 %v853_v6  ;;  %743 = vmatprep.subr.bf16.mxu1 %v853_v6 }
  0xac   : > { %724 = vmatpush3.bf16.msra.mxu0 %v853_v6  ;;  %751 = vmatpush3.bf16.msra.mxu1 %v853_v6 }
  0xad   : > { %725 = vmatprep.subr.bf16.mxu0 %v854_v7  ;;  %744 = vmatprep.subr.bf16.mxu1 %v854_v7 }
  0xb0   : > { %726 = vmatpush3.bf16.msra.mxu0 %v854_v7  ;;  %752 = vmatpush3.bf16.msra.mxu1 %v854_v7 }
  0xb1   : > { %727 = vmatprep.subr.bf16.mxu0 %v855_v8  ;;  %745 = vmatprep.subr.bf16.mxu1 %v855_v8 }
  0xb4   : > { %728 = vmatpush3.bf16.msra.mxu0 %v855_v8  ;;  %753 = vmatpush3.bf16.msra.mxu1 %v855_v8 }
  0xb5   : > { %729 = vmatprep.subr.bf16.mxu0 %v856_v9  ;;  %746 = vmatprep.subr.bf16.mxu1 %v856_v9 }
  0xb8   : > { %730 = vmatpush3.bf16.msra.mxu0 %v856_v9  ;;  %754 = vmatpush3.bf16.msra.mxu1 %v856_v9 }
  0xbb   : > { %732 = vmatmul.mubr.bf16.vlgmr.msra.gmra.mrb[0].mxu0 %v859_v10  ;;  %736 = vmatmul.mubr.bf16.vlgmr.msra.gmra.mrb[0].mxu1 %v860_v11 }
 0x18e   : > { %v733_v13 = vpop.f32.mrb[0].mxu0  ;;  %v737_v15 = vpop.f32.mrb[0].mxu1 }
 0x18f   : > { %v464_v17 = vadd.f32 %v733_v13, %v682_v12  ;;  %v480_v18 = vadd.f32 %v737_v15, %v682_v12  ;;  %v455_v19 = vpop.f32.mrb[1].mxu0  ;;  %v471_v21 = vpop.f32.mrb[1].mxu1 }
 0x190   : > { %v456_v23 = vadd.f32 %v682_v12, %v455_v19  ;;  %v472_v24 = vadd.f32 %v682_v12, %v471_v21  ;;  %v734_v25 = vpop.f32.mrb[2].mxu0  ;;  %v738_v27 = vpop.f32.mrb[2].mxu1 }
 0x191   : > { %v496_v29 = vadd.f32 %v488_v14, %v464_v17  ;;  %v500_v30 = vadd.f32 %v492_v16, %v480_v18  ;;  %v467_v31 = vadd.f32 %v734_v25, %v682_v12  ;;  %v483_v32 = vadd.f32 %v738_v27, %v682_v12  ;;  %v458_v33 = vpop.f32.mrb[3].mxu0  ;;  %v474_v35 = vpop.f32.mrb[3].mxu1 }
 0x192   : > { %v494_v37 = vadd.f32 %v486_v20, %v456_v23  ;;  %v498_v38 = vadd.f32 %v490_v22, %v472_v24  ;;  %v459_v39 = vadd.f32 %v682_v12, %v458_v33  ;;  %v475_v40 = vadd.f32 %v682_v12, %v474_v35 }
 0x193   : > { %v504_v41 = vmax.f32 %v496_v29, 0.0  ;;  %v508_v42 = vmax.f32 %v500_v30, 0.0  ;;  %v497_v43 = vadd.f32 %v489_v26, %v467_v31  ;;  %v501_v44 = vadd.f32 %v493_v28, %v483_v32 }
 0x194   : > { %v502_v45 = vmax.f32 %v494_v37, 0.0  ;;  %v506_v46 = vmax.f32 %v498_v38, 0.0  ;;  %v495_v47 = vadd.f32 %v487_v34, %v459_v39  ;;  %v499_v48 = vadd.f32 %v491_v36, %v475_v40 }
 0x195   : > { %512 = vst [vmem:[%s1378_s24 + $0x10] sm:$0xff] %v504_v41  ;;  %516 = vst [vmem:[%s1378_s24 + $0x30] sm:$0xff] %v508_v42  ;;  %v505_v49 = vmax.f32 %v497_v43, 0.0  ;;  %v509_v50 = vmax.f32 %v501_v44, 0.0 }
 0x196   : > { %510 = vst [vmem:[%s1378_s24] sm:$0xff] %v502_v45  ;;  %514 = vst [vmem:[%s1378_s24 + $0x20] sm:$0xff] %v506_v46  ;;  %v503_v51 = vmax.f32 %v495_v47, 0.0  ;;  %v507_v52 = vmax.f32 %v499_v48, 0.0 }
 0x197   : > { %513 = vst [vmem:[%s1378_s24 + $0x18] sm:$0xff] %v505_v49  ;;  %517 = vst [vmem:[%s1378_s24 + $0x38] sm:$0xff] %v509_v50 }
 0x198   : > { %511 = vst [vmem:[%s1378_s24 + $0x8] sm:$0xff] %v503_v51  ;;  %515 = vst [vmem:[%s1378_s24 + $0x28] sm:$0xff] %v507_v52 }
 0x199   : > { %990 = shalt.err (!%p987_p13)
}
 0x19a   : > { %s991_s2 = scalar_lea.hbm %s1391_s21, 1024  ;;  %s995_s23 = scalar_lea.hbm %s1450_s4, 2048 }
 0x19b   : > { %p992_p3 = scmp.ne.s32.totalorder %s1391_s21, %s991_s2  ;;  %p996_p9 = scmp.lt.u32.totalorder %s1391_s21, %s1450_s4 }
 0x19c   : > { %p997_p10 = scmp.lt.u32.totalorder %s995_s23, %s991_s2  ;;  %p999_p12 = scmp.lt.u32.totalorder %s991_s2, %s1391_s21 }
 0x19d   : > { %p993_p4 = pnand %p992_p3, %p1476_p7 }
 0x19e   : > { %p998_p1 = por %p997_p10, %p996_p9 }
 0x19f   : > { %p994_p8 = pneg %p993_p4 }
 0x1a0   : > { %p1000_p0 = por %p999_p12, %p998_p1 }
 0x1a2   : > { %p1001_p11 = pnand %p1000_p0, %p994_p8 }
 0x1a4   : > { %1004 = shalt.err (!%p1001_p11)
}
 0x1a5   : > { %s1078_s1 = smov 128   ;;  %s1079_s29 = smov 8  }
 0x1a6   : > { %767 = dma.vmem_to_hbm [thread:$0]  (%p1476_p7), %s1384_s26, 1024, %s1391_s21, %s519_s30, %s1078_s1, %s1078_s1, %s1079_s29  }
 0x1a7 PF: > { %s548_s24 = sand.u32 1, %s1047_s15   ;;  %p1477_p5 = scmp.ne.s32.totalorder %s1463_s28, 0 }
 0x1a8   : > { %p1478_p2 = scmp.ge.s32.totalorder %s1067_s20, 2  ;;  %s549_s13 = scalar_lea.sflag [#allocation4], %s548_s24 }
 0x1aa   : > { %p784_p6 = pnand %p1478_p2, %p1477_p5 }
 0x1ac   : > { %1042 = dma.done.wait (!%p784_p6), %s549_s13, 1024  }
 0x1ad   : > { %1044 = vsyncadd (!%p784_p6), %s549_s13, 4294966272  ;;  %s24_s20 = sadd.s32 1, %s1067_s20   ;;  %s1479_s15 = smov %s1051_s16 }
 0x1ae   : > { %p21_p13 = scmp.ge.s32.totalorder %s24_s20, 4   ;;  %s1480_s16 = smov %s1055_s17 }
 0x1af   : > { %s1481_s17 = smov %s1269_s22  ;;  %s1482_s18 = smov %s1063_s19 }
 0x1b0   : > { %s1483_s19 = smov %s1485_s14  ;;  %23 = sbr.rel (!%p21_p13) target bundleno = 13 (0xd), region = 104 }
 0x1b7   :  { %554 = vsyncpa [#allocation3], 1 }
 0x1b8   :  { %556 = vsyncpa [#allocation3 + $0x1], 1 }
 0x1b9   :  { %557 = vsyncpa [#allocation6], 1 }
 0x1ba   :  { %558 = vsyncpa [#allocation9], 1 }
 0x1bb   :  { %560 = vsyncpa [#allocation9 + $0x1], 1 }
 0x1bc   :  { %561 = vsyncpa [#allocation4], 1 }
 0x1bd   :  { %563 = vsyncpa [#allocation4 + $0x1], 1 }

// kernel: _lambda_.5
= control target key start
LH: loop header
LB: loop body
LE: loop exit
PB: predicated region body
PF: predicated region fallthrough
CT: control target
= control target key end

     0   :  { %8 = vsyncpa [#allocation3], 0  ;;  %s4400_s0 = inlined_call_operand.hbm [shape: bf16[2,6,1,144,128], index: 0, kind: input, shape index: {}]   ;;  %s4401_s1 = inlined_call_operand.hbm [shape: bf16[9,128,128], index: 1, kind: input, shape index: {}]   ;;  %s4402_s2 = inlined_call_operand.hbm [shape: f32[1,128], index: 2, kind: input, shape index: {}]   ;;  %s4403_s3 = inlined_call_operand.hbm [shape: bf16[2,128,128], index: 3, kind: output, shape index: {}]  }
   0x1   :  { %10 = vsyncpa [#allocation3 + $0x1], 0 }
   0x2   :  { %11 = vsyncpa [#allocation6], 0 }
   0x3   :  { %12 = vsyncpa [#allocation4], 0 }
   0x4   :  { %14 = vsyncpa [#allocation4 + $0x1], 0  ;;  %s4024_s12 = smov 0   ;;  %s4026_s13 = smov 0  }
   0x5   :  { %s4028_s14 = smov 0   ;;  %s4030_s15 = smov 0  }
   0x6   :  { %s4032_s16 = smov 0   ;;  %s4034_s17 = smov 0  }
   0x7 LB: > { %s2659_s18 = sadd.s32 4294967295, %s3994_s17   ;;  %s2660_s19 = sadd.s32 4294967294, %s3994_s17   ;;  %s3994_s17 = sphi %s4034_s17, %s20_s17   ;;  %s3990_s16 = sphi %s4032_s16, %s4425_s16   ;;  %s3986_s15 = sphi %s4030_s15, %s4424_s15   ;;  %s3982_s14 = sphi %s4028_s14, %s4423_s14   ;;  %s3978_s13 = sphi %s4026_s13, %s4422_s13   ;;  %s3974_s12 = sphi %s4024_s12, %s4421_s12  }
   0x8   : > { %p61_p0 = scmp.ne.s32.totalorder %s3978_s13, %s3974_s12  ;;  %p4058_p1 = scmp.eq.s32.totalorder %s2659_s18, 0 }
   0x9   : > { %p4062_p2 = scmp.eq.s32.totalorder %s2659_s18, 1  ;;  %p147_p3 = scmp.eq.s32.totalorder %s2660_s19, 1 }
   0xa   : > { %s4408_s20 = scalar_select %p4058_p1, 1, 0 }
   0xb   : > { %p4068_p4 = por %p4058_p1, %p61_p0  ;;  %p2661_p5 = scmp.ge.s32.totalorder %s3994_s17, 1 }
   0xc   : > { %p4073_p6 = por %p147_p3, %p61_p0  ;;  %p154_p7 = scmp.lt.s32.totalorder %s3994_s17, 3 }
   0xd   : > { %s4410_s22 = scalar_select %p4068_p4, 1, 0 }
   0xe   : > { %s4411_s23 = scalar_select %p4073_p6, 1, 0 }
   0xf   : > { %p4078_p8 = pnand %p2661_p5, %p154_p7  ;;  %s3996_s25 = smov [#allocation5]  }
  0x10   : > { %s168_s26 = sshll.u32 %s3996_s25, 4  ;;  %s3997_s28 = smov [#allocation7]   ;;  %s4082_s26 = int_to_ptr.vmem [resolvable:$true] %s168_s26 }
  0x11   : > { %p3603_p9 = pneg %p4078_p8  ;;  %s184_s29 = sshll.u32 %s3997_s28, 4  ;;  %s4093_s29 = int_to_ptr.vmem [resolvable:$true] %s184_s29 }
  0x12   : > { %s3822_s5 = scalar_lea.hbm %s4401_s1, 9216 }
  0x13   : > { %p4089_p11 = pnand %p3603_p9, %p4058_p1  ;;  %p3823_p12 = scmp.ne.s32.totalorder %s4401_s1, %s3822_s5 }
  0x14   : > { %p3829_p5 = scmp.lt.u32.totalorder %s3822_s5, %s4401_s1 }
  0x15   : > { %p3824_p13 = pneg %p4089_p11 }
  0x17   : > { %p3825_p0 = pnand %p3824_p13, %p3823_p12 }
  0x19   : > { %p3826_p3 = pneg %p3825_p0 }
  0x1b   : > { %p3831_p7 = pnand %p3829_p5, %p3826_p3 }
  0x1d   : > { %3834 = shalt.err (!%p3831_p7)
}
  0x1e   : > { %s3835_s10 = scalar_lea.vmem %s4082_s26, 9216  ;;  %p3843_p1 = scmp.lt.s32.totalorder %s4082_s26, %s4082_s26 }
  0x1f   : > { %p3836_p9 = scmp.ne.s32.totalorder %s4082_s26, %s3835_s10  ;;  %p3844_p12 = scmp.lt.s32.totalorder %s3835_s10, %s3835_s10 }
  0x21   : > { %p3838_p10 = pnand %p3836_p9, %p3824_p13  ;;  %p3845_p0 = por %p3844_p12, %p3843_p1 }
  0x23   : > { %p3839_p6 = pneg %p3838_p10 }
  0x25   : > { %p3846_p4 = pnand %p3845_p0, %p3839_p6 }
  0x27   : > { %3849 = shalt.err (!%p3846_p4)
}
  0x28   : > { %s3998_s11 = smov 64   ;;  %s3999_s18 = smov 4  }
  0x29   : > { %3606 = dma.hbm_to_vmem [thread:$0]  (!%p4089_p11), %s4401_s1, 9216, %s4082_s26, [#allocation6], %s3998_s11, %s3998_s11, %s3999_s18  }
  0x2a   : > { %s3850_s4 = scalar_lea.hbm %s4402_s2, 16 }
  0x2b   : > { %p3851_p1 = scmp.ne.s32.totalorder %s4402_s2, %s3850_s4  ;;  %p3857_p10 = scmp.lt.u32.totalorder %s3850_s4, %s4402_s2 }
  0x2d   : > { %p3853_p4 = pnand %p3851_p1, %p3824_p13 }
  0x2f   : > { %p3854_p6 = pneg %p3853_p4 }
  0x31   : > { %p3859_p3 = pnand %p3857_p10, %p3854_p6 }
  0x33   : > { %3862 = shalt.err (!%p3859_p3)
}
  0x34   : > { %s3863_s26 = scalar_lea.vmem %s4093_s29, 16  ;;  %s3870_s9 = scalar_lea.vmem %s4093_s29, 32 }
  0x35   : > { %p3864_p5 = scmp.ne.s32.totalorder %s4093_s29, %s3863_s26  ;;  %p3871_p12 = scmp.lt.s32.totalorder %s4093_s29, %s4093_s29 }
  0x36   : > { %p3872_p0 = scmp.lt.s32.totalorder %s3870_s9, %s3863_s26 }
  0x37   : > { %p3866_p7 = pnand %p3864_p5, %p3824_p13 }
  0x38   : > { %p3873_p1 = por %p3872_p0, %p3871_p12 }
  0x39   : > { %p3867_p9 = pneg %p3866_p7 }
  0x3b   : > { %p3874_p4 = pnand %p3873_p1, %p3867_p9 }
  0x3d   : > { %3877 = shalt.err (!%p3874_p4)
}
  0x3e   : > { %3609 = dma.hbm_to_vmem [thread:$0]  (!%p4089_p11), %s4402_s2, 16, %s4093_s29, [#allocation6]  }
  0x3f   : > { %s39_s25 = sadd.s32 1, %s3990_s16  ;;  %s48_s28 = sadd.s32 1, %s3982_s14 }
  0x40   : > { %p41_p13 = scmp.ge.s32.totalorder %s39_s25, 2  ;;  %p55_p6 = scmp.ne.s32.totalorder %s3982_s14, %s3978_s13 }
  0x41   : > { %p56_p10 = scmp.eq.s32.totalorder %s3994_s17, 0  ;;  %p3620_p3 = scmp.lt.s32.totalorder %s3994_s17, 2 }
  0x42   : > { %s4427_s25 = smov (%p41_p13, %s39_s25), 0  ;;  %p4161_p7 = por %p4062_p2, %p55_p6 }
  0x43   : > { %p57_p5 = por %p56_p10, %p55_p6  ;;  %s43_s30 = ssub.s32 %s3990_s16, %s4427_s25 }
  0x44   : > { %s4414_s27 = scalar_select %p4161_p7, 1, 0 }
  0x45   : > { %s195_s4 = sand.u32 1, %s3982_s14   ;;  %p46_p9 = scmp.eq.s32.totalorder %s43_s30, 0 }
  0x46   : > { %s3588_s29 = smul.u32 432, %s195_s4  ;;  %p4168_p11 = pnand %p3620_p3, %p57_p5 }
  0x47   : > { %s4173_s6 = scalar_select %p46_p9, %s3982_s14, %s48_s28  }
  0x48   : > { %s3589_s7 = smul.u32 6912, %s3990_s16  ;;  %s199_s8 = scalar_lea.vmem [#allocation2], %s3588_s29 }
  0x49   : > { %s208_s26 = sshll.u32 %s199_s8, 4  ;;  %s4183_s19 = scalar_lea.sflag [#allocation3], %s195_s4  ;;  %s4181_s26 = int_to_ptr.vmem [resolvable:$true] %s208_s26 }
  0x4a   : > { %s4179_s10 = scalar_lea.hbm %s4400_s0, %s3589_s7  ;;  %p3880_p12 = pneg %p4168_p11 }
  0x4b   : > { %s3878_s30 = scalar_lea.hbm %s4179_s10, 6912  ;;  %s3883_s7 = scalar_lea.hbm %s4400_s0, 13824 }
  0x4c   : > { %p3879_p2 = scmp.ne.s32.totalorder %s4179_s10, %s3878_s30  ;;  %p3884_p4 = scmp.lt.u32.totalorder %s4179_s10, %s4400_s0 }
  0x4d   : > { %p3885_p13 = scmp.lt.u32.totalorder %s3883_s7, %s3878_s30  ;;  %p3887_p10 = scmp.lt.u32.totalorder %s3878_s30, %s4179_s10 }
  0x4e   : > { %p3881_p0 = pnand %p3880_p12, %p3879_p2 }
  0x4f   : > { %p3886_p6 = por %p3885_p13, %p3884_p4 }
  0x50   : > { %p3882_p1 = pneg %p3881_p0 }
  0x51   : > { %p3888_p3 = por %p3887_p10, %p3886_p6 }
  0x53   : > { %p3889_p5 = pnand %p3888_p3, %p3882_p1 }
  0x55   : > { %3892 = shalt.err (!%p3889_p5)
}
  0x56   : > { %s3893_s4 = scalar_lea.vmem %s4181_s26, 6912  ;;  %s4000_s9 = smov [#allocation2]  }
  0x57   : > { %p3894_p9 = scmp.ne.s32.totalorder %s4181_s26, %s3893_s4  ;;  %s3898_s28 = sshll.u32 %s4000_s9, 4  ;;  %s3899_s28 = int_to_ptr.vmem [resolvable:$false] %s3898_s28 }
  0x58   : > { %s3900_s29 = scalar_lea.vmem %s3899_s28, 13824  ;;  %p3901_p7 = scmp.lt.s32.totalorder %s4181_s26, %s3899_s28 }
  0x59   : > { %p3896_p2 = pnand %p3894_p9, %p3880_p12  ;;  %p3902_p4 = scmp.lt.s32.totalorder %s3900_s29, %s3893_s4 }
  0x5b   : > { %p3897_p0 = pneg %p3896_p2  ;;  %p3903_p13 = por %p3902_p4, %p3901_p7 }
  0x5d   : > { %p3904_p6 = pnand %p3903_p13, %p3897_p0 }
  0x5f   : > { %3907 = shalt.err (!%p3904_p6)
}
  0x60   : > { %3613 = dma.hbm_to_vmem [thread:$0]  (!%p4168_p11), %s4179_s10, 6912, %s4181_s26, %s4183_s19, %s3998_s11, %s3998_s11, %s3999_s18  }
  0x61   : > { %220 = sbr.rel (%p4078_p8) target bundleno = 516 (0x204), region = 32  ;;  %s4217_s30 = sand.u32 (!%p4078_p8), 1, %s3978_s13  }
  0x62   : > { %s3590_s7 = smul.u32 (!%p4078_p8), 432, %s4217_s30  ;;  %s223_s8 = scalar_lea.sflag (!%p4078_p8), [#allocation3], %s4217_s30 }
  0x63   : > { %p4416_p7 = scmp.ne.s32.totalorder (!%p4078_p8), %s4410_s22, 0 }
  0x64   : > { %s4221_s21 = scalar_lea.vmem (!%p4078_p8), [#allocation2], %s3590_s7 }
  0x68   : > { %3961 = dma.done.wait (%p4416_p7), %s223_s8, 6912  }
  0x69   : > { %3963 = vsyncadd (%p4416_p7), %s223_s8, 4294960384  ;;  %p4417_p11 = scmp.ne.s32.totalorder %s4408_s20, 0 }
  0x6b   : > { %3965 = dma.done.wait (%p4417_p11), [#allocation6], 9232  }
  0x6c   : > { %3967 = vsyncadd (%p4417_p11), [#allocation6], 4294958064  ;;  %v3678_v0 = vld [vmem:[#allocation5 + $0x40] sm:$0xff]   ;;  %v3680_v2 = vld [vmem:[#allocation5 + $0x48] sm:$0xff]   ;;  %s2669_s20 = sshll.u32 %s4217_s30, 6  ;;  %s2964_s24 = sshll.u32 %s3986_s15, 10 }
  0x6d   : > { %v3679_v1 = vld [vmem:[#allocation5 + $0x100] sm:$0xff]   ;;  %3156 = vmatprep.subr.bf16.mxu1 %v3678_v0  ;;  %v3681_v3 = vld [vmem:[#allocation5 + $0x108] sm:$0xff]   ;;  %v3682_v4 = vld [vmem:[#allocation5 + $0x50] sm:$0xff]   ;;  %s4323_s22 = scalar_lea.vmem [#allocation8], %s2669_s20  ;;  %s4345_s26 = scalar_lea.hbm %s4403_s3, %s2964_s24 }
  0x6e   : > { %3284 = vmatprep.subr.bf16.mxu0 %v3679_v1  ;;  %3157 = vmatpush3.bf16.msra.mxu1 %v3678_v0  ;;  %v3683_v5 = vld [vmem:[#allocation5 + $0x110] sm:$0xff]   ;;  %v3684_v6 = vld [vmem:[#allocation5 + $0x58] sm:$0xff]   ;;  %v3686_v8 = vld [vmem:[#allocation5 + $0x60] sm:$0xff]   ;;  %s2545_s11 = sshll.u32 %s4323_s22, 4  ;;  %s2529_s15 = scalar_lea.sflag [#allocation4], %s4217_s30  ;;  %s4347_s11 = int_to_ptr.vmem [resolvable:$true] %s2545_s11 }
  0x6f   : > { %3285 = vmatpush3.bf16.msra.mxu0 %v3679_v1  ;;  %3158 = vmatprep.subr.bf16.mxu1 %v3680_v2  ;;  %v3685_v7 = vld [vmem:[#allocation5 + $0x118] sm:$0xff]   ;;  %v3687_v9 = vld [vmem:[#allocation5 + $0x120] sm:$0xff]   ;;  %v3688_v10 = vld [vmem:[#allocation5 + $0x68] sm:$0xff]   ;;  %s3908_s10 = scalar_lea.vmem %s4347_s11, 1024  ;;  %p4418_p12 = scmp.ne.s32.totalorder %s4414_s27, 0 }
  0x70   : > { %3286 = vmatprep.subr.bf16.mxu0 %v3681_v3  ;;  %v3689_v11 = vld [vmem:[#allocation5 + $0x128] sm:$0xff]   ;;  %v3694_v12 = vld [vmem:[%s4221_s21 + $0x90] sm:$0xff]   ;;  %v3692_v16 = vld [vmem:[#allocation5 + $0x78] sm:$0xff]   ;;  %p3909_p8 = scmp.ne.s32.totalorder %s4347_s11, %s3908_s10  ;;  %s4001_s19 = smov [#allocation8]  }
  0x71   : > { %v3695_v13 = vld [vmem:[%s4221_s21 + $0xd8] sm:$0xff]   ;;  %3172 = vmatprep.mubr.bf16.mxu1 %v3694_v12  ;;  %v3690_v14 = vld [vmem:[#allocation5 + $0x70] sm:$0xff]   ;;  %v3697_v19 = vld [vmem:[#allocation5] sm:$0xff]   ;;  %s3912_s4 = sshll.u32 %s4001_s19, 4  ;;  %s3913_s4 = int_to_ptr.vmem [resolvable:$false] %s3912_s4 }
  0x72   : > { %3159 = vmatpush3.bf16.msra.mxu1 %v3680_v2  ;;  %3300 = vmatprep.mubr.bf16.mxu0 %v3695_v13  ;;  %v3691_v15 = vld [vmem:[#allocation5 + $0x130] sm:$0xff]   ;;  %v3693_v17 = vld [vmem:[#allocation5 + $0x138] sm:$0xff]   ;;  %v3699_v20 = vld [vmem:[#allocation5 + $0x140] sm:$0xff]   ;;  %p3910_p1 = pnand %p3909_p8, %p4418_p12  ;;  %s3914_s9 = scalar_lea.vmem %s3913_s4, 2048 }
  0x73   : > { %3287 = vmatpush3.bf16.msra.mxu0 %v3681_v3  ;;  %3160 = vmatprep.subr.bf16.mxu1 %v3682_v4  ;;  %v3696_v18 = vld [vmem:[%s4221_s21 + $0x98] sm:$0xff]   ;;  %v3698_v21 = vld [vmem:[%s4221_s21 + $0xe0] sm:$0xff]   ;;  %v3703_v25 = vld [vmem:[%s4221_s21 + $0xe8] sm:$0xff]   ;;  %p3915_p3 = scmp.lt.s32.totalorder %s4347_s11, %s3913_s4  ;;  %p3916_p5 = scmp.lt.s32.totalorder %s3914_s9, %s3908_s10 }
  0x74   : > { %3288 = vmatprep.subr.bf16.mxu0 %v3683_v5  ;;  %v3700_v22 = vld [vmem:[#allocation5 + $0x8] sm:$0xff]   ;;  %v3702_v24 = vld [vmem:[%s4221_s21 + $0xa0] sm:$0xff]   ;;  %v3706_v29 = vld [vmem:[%s4221_s21 + $0xf0] sm:$0xff]   ;;  %p3911_p10 = pneg %p3910_p1 }
  0x75   : > { %v3701_v23 = vld [vmem:[#allocation5 + $0x148] sm:$0xff]   ;;  %v3705_v27 = vld [vmem:[#allocation5 + $0x10] sm:$0xff]   ;;  %v3708_v30 = vld [vmem:[#allocation5 + $0x18] sm:$0xff]   ;;  %p3917_p9 = por %p3916_p5, %p3915_p3 }
  0x76   : > { %3161 = vmatpush3.bf16.msra.mxu1 %v3682_v4  ;;  %v3704_v26 = vld [vmem:[%s4221_s21 + $0xa8] sm:$0xff]   ;;  %v3707_v28 = vld [vmem:[#allocation5 + $0x150] sm:$0xff]   ;;  %v3711_v33 = vld [vmem:[%s4221_s21 + $0xf8] sm:$0xff]  }
  0x77   : > { %3289 = vmatpush3.bf16.msra.mxu0 %v3683_v5  ;;  %3162 = vmatprep.subr.bf16.mxu1 %v3684_v6  ;;  %v3709_v31 = vld [vmem:[#allocation5 + $0x158] sm:$0xff]   ;;  %v3710_v32 = vld [vmem:[%s4221_s21 + $0xb0] sm:$0xff]   ;;  %v3714_v37 = vld [vmem:[%s4221_s21 + $0x100] sm:$0xff]   ;;  %p3918_p2 = pnand %p3917_p9, %p3911_p10 }
  0x78   : > { %3290 = vmatprep.subr.bf16.mxu0 %v3685_v7  ;;  %v3712_v34 = vld [vmem:[%s4221_s21 + $0xb8] sm:$0xff]   ;;  %v3713_v35 = vld [vmem:[#allocation5 + $0x20] sm:$0xff]   ;;  %v3719_v41 = vld [vmem:[%s4221_s21 + $0x108] sm:$0xff]  }
  0x79   : > { %v3715_v36 = vld [vmem:[#allocation5 + $0x160] sm:$0xff]   ;;  %v3716_v38 = vld [vmem:[#allocation5 + $0x28] sm:$0xff]   ;;  %v3721_v43 = vld [vmem:[#allocation5 + $0x30] sm:$0xff]  }
  0x7a   : > { %3163 = vmatpush3.bf16.msra.mxu1 %v3684_v6  ;;  %v3717_v39 = vld [vmem:[#allocation5 + $0x168] sm:$0xff]   ;;  %v3718_v40 = vld [vmem:[%s4221_s21 + $0xc0] sm:$0xff]   ;;  %v3722_v45 = vld [vmem:[%s4221_s21 + $0x110] sm:$0xff]  }
  0x7b   : > { %3291 = vmatpush3.bf16.msra.mxu0 %v3685_v7  ;;  %3164 = vmatprep.subr.bf16.mxu1 %v3686_v8  ;;  %v3720_v42 = vld [vmem:[%s4221_s21 + $0xc8] sm:$0xff]   ;;  %v3723_v44 = vld [vmem:[#allocation5 + $0x170] sm:$0xff]   ;;  %v3729_v51 = vld [vmem:[#allocation5 + $0x80] sm:$0xff]  }
  0x7c   : > { %3292 = vmatprep.subr.bf16.mxu0 %v3687_v9  ;;  %v3724_v46 = vld [vmem:[#allocation5 + $0x38] sm:$0xff]   ;;  %v3726_v48 = vld [vmem:[%s4221_s21] sm:$0xff]   ;;  %v3730_v53 = vld [vmem:[%s4221_s21 + $0x170] sm:$0xff]  }
  0x7d   : > { %v3725_v47 = vld [vmem:[#allocation5 + $0x178] sm:$0xff]   ;;  %v3731_v52 = vld [vmem:[#allocation5 + $0x180] sm:$0xff]   ;;  %v3732_v54 = vld [vmem:[#allocation5 + $0x88] sm:$0xff]  }
  0x7e   : > { %3165 = vmatpush3.bf16.msra.mxu1 %v3686_v8  ;;  %v3727_v49 = vld [vmem:[%s4221_s21 + $0x168] sm:$0xff]   ;;  %v3734_v56 = vld [vmem:[%s4221_s21 + $0x10] sm:$0xff]   ;;  %v3735_v57 = vld [vmem:[%s4221_s21 + $0x178] sm:$0xff]  }
  0x7f   : > { %3293 = vmatpush3.bf16.msra.mxu0 %v3687_v9  ;;  %3166 = vmatprep.subr.bf16.mxu1 %v3688_v10  ;;  %v3728_v50 = vld [vmem:[%s4221_s21 + $0x8] sm:$0xff]   ;;  %v3736_v58 = vld [vmem:[%s4221_s21 + $0x18] sm:$0xff]   ;;  %v3737_v59 = vld [vmem:[#allocation5 + $0x90] sm:$0xff]  }
  0x80   : > { %3294 = vmatprep.subr.bf16.mxu0 %v3689_v11  ;;  %v3733_v55 = vld [vmem:[#allocation5 + $0x188] sm:$0xff]   ;;  %v3739_v60 = vld [vmem:[#allocation5 + $0x190] sm:$0xff]   ;;  %v3740_v62 = vld [vmem:[#allocation5 + $0x98] sm:$0xff]  }
  0x81   : > { %v3738_v61 = vld [vmem:[%s4221_s21 + $0x180] sm:$0xff]   ;;  %v3741_v63 = vld [vmem:[#allocation5 + $0x198] sm:$0xff]   ;;  %v3746_v5 = vld [vmem:[%s4221_s21 + $0x190] sm:$0xff]  }
  0x82   : > { %3167 = vmatpush3.bf16.msra.mxu1 %v3688_v10  ;;  %v3742_v0 = vld [vmem:[%s4221_s21 + $0x20] sm:$0xff]   ;;  %v3743_v1 = vld [vmem:[%s4221_s21 + $0x188] sm:$0xff]   ;;  %v3750_v8 = vld [vmem:[%s4221_s21 + $0x30] sm:$0xff]  }
  0x83   : > { %3295 = vmatpush3.bf16.msra.mxu0 %v3689_v11  ;;  %3168 = vmatprep.subr.bf16.mxu1 %v3690_v14  ;;  %v3744_v2 = vld [vmem:[%s4221_s21 + $0x28] sm:$0xff]   ;;  %v3745_v3 = vld [vmem:[#allocation5 + $0xa0] sm:$0xff]   ;;  %v3751_v9 = vld [vmem:[%s4221_s21 + $0x198] sm:$0xff]  }
  0x84   : > { %3296 = vmatprep.subr.bf16.mxu0 %v3691_v15  ;;  %v3747_v4 = vld [vmem:[#allocation5 + $0x1a0] sm:$0xff]   ;;  %v3748_v6 = vld [vmem:[#allocation5 + $0xa8] sm:$0xff]   ;;  %v3753_v11 = vld [vmem:[#allocation5 + $0xb0] sm:$0xff]  }
  0x85   : > { %v3749_v7 = vld [vmem:[#allocation5 + $0x1a8] sm:$0xff]   ;;  %v3755_v12 = vld [vmem:[#allocation5 + $0x1b0] sm:$0xff]  }
  0x86   : > { %3169 = vmatpush3.bf16.msra.mxu1 %v3690_v14  ;;  %v3752_v10 = vld [vmem:[%s4221_s21 + $0x38] sm:$0xff]   ;;  %v3754_v13 = vld [vmem:[%s4221_s21 + $0x1a0] sm:$0xff]  }
  0x87   : > { %3297 = vmatpush3.bf16.msra.mxu0 %v3691_v15  ;;  %3170 = vmatprep.subr.bf16.mxu1 %v3692_v16  ;;  %v3756_v14 = vld [vmem:[#allocation5 + $0xb8] sm:$0xff]  }
  0x88   : > { %3298 = vmatprep.subr.bf16.mxu0 %v3693_v17  ;;  %v3757_v15 = vld [vmem:[#allocation5 + $0x1b8] sm:$0xff]  }
  0x8a   : > { %3171 = vmatpush3.bf16.msra.mxu1 %v3692_v16  ;;  %v3758_v16 = vld [vmem:[%s4221_s21 + $0x120] sm:$0xff]  }
  0x8b   : > { %3299 = vmatpush3.bf16.msra.mxu0 %v3693_v17  ;;  %3188 = vmatprep.subr.bf16.mxu1 %v3697_v19  ;;  %v3759_v17 = vld [vmem:[%s4221_s21 + $0x8] sm:$0xff]  }
  0x8c   : > { %3316 = vmatprep.subr.bf16.mxu0 %v3699_v20 }
  0x8d   : > { %3173 = vmatmul.mubr.bf16.vlgmr.msra.gmra.mrb[0].mxu1 %v3696_v18  ;;  %v3760_v18 = vld [vmem:[%s4221_s21 + $0x128] sm:$0xff]  }
  0x8e   : > { %3301 = vmatmul.mubr.bf16.vlgmr.msra.gmra.mrb[0].mxu0 %v3698_v21  ;;  %3189 = vmatpush3.bf16.msra.mxu1 %v3697_v19  ;;  %v3761_v19 = vld [vmem:[#allocation5 + $0xc0] sm:$0xff]  }
  0x8f   : > { %3317 = vmatpush3.bf16.msra.mxu0 %v3699_v20  ;;  %3190 = vmatprep.subr.bf16.mxu1 %v3700_v22  ;;  %v3763_v20 = vld [vmem:[#allocation5 + $0x1c0] sm:$0xff]  }
  0x90   : > { %3318 = vmatprep.subr.bf16.mxu0 %v3701_v23  ;;  %3176 = vmatprep.mubr.bf16.mxu1 %v3702_v24  ;;  %v3762_v21 = vld [vmem:[%s4221_s21 + $0x10] sm:$0xff]  }
  0x91   : > { %3304 = vmatprep.mubr.bf16.mxu0 %v3703_v25  ;;  %v3766_v24 = vld [vmem:[%s4221_s21 + $0x130] sm:$0xff]   ;;  %v3767_v25 = vld [vmem:[%s4221_s21 + $0x18] sm:$0xff]  }
  0x92   : > { %3191 = vmatpush3.bf16.msra.mxu1 %v3700_v22  ;;  %v3764_v22 = vld [vmem:[#allocation5 + $0xc8] sm:$0xff]  }
  0x93   : > { %3319 = vmatpush3.bf16.msra.mxu0 %v3701_v23  ;;  %3192 = vmatprep.subr.bf16.mxu1 %v3705_v27  ;;  %v3765_v23 = vld [vmem:[#allocation5 + $0x1c8] sm:$0xff]  }
  0x94   : > { %3320 = vmatprep.subr.bf16.mxu0 %v3707_v28 }
  0x95   : > { %3177 = vmatmul.mubr.bf16.gmra.mrb[4].mxu1 %v3704_v26  ;;  %v3768_v26 = vld [vmem:[%s4221_s21 + $0x138] sm:$0xff]  }
  0x96   : > { %3305 = vmatmul.mubr.bf16.gmra.mrb[4].mxu0 %v3706_v29  ;;  %3193 = vmatpush3.bf16.msra.mxu1 %v3705_v27  ;;  %v3769_v27 = vld [vmem:[#allocation5 + $0xd0] sm:$0xff]  }
  0x97   : > { %3321 = vmatpush3.bf16.msra.mxu0 %v3707_v28  ;;  %3194 = vmatprep.subr.bf16.mxu1 %v3708_v30  ;;  %v3771_v28 = vld [vmem:[#allocation5 + $0x1d0] sm:$0xff]  }
  0x98   : > { %3322 = vmatprep.subr.bf16.mxu0 %v3709_v31  ;;  %3180 = vmatprep.mubr.bf16.mxu1 %v3710_v32  ;;  %v3770_v29 = vld [vmem:[%s4221_s21 + $0x20] sm:$0xff]  }
  0x99   : > { %3308 = vmatprep.mubr.bf16.mxu0 %v3711_v33  ;;  %v3774_v32 = vld [vmem:[%s4221_s21 + $0x140] sm:$0xff]   ;;  %v3775_v33 = vld [vmem:[%s4221_s21 + $0x28] sm:$0xff]  }
  0x9a   : > { %3195 = vmatpush3.bf16.msra.mxu1 %v3708_v30  ;;  %v3772_v30 = vld [vmem:[#allocation5 + $0xd8] sm:$0xff]  }
  0x9b   : > { %3323 = vmatpush3.bf16.msra.mxu0 %v3709_v31  ;;  %3196 = vmatprep.subr.bf16.mxu1 %v3713_v35  ;;  %v3773_v31 = vld [vmem:[#allocation5 + $0x1d8] sm:$0xff]  }
  0x9c   : > { %3324 = vmatprep.subr.bf16.mxu0 %v3715_v36 }
  0x9d   : > { %3181 = vmatmul.mubr.bf16.gmra.mrb[8].mxu1 %v3712_v34  ;;  %v3776_v34 = vld [vmem:[%s4221_s21 + $0x148] sm:$0xff]  }
  0x9e   : > { %3309 = vmatmul.mubr.bf16.gmra.mrb[8].mxu0 %v3714_v37  ;;  %3197 = vmatpush3.bf16.msra.mxu1 %v3713_v35  ;;  %v3777_v35 = vld [vmem:[#allocation5 + $0xe0] sm:$0xff]  }
  0x9f   : > { %3325 = vmatpush3.bf16.msra.mxu0 %v3715_v36  ;;  %3198 = vmatprep.subr.bf16.mxu1 %v3716_v38  ;;  %v3779_v36 = vld [vmem:[#allocation5 + $0x1e0] sm:$0xff]  }
  0xa0   : > { %3326 = vmatprep.subr.bf16.mxu0 %v3717_v39  ;;  %3184 = vmatprep.mubr.bf16.mxu1 %v3718_v40  ;;  %v3778_v37 = vld [vmem:[%s4221_s21 + $0x30] sm:$0xff]  }
  0xa1   : > { %3312 = vmatprep.mubr.bf16.mxu0 %v3719_v41  ;;  %v3782_v40 = vld [vmem:[%s4221_s21 + $0x150] sm:$0xff]   ;;  %v3783_v41 = vld [vmem:[%s4221_s21 + $0x38] sm:$0xff]  }
  0xa2   : > { %3199 = vmatpush3.bf16.msra.mxu1 %v3716_v38  ;;  %v3780_v38 = vld [vmem:[#allocation5 + $0xe8] sm:$0xff]  }
  0xa3   : > { %3327 = vmatpush3.bf16.msra.mxu0 %v3717_v39  ;;  %3200 = vmatprep.subr.bf16.mxu1 %v3721_v43  ;;  %v3781_v39 = vld [vmem:[#allocation5 + $0x1e8] sm:$0xff]  }
  0xa4   : > { %3328 = vmatprep.subr.bf16.mxu0 %v3723_v44 }
  0xa5   : > { %3185 = vmatmul.mubr.bf16.gmra.mrb[12].mxu1 %v3720_v42  ;;  %v3784_v42 = vld [vmem:[%s4221_s21 + $0x158] sm:$0xff]  }
  0xa6   : > { %3313 = vmatmul.mubr.bf16.gmra.mrb[12].mxu0 %v3722_v45  ;;  %3201 = vmatpush3.bf16.msra.mxu1 %v3721_v43  ;;  %v3785_v43 = vld [vmem:[#allocation5 + $0xf0] sm:$0xff]  }
  0xa7   : > { %3329 = vmatpush3.bf16.msra.mxu0 %v3723_v44  ;;  %3202 = vmatprep.subr.bf16.mxu1 %v3724_v46  ;;  %v3787_v44 = vld [vmem:[#allocation5 + $0x1f0] sm:$0xff]  }
  0xa8   : > { %3330 = vmatprep.subr.bf16.mxu0 %v3725_v47  ;;  %3204 = vmatprep.mubr.bf16.mxu1 %v3726_v48  ;;  %v3786_v45 = vld [vmem:[%s4221_s21 + $0x40] sm:$0xff]   ;;  %v3790_v48 = vld [vmem:[%s4221_s21 + $0x48] sm:$0xff]  }
  0xa9   : > { %3332 = vmatprep.mubr.bf16.mxu0 %v3727_v49  ;;  %v3791_v49 = vld [vmem:[%s4221_s21 + $0x98] sm:$0xff]  }
  0xaa   : > { %3203 = vmatpush3.bf16.msra.mxu1 %v3724_v46  ;;  %v3788_v46 = vld [vmem:[#allocation5 + $0xf8] sm:$0xff]  }
  0xab   : > { %3331 = vmatpush3.bf16.msra.mxu0 %v3725_v47  ;;  %3220 = vmatprep.subr.bf16.mxu1 %v3729_v51  ;;  %v3789_v47 = vld [vmem:[#allocation5 + $0x1f8] sm:$0xff]  }
  0xac   : > { %3348 = vmatprep.subr.bf16.mxu0 %v3731_v52 }
  0xad   : > { %3205 = vmatmul.mubr.bf16.vlgmr.msra.gmra.mrb[0].mxu1 %v3728_v50  ;;  %v3794_v50 = vld [vmem:[#allocation5 + $0x200] sm:$0xff]  }
  0xae   : > { %3333 = vmatmul.mubr.bf16.vlgmr.msra.gmra.mrb[0].mxu0 %v3730_v53  ;;  %3221 = vmatpush3.bf16.msra.mxu1 %v3729_v51  ;;  %v3792_v51 = vld [vmem:[%s4221_s21 + $0x50] sm:$0xff]   ;;  %v3795_v53 = vld [vmem:[#allocation5 + $0x208] sm:$0xff]  }
  0xaf   : > { %3349 = vmatpush3.bf16.msra.mxu0 %v3731_v52  ;;  %3222 = vmatprep.subr.bf16.mxu1 %v3732_v54  ;;  %v3793_v52 = vld [vmem:[%s4221_s21 + $0xa0] sm:$0xff]  }
  0xb0   : > { %3350 = vmatprep.subr.bf16.mxu0 %v3733_v55  ;;  %3208 = vmatprep.mubr.bf16.mxu1 %v3734_v56  ;;  %v3800_v56 = vld [vmem:[#allocation5 + $0x210] sm:$0xff]  }
  0xb1   : > { %3336 = vmatprep.mubr.bf16.mxu0 %v3735_v57  ;;  %v3798_v57 = vld [vmem:[%s4221_s21 + $0x60] sm:$0xff]  }
  0xb2   : > { %3223 = vmatpush3.bf16.msra.mxu1 %v3732_v54  ;;  %v3796_v54 = vld [vmem:[%s4221_s21 + $0x58] sm:$0xff]  }
  0xb3   : > { %3351 = vmatpush3.bf16.msra.mxu0 %v3733_v55  ;;  %3224 = vmatprep.subr.bf16.mxu1 %v3737_v59  ;;  %v3797_v55 = vld [vmem:[%s4221_s21 + $0xa8] sm:$0xff]  }
  0xb4   : > { %3352 = vmatprep.subr.bf16.mxu0 %v3739_v60 }
  0xb5   : > { %3209 = vmatmul.mubr.bf16.gmra.mrb[4].mxu1 %v3736_v58  ;;  %v3799_v58 = vld [vmem:[%s4221_s21 + $0xb0] sm:$0xff]  }
  0xb6   : > { %3337 = vmatmul.mubr.bf16.gmra.mrb[4].mxu0 %v3738_v61  ;;  %3225 = vmatpush3.bf16.msra.mxu1 %v3737_v59  ;;  %v3801_v59 = vld [vmem:[#allocation5 + $0x218] sm:$0xff]  }
  0xb7   : > { %3353 = vmatpush3.bf16.msra.mxu0 %v3739_v60  ;;  %3226 = vmatprep.subr.bf16.mxu1 %v3740_v62  ;;  %v3802_v60 = vld [vmem:[%s4221_s21 + $0x68] sm:$0xff]   ;;  %v3803_v61 = vld [vmem:[%s4221_s21 + $0xb8] sm:$0xff]  }
  0xb8   : > { %3354 = vmatprep.subr.bf16.mxu0 %v3741_v63  ;;  %3212 = vmatprep.mubr.bf16.mxu1 %v3742_v0  ;;  %v3805_v0 = vld [vmem:[%s4221_s21 + $0xc0] sm:$0xff]  }
  0xb9   : > { %3340 = vmatprep.mubr.bf16.mxu0 %v3743_v1  ;;  %v3807_v1 = vld [vmem:[#allocation5 + $0x228] sm:$0xff]  }
  0xba   : > { %3227 = vmatpush3.bf16.msra.mxu1 %v3740_v62  ;;  %v3806_v62 = vld [vmem:[#allocation5 + $0x220] sm:$0xff]  }
  0xbb   : > { %3355 = vmatpush3.bf16.msra.mxu0 %v3741_v63  ;;  %3228 = vmatprep.subr.bf16.mxu1 %v3745_v3  ;;  %v3804_v63 = vld [vmem:[%s4221_s21 + $0x70] sm:$0xff]  }
  0xbc   : > { %3356 = vmatprep.subr.bf16.mxu0 %v3747_v4 }
  0xbd   : > { %3213 = vmatmul.mubr.bf16.gmra.mrb[8].mxu1 %v3744_v2  ;;  %v3808_v2 = vld [vmem:[%s4221_s21 + $0x78] sm:$0xff]  }
  0xbe   : > { %3341 = vmatmul.mubr.bf16.gmra.mrb[8].mxu0 %v3746_v5  ;;  %3229 = vmatpush3.bf16.msra.mxu1 %v3745_v3  ;;  %v3809_v3 = vld [vmem:[%s4221_s21 + $0xc8] sm:$0xff]   ;;  %v3810_v5 = vld [vmem:[%s4221_s21 + $0x80] sm:$0xff]  }
  0xbf   : > { %3357 = vmatpush3.bf16.msra.mxu0 %v3747_v4  ;;  %3230 = vmatprep.subr.bf16.mxu1 %v3748_v6  ;;  %v3812_v4 = vld [vmem:[#allocation5 + $0x230] sm:$0xff]  }
  0xc0   : > { %3358 = vmatprep.subr.bf16.mxu0 %v3749_v7  ;;  %3216 = vmatprep.mubr.bf16.mxu1 %v3750_v8  ;;  %v3814_v8 = vld [vmem:[%s4221_s21 + $0x128] sm:$0xff]  }
  0xc1   : > { %3344 = vmatprep.mubr.bf16.mxu0 %v3751_v9  ;;  %v3815_v9 = vld [vmem:[%s4221_s21 + $0x148] sm:$0xff]  }
  0xc2   : > { %3231 = vmatpush3.bf16.msra.mxu1 %v3748_v6  ;;  %v3811_v6 = vld [vmem:[%s4221_s21 + $0xd0] sm:$0xff]  }
  0xc3   : > { %3359 = vmatpush3.bf16.msra.mxu0 %v3749_v7  ;;  %3232 = vmatprep.subr.bf16.mxu1 %v3753_v11  ;;  %v3813_v7 = vld [vmem:[#allocation5 + $0x238] sm:$0xff]  }
  0xc4   : > { %3360 = vmatprep.subr.bf16.mxu0 %v3755_v12 }
  0xc5   : > { %3217 = vmatmul.mubr.bf16.gmra.mrb[12].mxu1 %v3752_v10  ;;  %v3817_v10 = vld [vmem:[%s4221_s21 + $0x150] sm:$0xff]  }
  0xc6   : > { %3345 = vmatmul.mubr.bf16.gmra.mrb[12].mxu0 %v3754_v13  ;;  %3233 = vmatpush3.bf16.msra.mxu1 %v3753_v11  ;;  %v3816_v11 = vld [vmem:[%s4221_s21 + $0x130] sm:$0xff]   ;;  %v3818_v13 = vld [vmem:[%s4221_s21 + $0x138] sm:$0xff]  }
  0xc7   : > { %3361 = vmatpush3.bf16.msra.mxu0 %v3755_v12  ;;  %3234 = vmatprep.subr.bf16.mxu1 %v3756_v14  ;;  %v3819_v12 = vld [vmem:[%s4221_s21 + $0x158] sm:$0xff]  }
  0xc8   : > { %3362 = vmatprep.subr.bf16.mxu0 %v3757_v15  ;;  %3236 = vmatprep.mubr.bf16.mxu1 %v3758_v16 }
  0xc9   : > { %3364 = vmatprep.mubr.bf16.mxu0 %v3759_v17 }
  0xca   : > { %3235 = vmatpush3.bf16.msra.mxu1 %v3756_v14  ;;  %v3821_v14 = vld [vmem:[%s4221_s21 + $0x160] sm:$0xff]  }
  0xcb   : > { %3363 = vmatpush3.bf16.msra.mxu0 %v3757_v15  ;;  %3252 = vmatprep.subr.bf16.mxu1 %v3761_v19  ;;  %v3820_v15 = vld [vmem:[%s4221_s21 + $0x140] sm:$0xff]  }
  0xcc   : > { %3380 = vmatprep.subr.bf16.mxu0 %v3763_v20 }
  0xcd   : > { %3237 = vmatmul.mubr.bf16.vlgmr.msra.gmra.mrb[0].mxu1 %v3760_v18 }
  0xce   : > { %3365 = vmatmul.mubr.bf16.vlgmr.msra.gmra.mrb[0].mxu0 %v3762_v21  ;;  %3253 = vmatpush3.bf16.msra.mxu1 %v3761_v19 }
  0xcf   : > { %3381 = vmatpush3.bf16.msra.mxu0 %v3763_v20  ;;  %3254 = vmatprep.subr.bf16.mxu1 %v3764_v22 }
  0xd0   : > { %3382 = vmatprep.subr.bf16.mxu0 %v3765_v23  ;;  %3240 = vmatprep.mubr.bf16.mxu1 %v3766_v24 }
  0xd1   : > { %3368 = vmatprep.mubr.bf16.mxu0 %v3767_v25 }
  0xd2   : > { %3255 = vmatpush3.bf16.msra.mxu1 %v3764_v22 }
  0xd3   : > { %3383 = vmatpush3.bf16.msra.mxu0 %v3765_v23  ;;  %3256 = vmatprep.subr.bf16.mxu1 %v3769_v27 }
  0xd4   : > { %3384 = vmatprep.subr.bf16.mxu0 %v3771_v28 }
  0xd5   : > { %3241 = vmatmul.mubr.bf16.gmra.mrb[4].mxu1 %v3768_v26 }
  0xd6   : > { %3369 = vmatmul.mubr.bf16.gmra.mrb[4].mxu0 %v3770_v29  ;;  %3257 = vmatpush3.bf16.msra.mxu1 %v3769_v27 }
  0xd7   : > { %3385 = vmatpush3.bf16.msra.mxu0 %v3771_v28  ;;  %3258 = vmatprep.subr.bf16.mxu1 %v3772_v30 }
  0xd8   : > { %3386 = vmatprep.subr.bf16.mxu0 %v3773_v31  ;;  %3244 = vmatprep.mubr.bf16.mxu1 %v3774_v32 }
  0xd9   : > { %3372 = vmatprep.mubr.bf16.mxu0 %v3775_v33 }
  0xda   : > { %3259 = vmatpush3.bf16.msra.mxu1 %v3772_v30 }
  0xdb   : > { %3387 = vmatpush3.bf16.msra.mxu0 %v3773_v31  ;;  %3260 = vmatprep.subr.bf16.mxu1 %v3777_v35 }
  0xdc   : > { %3388 = vmatprep.subr.bf16.mxu0 %v3779_v36 }
  0xdd   : > { %3245 = vmatmul.mubr.bf16.gmra.mrb[8].mxu1 %v3776_v34 }
  0xde   : > { %3373 = vmatmul.mubr.bf16.gmra.mrb[8].mxu0 %v3778_v37  ;;  %3261 = vmatpush3.bf16.msra.mxu1 %v3777_v35 }
  0xdf   : > { %3389 = vmatpush3.bf16.msra.mxu0 %v3779_v36  ;;  %3262 = vmatprep.subr.bf16.mxu1 %v3780_v38 }
  0xe0   : > { %3390 = vmatprep.subr.bf16.mxu0 %v3781_v39  ;;  %3248 = vmatprep.mubr.bf16.mxu1 %v3782_v40 }
  0xe1   : > { %3376 = vmatprep.mubr.bf16.mxu0 %v3783_v41 }
  0xe2   : > { %3263 = vmatpush3.bf16.msra.mxu1 %v3780_v38 }
  0xe3   : > { %3391 = vmatpush3.bf16.msra.mxu0 %v3781_v39  ;;  %3264 = vmatprep.subr.bf16.mxu1 %v3785_v43 }
  0xe4   : > { %3392 = vmatprep.subr.bf16.mxu0 %v3787_v44 }
  0xe5   : > { %3249 = vmatmul.mubr.bf16.gmra.mrb[12].mxu1 %v3784_v42 }
  0xe6   : > { %3377 = vmatmul.mubr.bf16.gmra.mrb[12].mxu0 %v3786_v45  ;;  %3265 = vmatpush3.bf16.msra.mxu1 %v3785_v43 }
  0xe7   : > { %3393 = vmatpush3.bf16.msra.mxu0 %v3787_v44  ;;  %3266 = vmatprep.subr.bf16.mxu1 %v3788_v46 }
  0xe8   : > { %3394 = vmatprep.subr.bf16.mxu0 %v3789_v47  ;;  %3268 = vmatprep.mubr.bf16.mxu1 %v3790_v48  ;;  %v4311_v48 = vld [vmem:[#allocation7] ss:$0 sm:$0xff] }
  0xe9   : > { %3396 = vmatprep.mubr.bf16.mxu0 %v3791_v49 }
  0xea   : > { %3267 = vmatpush3.bf16.msra.mxu1 %v3788_v46 }
  0xeb   : > { %3395 = vmatpush3.bf16.msra.mxu0 %v3789_v47  ;;  %3444 = vmatprep.subr.bf16.mxu1 %v3794_v50 }
  0xec   : > { %3412 = vmatprep.subr.bf16.mxu0 %v3794_v50 }
  0xed   : > { %3269 = vmatmul.mubr.bf16.vlgmr.msra.gmra.mrb[0].mxu1 %v3792_v51 }
  0xee   : > { %3397 = vmatmul.mubr.bf16.vlgmr.msra.gmra.mrb[0].mxu0 %v3793_v52  ;;  %3452 = vmatpush3.bf16.msra.mxu1 %v3794_v50 }
  0xef   : > { %3413 = vmatpush3.bf16.msra.mxu0 %v3794_v50  ;;  %3445 = vmatprep.subr.bf16.mxu1 %v3795_v53 }
  0xf0   : > { %3414 = vmatprep.subr.bf16.mxu0 %v3795_v53  ;;  %3272 = vmatprep.mubr.bf16.mxu1 %v3796_v54 }
  0xf1   : > { %3400 = vmatprep.mubr.bf16.mxu0 %v3797_v55 }
  0xf2   : > { %3453 = vmatpush3.bf16.msra.mxu1 %v3795_v53 }
  0xf3   : > { %3415 = vmatpush3.bf16.msra.mxu0 %v3795_v53  ;;  %3446 = vmatprep.subr.bf16.mxu1 %v3800_v56 }
  0xf4   : > { %3416 = vmatprep.subr.bf16.mxu0 %v3800_v56 }
  0xf5   : > { %3273 = vmatmul.mubr.bf16.gmra.mrb[4].mxu1 %v3798_v57 }
  0xf6   : > { %3401 = vmatmul.mubr.bf16.gmra.mrb[4].mxu0 %v3799_v58  ;;  %3454 = vmatpush3.bf16.msra.mxu1 %v3800_v56 }
  0xf7   : > { %3417 = vmatpush3.bf16.msra.mxu0 %v3800_v56  ;;  %3447 = vmatprep.subr.bf16.mxu1 %v3801_v59 }
  0xf8   : > { %3418 = vmatprep.subr.bf16.mxu0 %v3801_v59  ;;  %3276 = vmatprep.mubr.bf16.mxu1 %v3802_v60 }
  0xf9   : > { %3404 = vmatprep.mubr.bf16.mxu0 %v3803_v61 }
  0xfa   : > { %3455 = vmatpush3.bf16.msra.mxu1 %v3801_v59 }
  0xfb   : > { %3419 = vmatpush3.bf16.msra.mxu0 %v3801_v59  ;;  %3448 = vmatprep.subr.bf16.mxu1 %v3806_v62 }
  0xfc   : > { %3420 = vmatprep.subr.bf16.mxu0 %v3806_v62 }
  0xfd   : > { %3277 = vmatmul.mubr.bf16.gmra.mrb[8].mxu1 %v3804_v63 }
  0xfe   : > { %3405 = vmatmul.mubr.bf16.gmra.mrb[8].mxu0 %v3805_v0  ;;  %3456 = vmatpush3.bf16.msra.mxu1 %v3806_v62 }
  0xff   : > { %3421 = vmatpush3.bf16.msra.mxu0 %v3806_v62  ;;  %3449 = vmatprep.subr.bf16.mxu1 %v3807_v1 }
 0x100   : > { %3422 = vmatprep.subr.bf16.mxu0 %v3807_v1  ;;  %3280 = vmatprep.mubr.bf16.mxu1 %v3808_v2 }
 0x101   : > { %3408 = vmatprep.mubr.bf16.mxu0 %v3809_v3 }
 0x102   : > { %3457 = vmatpush3.bf16.msra.mxu1 %v3807_v1 }
 0x103   : > { %3423 = vmatpush3.bf16.msra.mxu0 %v3807_v1  ;;  %3450 = vmatprep.subr.bf16.mxu1 %v3812_v4 }
 0x104   : > { %3424 = vmatprep.subr.bf16.mxu0 %v3812_v4 }
 0x105   : > { %3281 = vmatmul.mubr.bf16.gmra.mrb[12].mxu1 %v3810_v5 }
 0x106   : > { %3409 = vmatmul.mubr.bf16.gmra.mrb[12].mxu0 %v3811_v6  ;;  %3458 = vmatpush3.bf16.msra.mxu1 %v3812_v4 }
 0x107   : > { %3425 = vmatpush3.bf16.msra.mxu0 %v3812_v4  ;;  %3451 = vmatprep.subr.bf16.mxu1 %v3813_v7 }
 0x108   : > { %3426 = vmatprep.subr.bf16.mxu0 %v3813_v7  ;;  %3428 = vmatprep.mubr.bf16.mxu0 %v3814_v8 }
 0x109   : > { %3436 = vmatprep.mubr.bf16.mxu1 %v3815_v9 }
 0x10a   : > { %3459 = vmatpush3.bf16.msra.mxu1 %v3813_v7 }
 0x10b   : > { %3427 = vmatpush3.bf16.msra.mxu0 %v3813_v7 }
 0x10d   : > { %3437 = vmatmul.mubr.bf16.vlgmr.msra.gmra.mrb[16].mxu1 %v3817_v10 }
 0x10e   : > { %3429 = vmatmul.mubr.bf16.vlgmr.msra.gmra.mrb[0].mxu0 %v3816_v11  ;;  %3440 = vmatprep.mubr.bf16.mxu1 %v3819_v12 }
 0x10f   : > { %3432 = vmatprep.mubr.bf16.mxu0 %v3818_v13 }
 0x115   : > { %3441 = vmatmul.mubr.bf16.gmra.mrb[20].mxu1 %v3821_v14 }
 0x116   : > { %3433 = vmatmul.mubr.bf16.gmra.mrb[4].mxu0 %v3820_v15 }
 0x1c0   : > { %v3270_v16 = vpop.f32.mrb[0].mxu1 }
 0x1c1   : > { %v1118_v17 = vpop.f32.mrb[1].mxu1 }
 0x1c2   : > { %v3271_v18 = vpop.f32.mrb[2].mxu1 }
 0x1c3   : > { %v1121_v19 = vpop.f32.mrb[3].mxu1 }
 0x1c8   : > { %v4303_v20 = vpop.f32.mrb[4].mxu1 }
 0x1c9   : > { %v4305_v21 = vpop.f32.mrb[5].mxu1 }
 0x1ca   : > { %v4307_v22 = vpop.f32.mrb[6].mxu1 }
 0x1cb   : > { %v4309_v23 = vpop.f32.mrb[7].mxu1 }
 0x1d0   : > { %v3278_v24 = vpop.f32.mrb[8].mxu1 }
 0x1d1   : > { %v3406_v25 = vpop.f32.mrb[8].mxu0  ;;  %v1150_v26 = vpop.f32.mrb[9].mxu1 }
 0x1d2   : > { %v3468_v27 = vadd.f32 %v3406_v25, %v3278_v24  ;;  %v2120_v28 = vpop.f32.mrb[9].mxu0  ;;  %v3279_v29 = vpop.f32.mrb[10].mxu1 }
 0x1d3   : > { %v3470_v30 = vadd.f32 %v2120_v28, %v1150_v26  ;;  %v3407_v31 = vpop.f32.mrb[10].mxu0  ;;  %v1153_v32 = vpop.f32.mrb[11].mxu1 }
 0x1d4   : > { %v3472_v33 = vadd.f32 %v3407_v31, %v3279_v29  ;;  %v2123_v34 = vpop.f32.mrb[11].mxu0 }
 0x1d5   : > { %v3474_v35 = vadd.f32 %v2123_v34, %v1153_v32 }
 0x1d8   : > { %v3282_v36 = vpop.f32.mrb[12].mxu1 }
 0x1d9   : > { %v3410_v37 = vpop.f32.mrb[12].mxu0  ;;  %v1166_v38 = vpop.f32.mrb[13].mxu1 }
 0x1da   : > { %v3476_v39 = vadd.f32 %v3410_v37, %v3282_v36  ;;  %v2136_v40 = vpop.f32.mrb[13].mxu0  ;;  %v3283_v41 = vpop.f32.mrb[14].mxu1 }
 0x1db   : > { %v3478_v42 = vadd.f32 %v2136_v40, %v1166_v38  ;;  %v3411_v43 = vpop.f32.mrb[14].mxu0  ;;  %v1169_v44 = vpop.f32.mrb[15].mxu1 }
 0x1dc   : > { %v3480_v45 = vadd.f32 %v3411_v43, %v3283_v41  ;;  %v2139_v46 = vpop.f32.mrb[15].mxu0 }
 0x1dd   : > { %v3482_v47 = vadd.f32 %v2139_v46, %v1169_v44 }
 0x1e0   : > { %v3438_v49 = vpop.f32.mrb[16].mxu1 }
 0x1e1   : > { %v3430_v50 = vpop.f32.mrb[0].mxu0  ;;  %v3469_v51 = vadd.f32 %v3468_v27, %v3438_v49  ;;  %v2362_v52 = vpop.f32.mrb[17].mxu1 }
 0x1e2   : > { %v3460_v53 = vadd.f32 %v3430_v50, %v3270_v16  ;;  %v2330_v54 = vpop.f32.mrb[1].mxu0  ;;  %v3471_v55 = vadd.f32 %v3470_v30, %v2362_v52  ;;  %v3439_v56 = vpop.f32.mrb[18].mxu1 }
 0x1e3   : > { %v2426_v57 = vadd.f32 %v3469_v51, %v4311_v48  ;;  %v3461_v58 = vadd.f32 %v2330_v54, %v1118_v17  ;;  %v3431_v59 = vpop.f32.mrb[2].mxu0  ;;  %v3473_v60 = vadd.f32 %v3472_v33, %v3439_v56  ;;  %v2365_v61 = vpop.f32.mrb[19].mxu1 }
 0x1e4   : > { %v2418_v62 = vadd.f32 %v3460_v53, %v4311_v48  ;;  %v2424_v63 = vadd.f32 %v3471_v55, %v4311_v48  ;;  %v3462_v0 = vadd.f32 %v3431_v59, %v3271_v18  ;;  %v2333_v1 = vpop.f32.mrb[3].mxu0  ;;  %v3475_v2 = vadd.f32 %v3474_v35, %v2365_v61 }
 0x1e5   : > { %v2416_v3 = vadd.f32 %v3461_v58, %v4311_v48  ;;  %v2427_v4 = vadd.f32 %v3473_v60, %v4311_v48  ;;  %v3463_v5 = vadd.f32 %v2333_v1, %v1121_v19  ;;  %v2442_v8 = vmax.f32 %v2426_v57, 0.0 }
 0x1e6   : > { %v2419_v6 = vadd.f32 %v3462_v0, %v4311_v48  ;;  %v2425_v7 = vadd.f32 %v3475_v2, %v4311_v48  ;;  %v2434_v11 = vmax.f32 %v2418_v62, 0.0  ;;  %v2440_v12 = vmax.f32 %v2424_v63, 0.0 }
 0x1e7   : > { %v2443_v9 = vmax.f32 %v2427_v4, 0.0  ;;  %v2417_v10 = vadd.f32 %v3463_v5, %v4311_v48  ;;  %v2432_v16 = vmax.f32 %v2416_v3, 0.0 }
 0x1e8   : > { %v2435_v13 = vmax.f32 %v2419_v6, 0.0  ;;  %v2441_v14 = vmax.f32 %v2425_v7, 0.0  ;;  %v3442_v15 = vpop.f32.mrb[20].mxu1 }
 0x1e9   : > { %v2993_v17 = vpack.c.bf16 %v2443_v9, %v2442_v8  ;;  %v2433_v18 = vmax.f32 %v2417_v10, 0.0  ;;  %v3434_v24 = vpop.f32.mrb[4].mxu0  ;;  %v3477_v25 = vadd.f32 %v3476_v39, %v3442_v15  ;;  %v2378_v26 = vpop.f32.mrb[21].mxu1 }
 0x1ea   : > { %v2973_v19 = vpack.c.bf16 %v2435_v13, %v2434_v11  ;;  %v2988_v27 = vpack.c.bf16 %v2441_v14, %v2440_v12  ;;  %v3464_v28 = vadd.f32 %v3434_v24, %v4303_v20  ;;  %v2346_v29 = vpop.f32.mrb[5].mxu0  ;;  %v3479_v30 = vadd.f32 %v3478_v42, %v2378_v26  ;;  %v3443_v31 = vpop.f32.mrb[22].mxu1 }
 0x1eb   : > { %3009 = vst [vmem:[%s4323_s22 + $0x28] sm:$0xff] %v2993_v17   ;;  %v2968_v32 = vpack.c.bf16 %v2433_v18, %v2432_v16  ;;  %v2430_v33 = vadd.f32 %v3477_v25, %v4311_v48  ;;  %v3465_v34 = vadd.f32 %v2346_v29, %v4305_v21  ;;  %v3435_v35 = vpop.f32.mrb[6].mxu0  ;;  %v3481_v36 = vadd.f32 %v3480_v45, %v3443_v31  ;;  %v2381_v37 = vpop.f32.mrb[23].mxu1 }
 0x1ec   : > { %3005 = vst [vmem:[%s4323_s22 + $0x8] sm:$0xff] %v2973_v19   ;;  %3008 = vst [vmem:[%s4323_s22 + $0x20] sm:$0xff] %v2988_v27   ;;  %v2422_v20 = vadd.f32 %v3464_v28, %v4311_v48  ;;  %v2428_v38 = vadd.f32 %v3479_v30, %v4311_v48  ;;  %v3466_v39 = vadd.f32 %v3435_v35, %v4307_v22  ;;  %v2349_v40 = vpop.f32.mrb[7].mxu0 }
 0x1ed   : > { %v3483_v41 = vadd.f32 %v3482_v47, %v2381_v37  ;;  %2969 = vst [vmem:[%s4323_s22] sm:$0xff] %v2968_v32   ;;  %v2420_v42 = vadd.f32 %v3465_v34, %v4311_v48  ;;  %v2431_v21 = vadd.f32 %v3481_v36, %v4311_v48  ;;  %v3467_v43 = vadd.f32 %v2349_v40, %v4309_v23 }
 0x1ee   : > { %v2423_v44 = vadd.f32 %v3466_v39, %v4311_v48  ;;  %v2446_v46 = vmax.f32 %v2430_v33, 0.0  ;;  %v2438_v22 = vmax.f32 %v2422_v20, 0.0  ;;  %v2444_v47 = vmax.f32 %v2428_v38, 0.0 }
 0x1ef   : > { %v2429_v45 = vadd.f32 %v3483_v41, %v4311_v48  ;;  %v2447_v49 = vmax.f32 %v2431_v21, 0.0  ;;  %v2421_v50 = vadd.f32 %v3467_v43, %v4311_v48  ;;  %v2436_v23 = vmax.f32 %v2420_v42, 0.0 }
 0x1f0   : > { %v2439_v51 = vmax.f32 %v2423_v44, 0.0 }
 0x1f1   : > { %v2445_v52 = vmax.f32 %v2429_v45, 0.0  ;;  %v3003_v53 = vpack.c.bf16 %v2447_v49, %v2446_v46  ;;  %v2437_v54 = vmax.f32 %v2421_v50, 0.0 }
 0x1f2   : > { %v2983_v55 = vpack.c.bf16 %v2439_v51, %v2438_v22 }
 0x1f3   : > { %v2998_v56 = vpack.c.bf16 %v2445_v52, %v2444_v47  ;;  %3011 = vst [vmem:[%s4323_s22 + $0x38] sm:$0xff] %v3003_v53   ;;  %v2978_v48 = vpack.c.bf16 %v2437_v54, %v2436_v23 }
 0x1f4   : > { %3007 = vst [vmem:[%s4323_s22 + $0x18] sm:$0xff] %v2983_v55  }
 0x1f5   : > { %3010 = vst [vmem:[%s4323_s22 + $0x30] sm:$0xff] %v2998_v56   ;;  %3006 = vst [vmem:[%s4323_s22 + $0x10] sm:$0xff] %v2978_v48  }
 0x1f6   : > { %3921 = shalt.err (!%p3918_p2)
}
 0x1f7   : > { %s3922_s28 = scalar_lea.hbm %s4345_s26, 1024  ;;  %s3926_s8 = scalar_lea.hbm %s4403_s3, 2048 }
 0x1f8   : > { %p3923_p0 = scmp.ne.s32.totalorder %s4345_s26, %s3922_s28  ;;  %p3927_p6 = scmp.lt.u32.totalorder %s4345_s26, %s4403_s3 }
 0x1f9   : > { %p3928_p7 = scmp.lt.u32.totalorder %s3926_s8, %s3922_s28  ;;  %p3930_p8 = scmp.lt.u32.totalorder %s3922_s28, %s4345_s26 }
 0x1fa   : > { %p3924_p4 = pnand %p3923_p0, %p4418_p12 }
 0x1fb   : > { %p3929_p11 = por %p3928_p7, %p3927_p6 }
 0x1fc   : > { %p3925_p13 = pneg %p3924_p4 }
 0x1fd   : > { %p3931_p1 = por %p3930_p8, %p3929_p11 }
 0x1ff   : > { %p3932_p10 = pnand %p3931_p1, %p3925_p13 }
 0x201   : > { %3935 = shalt.err (!%p3932_p10)
}
 0x202   : > { %s4002_s22 = smov 64   ;;  %s4003_s24 = smov 4  }
 0x203   : > { %3601 = dma.vmem_to_hbm [thread:$0]  (%p4418_p12), %s4347_s11, 1024, %s4345_s26, %s2529_s15, %s4002_s22, %s4002_s22, %s4003_s24  }
 0x204 PF: > { %s2560_s18 = sand.u32 1, %s3974_s12   ;;  %p4419_p3 = scmp.ne.s32.totalorder %s4411_s23, 0 }
 0x205   : > { %p4420_p5 = scmp.ge.s32.totalorder %s3994_s17, 2  ;;  %s2561_s5 = scalar_lea.sflag [#allocation4], %s2560_s18 }
 0x207   : > { %p3615_p9 = pnand %p4420_p5, %p4419_p3 }
 0x209   : > { %3969 = dma.done.wait (!%p3615_p9), %s2561_s5, 1024  }
 0x20a   : > { %3971 = vsyncadd (!%p3615_p9), %s2561_s5, 4294966272  ;;  %s20_s17 = sadd.s32 1, %s3994_s17   ;;  %s4421_s12 = smov %s3978_s13 }
 0x20b   : > { %p17_p2 = scmp.ge.s32.totalorder %s20_s17, 4   ;;  %s4422_s13 = smov %s3982_s14 }
 0x20c   : > { %s4423_s14 = smov %s4173_s6  ;;  %s4424_s15 = smov %s3990_s16 }
 0x20d   : > { %s4425_s16 = smov %s4427_s25  ;;  %19 = sbr.rel (!%p17_p2) target bundleno = 7 (0x7), region = 100 }
 0x214   :  { %2566 = vsyncpa [#allocation3], 1 }
 0x215   :  { %2568 = vsyncpa [#allocation3 + $0x1], 1 }
 0x216   :  { %2569 = vsyncpa [#allocation6], 1 }
 0x217   :  { %2570 = vsyncpa [#allocation4], 1 }
 0x218   :  { %2572 = vsyncpa [#allocation4 + $0x1], 1 }

</bundles_post_ra>
